<compile_context>
chip_gen: v6e
topology: v6e:2x2x1
jax: 0.10.0
libtpu: 0.0.40
codegen_flags: <defaults>
</compile_context>

<pallas_src>
import functools

import jax
import jax.numpy as jnp
import numpy as np
from jax import lax
from jax.experimental import pallas as pl
from jax.experimental.pallas import tpu as pltpu


# ----------------------------------------------------------------------------
# In-kernel 3x3 "SAME" convolution, transposed layout, tap-stacked contraction
# ----------------------------------------------------------------------------
def _conv3x3_kstack(x_bf, w_bf, xcol, H, W):
    """3x3 zero-padded conv in the (channels, pixels) layout.

    x_bf : (Cin, H*W) bf16, pixel (y, x) at lane y*W + x
    w_bf : (3, Cout, 3*Cin) bf16, w_bf[dx+1, co, (dy+1)*Cin + c] = HWIO[dy+1, dx+1, c, co]
    xcol : (1, H*W) int32, x coordinate of each output lane
    returns (Cout, H*W) float32
    """
    cin = x_bf.shape[0]
    hw = H * W
    # Lane-tile-aligned halo pad so the concatenate below is an aligned copy;
    # the dy/dx taps then become plain (cheap, unaligned-read) lane slices.
    padw = ((W + 1 + 127) // 128) * 128
    zpad = jnp.zeros((cin, padw), x_bf.dtype)
    xp = jnp.concatenate([zpad, x_bf, zpad], axis=1)        # (Cin, hw + 2*padw)

    acc = None
    for dxi, dx in enumerate((-1, 0, 1)):
        # Stack the three dy taps along the contraction axis -> K = 3*Cin.
        taps = [xp[:, padw + dy * W + dx: padw + dy * W + dx + hw]
                for dy in (-1, 0, 1)]
        grp = jnp.concatenate(taps, axis=0)                 # (3*Cin, H*W) bf16
        if dx == -1:                                        # left image edge
            grp = jnp.where(xcol > 0, grp, jnp.zeros_like(grp))
        elif dx == 1:                                       # right image edge
            grp = jnp.where(xcol < W - 1, grp, jnp.zeros_like(grp))
        part = jnp.dot(w_bf[dxi], grp, preferred_element_type=jnp.float32)
        acc = part if acc is None else acc + part
    return acc                                              # (Cout, H*W) f32


# ----------------------------------------------------------------------------
# Fused ResidualGroup kernel: R x (conv+ReLU+conv+CALayer+res) + tail conv + res
# ----------------------------------------------------------------------------
def _residual_group_kernel(x_ref, w1_ref, b1_ref, w2_ref, b2_ref,
                           cw1_ref, cb1_ref, cw2t_ref, cb2_ref,
                           tw_ref, tb_ref, o_ref, *, H, W, R):
    hw = H * W
    xcol = lax.broadcasted_iota(jnp.int32, (1, hw), 1) % W   # per-lane x coord

    res = x_ref[0]                                           # (C, H*W) f32
    for r in range(R):
        # ---- conv1 + ReLU (bf16 MXU inputs, f32 accumulation) ----
        c1 = jnp.maximum(
            _conv3x3_kstack(res.astype(jnp.bfloat16), w1_ref[r], xcol, H, W)
            + b1_ref[r], 0.0)                                # (C, H*W) f32
        # ---- conv2 ----
        c2 = (_conv3x3_kstack(c1.astype(jnp.bfloat16), w2_ref[r], xcol, H, W)
              + b2_ref[r])                                   # (C, H*W) f32
        # ---- CALayer: global-average-pool gate, VPU/XLU only ----
        pooled = jnp.mean(c2, axis=1, keepdims=True)         # (C, 1)
        h = jnp.maximum(
            jnp.sum(cw1_ref[r] * pooled, axis=0, keepdims=True)
            + cb1_ref[r], 0.0)                               # (1, Cr)
        gate = jax.nn.sigmoid(
            jnp.sum(cw2t_ref[r] * h, axis=1, keepdims=True)
            + cb2_ref[r])                                    # (C, 1)
        # ---- RCAB residual: stays f32 and VMEM-resident ----
        res = c2 * gate + res

    # ---- tail conv + group residual (x re-read from its VMEM block instead of
    # keeping the initial load live across the whole body) ----
    out = (_conv3x3_kstack(res.astype(jnp.bfloat16), tw_ref[...], xcol, H, W)
           + tb_ref[...] + x_ref[0])
    o_ref[0] = out.astype(o_ref.dtype)


# ----------------------------------------------------------------------------
# One-time host-side weight packing (hoisted out of the forward path)
# ----------------------------------------------------------------------------
def prepare_params(params):
    """Pack weights for the kernel: tap-stacked bf16 conv weights (3, Cout, 3*Cin)
    and CA weights/biases laid out for the transposed (C, H*W) compute."""
    def prep_w(w):   # HWIO (3, 3, Cin, Cout) -> (3, Cout, 3*Cin) bf16
        kh, kw, cin, cout = w.shape
        return (w.transpose(1, 3, 0, 2)          # (dx, cout, dy, cin)
                 .reshape(kw, cout, kh * cin)
                 .astype(jnp.bfloat16))

    rc = params["rcabs"]
    C = params["tail_w"].shape[2]
    return dict(
        w1=jnp.stack([prep_w(p["w1"]) for p in rc]),
        b1=jnp.stack([p["b1"].reshape(C, 1) for p in rc]),
        w2=jnp.stack([prep_w(p["w2"]) for p in rc]),
        b2=jnp.stack([p["b2"].reshape(C, 1) for p in rc]),
        ca_w1=jnp.stack([p["ca_w1"] for p in rc]),               # (R, C, Cr)
        ca_b1=jnp.stack([p["ca_b1"].reshape(1, -1) for p in rc]),  # (R, 1, Cr)
        ca_w2t=jnp.stack([p["ca_w2"].T for p in rc]),            # (R, C, Cr)
        ca_b2=jnp.stack([p["ca_b2"].reshape(C, 1) for p in rc]),  # (R, C, 1)
        tail_w=prep_w(params["tail_w"]),
        tail_b=params["tail_b"].reshape(C, 1),
    )


def _vmem_limit_bytes():
    cap = 128 * 1024 * 1024
    try:
        cap = int(getattr(pltpu.get_tpu_info(), "vmem_capacity_bytes", cap))
    except Exception:
        pass
    # ~62% of per-core VMEM: ~40 MiB on v7x (64 MiB/TC), capped at 64 MiB on
    # the 128 MiB v5e/v6e parts.
    return int(min(64 * 1024 * 1024, (cap * 5) // 8))


# ----------------------------------------------------------------------------
# ResidualGroup forward (one pallas_call over the batch grid)
# ----------------------------------------------------------------------------
@jax.jit
def residual_group_forward(x, kp):
    N, H, W, C = x.shape
    R = kp["w1"].shape[0]
    Cr = kp["ca_w1"].shape[-1]
    hw = H * W

    # Lane-dense kernel layout: (N, C, H*W) with the pixel axis on lanes.
    x_t = x.transpose(0, 3, 1, 2).reshape(N, C, hw)

    kern = functools.partial(_residual_group_kernel, H=H, W=W, R=R)
    act = lambda n: (n, 0, 0)
    c3 = lambda n: (0, 0, 0)
    c4 = lambda n: (0, 0, 0, 0)

    out_t = pl.pallas_call(
        kern,
        out_shape=jax.ShapeDtypeStruct((N, C, hw), jnp.float32),
        grid_spec=pltpu.PrefetchScalarGridSpec(
            num_scalar_prefetch=0,
            grid=(N,),
            in_specs=[
                pl.BlockSpec((1, C, hw), act),            # x (f32)
                pl.BlockSpec((R, 3, C, 3 * C), c4),       # conv1 weights (bf16)
                pl.BlockSpec((R, C, 1), c3),              # conv1 bias
                pl.BlockSpec((R, 3, C, 3 * C), c4),       # conv2 weights (bf16)
                pl.BlockSpec((R, C, 1), c3),              # conv2 bias
                pl.BlockSpec((R, C, Cr), c3),             # CA w1
                pl.BlockSpec((R, 1, Cr), c3),             # CA b1
                pl.BlockSpec((R, C, Cr), c3),             # CA w2 (transposed)
                pl.BlockSpec((R, C, 1), c3),              # CA b2
                pl.BlockSpec((3, C, 3 * C), c3),          # tail weights (bf16)
                pl.BlockSpec((C, 1), lambda n: (0, 0)),   # tail bias
            ],
            out_specs=pl.BlockSpec((1, C, hw), act),
        ),
        compiler_params=pltpu.CompilerParams(
            dimension_semantics=("parallel",),
            vmem_limit_bytes=_vmem_limit_bytes()),
    )(x_t, kp["w1"], kp["b1"], kp["w2"], kp["b2"],
      kp["ca_w1"], kp["ca_b1"], kp["ca_w2t"], kp["ca_b2"],
      kp["tail_w"], kp["tail_b"])

    return out_t.reshape(N, C, H, W).transpose(0, 2, 3, 1)


# ----------------------------------------------------------------------------
# Pure-JAX reference (full f32, for correctness check)
# ----------------------------------------------------------------------------
def _conv3x3_ref(x, w, b):
    y = lax.conv_general_dilated(
        x, w, window_strides=(1, 1), padding="SAME",
        dimension_numbers=("NHWC", "HWIO", "NHWC"),
        precision=lax.Precision.HIGHEST)
    return y + b.reshape(1, 1, 1, -1)


def residual_group_ref(x, params):
    res = x
    for p in params["rcabs"]:
        c1 = jnp.maximum(_conv3x3_ref(res, p["w1"], p["b1"]), 0.0)
        c2 = _conv3x3_ref(c1, p["w2"], p["b2"])
        pooled = jnp.mean(c2, axis=(1, 2))                     # (N, C)
        h = jnp.maximum(pooled @ p["ca_w1"] + p["ca_b1"], 0.0)
        y = jax.nn.sigmoid(h @ p["ca_w2"] + p["ca_b2"])
        res = c2 * y[:, None, None, :] + res
    return _conv3x3_ref(res, params["tail_w"], params["tail_b"]) + x


# ----------------------------------------------------------------------------
# Deterministic parameter construction
# ----------------------------------------------------------------------------
def make_params(key, n_feat, reduction, n_resblocks):
    cr = n_feat // reduction
    rcabs = []
    for _ in range(n_resblocks):
        key, *ks = jax.random.split(key, 7)
        s3 = 1.0 / np.sqrt(9 * n_feat)
        rcabs.append(dict(
            w1=jax.random.normal(ks[0], (3, 3, n_feat, n_feat), jnp.float32) * s3,
            b1=jax.random.normal(ks[1], (n_feat,), jnp.float32) * 0.01,
            w2=jax.random.normal(ks[2], (3, 3, n_feat, n_feat), jnp.float32) * s3,
            b2=jax.random.normal(ks[3], (n_feat,), jnp.float32) * 0.01,
            ca_w1=jax.random.normal(ks[4], (n_feat, cr), jnp.float32)
                  * (1.0 / np.sqrt(n_feat)),
            ca_b1=jnp.zeros((cr,), jnp.float32),
            ca_w2=jax.random.normal(ks[5], (cr, n_feat), jnp.float32)
                  * (1.0 / np.sqrt(cr)),
            ca_b2=jnp.zeros((n_feat,), jnp.float32),
        ))
    key, k1, k2 = jax.random.split(key, 3)
    tail_w = jax.random.normal(k1, (3, 3, n_feat, n_feat), jnp.float32) \
             * (1.0 / np.sqrt(9 * n_feat))
    tail_b = jax.random.normal(k2, (n_feat,), jnp.float32) * 0.01
    return dict(rcabs=rcabs, tail_w=tail_w, tail_b=tail_b)


# ----------------------------------------------------------------------------
if __name__ == "__main__":
    # Small but representative shapes (module default n_feat=64, n_resblocks=20
    # shrunk to keep the demo fast; reduction kept at the default 8).
    N, H, W = 2, 16, 16
    n_feat, reduction, n_resblocks = 32, 8, 2

    key = jax.random.PRNGKey(0)
    key, kx, kparam = jax.random.split(key, 3)
    x = jax.random.normal(kx, (N, H, W, n_feat), jnp.float32) * 0.1
    params = make_params(kparam, n_feat, reduction, n_resblocks)

    kp = prepare_params(params)            # one-time weight packing (hoisted)

    out = jax.block_until_ready(residual_group_forward(x, kp))

    ref = jax.block_until_ready(residual_group_ref(x, params))
    # Convs use bf16 MXU inputs with f32 accumulation (residual chain stays
    # f32), so compare against the f32 reference with relaxed tolerances.
    np.testing.assert_allclose(np.asarray(out), np.asarray(ref),
                               rtol=2e-2, atol=2e-2)

    print("KERNEL_OK")
</pallas_src>

<mosaic_0001>
module attributes {stable_mosaic.version = 11 : i64} {
  func.func @_residual_group_kernel(%arg0: i32, %arg1: memref<1x32x256xf32, #tpu.memory_space<vmem>>, %arg2: memref<2x3x32x96xbf16, #tpu.memory_space<vmem>>, %arg3: memref<2x32x1xf32, #tpu.memory_space<vmem>>, %arg4: memref<2x3x32x96xbf16, #tpu.memory_space<vmem>>, %arg5: memref<2x32x1xf32, #tpu.memory_space<vmem>>, %arg6: memref<2x32x4xf32, #tpu.memory_space<vmem>>, %arg7: memref<2x1x4xf32, #tpu.memory_space<vmem>>, %arg8: memref<2x32x4xf32, #tpu.memory_space<vmem>>, %arg9: memref<2x32x1xf32, #tpu.memory_space<vmem>>, %arg10: memref<3x32x96xbf16, #tpu.memory_space<vmem>>, %arg11: memref<32x1xf32, #tpu.memory_space<vmem>>, %arg12: memref<1x32x256xf32, #tpu.memory_space<vmem>>) attributes {dimension_semantics = [#tpu.dimension_semantics<parallel>], iteration_bounds = array<i64: 2>, scalar_prefetch = 0 : i64, scratch_operands = 0 : i64, tpu.core_type = #tpu.core_type<tc>, window_params = [{transform_indices = @transform_0, window_bounds = array<i64: 1, 32, 256>}, {pipeline_mode = #tpu.pipeline_mode<synchronous>, transform_indices = @transform_1, window_bounds = array<i64: 2, 3, 32, 96>}, {pipeline_mode = #tpu.pipeline_mode<synchronous>, transform_indices = @transform_2, window_bounds = array<i64: 2, 32, 1>}, {pipeline_mode = #tpu.pipeline_mode<synchronous>, transform_indices = @transform_3, window_bounds = array<i64: 2, 3, 32, 96>}, {pipeline_mode = #tpu.pipeline_mode<synchronous>, transform_indices = @transform_4, window_bounds = array<i64: 2, 32, 1>}, {pipeline_mode = #tpu.pipeline_mode<synchronous>, transform_indices = @transform_5, window_bounds = array<i64: 2, 32, 4>}, {pipeline_mode = #tpu.pipeline_mode<synchronous>, transform_indices = @transform_6, window_bounds = array<i64: 2, 1, 4>}, {pipeline_mode = #tpu.pipeline_mode<synchronous>, transform_indices = @transform_7, window_bounds = array<i64: 2, 32, 4>}, {pipeline_mode = #tpu.pipeline_mode<synchronous>, transform_indices = @transform_8, window_bounds = array<i64: 2, 32, 1>}, {pipeline_mode = #tpu.pipeline_mode<synchronous>, transform_indices = @transform_9, window_bounds = array<i64: 3, 32, 96>}, {pipeline_mode = #tpu.pipeline_mode<synchronous>, transform_indices = @transform_10, window_bounds = array<i64: 32, 1>}, {transform_indices = @transform_11, window_bounds = array<i64: 1, 32, 256>}]} {
    %0 = tpu.iota {dimensions = array<i32: 1>} : vector<1x256xi32>
    %c16_i32 = arith.constant 16 : i32
    %c0_i32 = arith.constant 0 : i32
    %1 = arith.cmpi eq, %c16_i32, %c0_i32 : i32
    %c1_i32 = arith.constant 1 : i32
    %2 = arith.select %1, %c1_i32, %c16_i32 : i32
    %3 = vector.broadcast %2 : i32 to vector<1x256xi32>
    %4 = arith.remsi %0, %3 : vector<1x256xi32>
    %c0_i32_0 = arith.constant 0 : i32
    %5 = vector.broadcast %c0_i32_0 : i32 to vector<1x256xi32>
    %6 = arith.cmpi ne, %4, %5 : vector<1x256xi32>
    %c0_i32_1 = arith.constant 0 : i32
    %7 = vector.broadcast %c0_i32_1 : i32 to vector<1x256xi32>
    %8 = arith.cmpi slt, %4, %7 : vector<1x256xi32>
    %c0_i32_2 = arith.constant 0 : i32
    %9 = arith.cmpi slt, %2, %c0_i32_2 : i32
    %10 = vector.broadcast %9 : i1 to vector<1x256xi1>
    %11 = vector.broadcast %10 : vector<1x256xi1> to vector<1x256xi1>
    %12 = arith.xori %8, %11 : vector<1x256xi1>
    %13 = arith.andi %12, %6 : vector<1x256xi1>
    %14 = vector.broadcast %2 : i32 to vector<1x256xi32>
    %15 = arith.addi %4, %14 : vector<1x256xi32>
    %16 = arith.select %13, %15, %4 : vector<1x256xi1>, vector<1x256xi32>
    %c0 = arith.constant 0 : index
    %c0_3 = arith.constant 0 : index
    %c0_4 = arith.constant 0 : index
    %17 = vector.load %arg1[%c0, %c0_3, %c0_4] : memref<1x32x256xf32, #tpu.memory_space<vmem>>, vector<1x32x256xf32>
    %18 = vector.shape_cast %17 : vector<1x32x256xf32> to vector<32x256xf32>
    %19 = arith.truncf %18 : vector<32x256xf32> to vector<32x256xbf16>
    %c0_5 = arith.constant 0 : index
    %c0_6 = arith.constant 0 : index
    %c0_7 = arith.constant 0 : index
    %c0_8 = arith.constant 0 : index
    %20 = vector.load %arg2[%c0_5, %c0_6, %c0_7, %c0_8] : memref<2x3x32x96xbf16, #tpu.memory_space<vmem>>, vector<1x3x32x96xbf16>
    %21 = vector.shape_cast %20 : vector<1x3x32x96xbf16> to vector<3x32x96xbf16>
    %cst = arith.constant 0.000000e+00 : bf16
    %22 = vector.broadcast %cst : bf16 to vector<32x128xbf16>
    %23 = tpu.concatenate %22, %19, %22 in 1 : vector<32x128xbf16>, vector<32x256xbf16>, vector<32x128xbf16> -> vector<32x512xbf16>
    %24 = vector.extract_strided_slice %23 {offsets = [0, 111], sizes = [32, 256], strides = [1, 1]} : vector<32x512xbf16> to vector<32x256xbf16>
    %25 = vector.extract_strided_slice %23 {offsets = [0, 127], sizes = [32, 256], strides = [1, 1]} : vector<32x512xbf16> to vector<32x256xbf16>
    %26 = vector.extract_strided_slice %23 {offsets = [0, 143], sizes = [32, 256], strides = [1, 1]} : vector<32x512xbf16> to vector<32x256xbf16>
    %27 = tpu.concatenate %24, %25, %26 in 0 : vector<32x256xbf16>, vector<32x256xbf16>, vector<32x256xbf16> -> vector<96x256xbf16>
    %c0_i32_9 = arith.constant 0 : i32
    %28 = vector.broadcast %c0_i32_9 : i32 to vector<1x256xi32>
    %29 = arith.cmpi sgt, %16, %28 : vector<1x256xi32>
    %cst_10 = arith.constant 0.000000e+00 : bf16
    %30 = vector.broadcast %cst_10 : bf16 to vector<96x256xbf16>
    %31 = vector.shape_cast %29 : vector<1x256xi1> to vector<1x256xi1>
    %32 = vector.broadcast %31 : vector<1x256xi1> to vector<96x256xi1>
    %33 = arith.select %32, %27, %30 : vector<96x256xi1>, vector<96x256xbf16>
    %34 = vector.extract_strided_slice %21 {offsets = [0, 0, 0], sizes = [1, 32, 96], strides = [1, 1, 1]} : vector<3x32x96xbf16> to vector<1x32x96xbf16>
    %35 = vector.shape_cast %34 : vector<1x32x96xbf16> to vector<32x96xbf16>
    %cst_11 = arith.constant dense<0.000000e+00> : vector<32x256xf32>
    %36 = tpu.matmul %35, %33, %cst_11 {dimension_numbers = #tpu.dot_dimension_numbers<[1], [0], [0], [1], [0, 0, 1, 1], [], []>} : vector<32x96xbf16>, vector<96x256xbf16>, vector<32x256xf32> -> vector<32x256xf32>
    %37 = vector.extract_strided_slice %23 {offsets = [0, 112], sizes = [32, 256], strides = [1, 1]} : vector<32x512xbf16> to vector<32x256xbf16>
    %38 = vector.extract_strided_slice %23 {offsets = [0, 128], sizes = [32, 256], strides = [1, 1]} : vector<32x512xbf16> to vector<32x256xbf16>
    %39 = vector.extract_strided_slice %23 {offsets = [0, 144], sizes = [32, 256], strides = [1, 1]} : vector<32x512xbf16> to vector<32x256xbf16>
    %40 = tpu.concatenate %37, %38, %39 in 0 : vector<32x256xbf16>, vector<32x256xbf16>, vector<32x256xbf16> -> vector<96x256xbf16>
    %41 = vector.extract_strided_slice %21 {offsets = [1, 0, 0], sizes = [1, 32, 96], strides = [1, 1, 1]} : vector<3x32x96xbf16> to vector<1x32x96xbf16>
    %42 = vector.shape_cast %41 : vector<1x32x96xbf16> to vector<32x96xbf16>
    %cst_12 = arith.constant dense<0.000000e+00> : vector<32x256xf32>
    %43 = tpu.matmul %42, %40, %cst_12 {dimension_numbers = #tpu.dot_dimension_numbers<[1], [0], [0], [1], [0, 0, 1, 1], [], []>} : vector<32x96xbf16>, vector<96x256xbf16>, vector<32x256xf32> -> vector<32x256xf32>
    %44 = arith.addf %36, %43 : vector<32x256xf32>
    %45 = vector.extract_strided_slice %23 {offsets = [0, 113], sizes = [32, 256], strides = [1, 1]} : vector<32x512xbf16> to vector<32x256xbf16>
    %46 = vector.extract_strided_slice %23 {offsets = [0, 129], sizes = [32, 256], strides = [1, 1]} : vector<32x512xbf16> to vector<32x256xbf16>
    %47 = vector.extract_strided_slice %23 {offsets = [0, 145], sizes = [32, 256], strides = [1, 1]} : vector<32x512xbf16> to vector<32x256xbf16>
    %48 = tpu.concatenate %45, %46, %47 in 0 : vector<32x256xbf16>, vector<32x256xbf16>, vector<32x256xbf16> -> vector<96x256xbf16>
    %c15_i32 = arith.constant 15 : i32
    %49 = vector.broadcast %c15_i32 : i32 to vector<1x256xi32>
    %50 = arith.cmpi slt, %16, %49 : vector<1x256xi32>
    %cst_13 = arith.constant 0.000000e+00 : bf16
    %51 = vector.broadcast %cst_13 : bf16 to vector<96x256xbf16>
    %52 = vector.shape_cast %50 : vector<1x256xi1> to vector<1x256xi1>
    %53 = vector.broadcast %52 : vector<1x256xi1> to vector<96x256xi1>
    %54 = arith.select %53, %48, %51 : vector<96x256xi1>, vector<96x256xbf16>
    %55 = vector.extract_strided_slice %21 {offsets = [2, 0, 0], sizes = [1, 32, 96], strides = [1, 1, 1]} : vector<3x32x96xbf16> to vector<1x32x96xbf16>
    %56 = vector.shape_cast %55 : vector<1x32x96xbf16> to vector<32x96xbf16>
    %cst_14 = arith.constant dense<0.000000e+00> : vector<32x256xf32>
    %57 = tpu.matmul %56, %54, %cst_14 {dimension_numbers = #tpu.dot_dimension_numbers<[1], [0], [0], [1], [0, 0, 1, 1], [], []>} : vector<32x96xbf16>, vector<96x256xbf16>, vector<32x256xf32> -> vector<32x256xf32>
    %58 = arith.addf %44, %57 : vector<32x256xf32>
    %c0_15 = arith.constant 0 : index
    %c0_16 = arith.constant 0 : index
    %c0_17 = arith.constant 0 : index
    %59 = vector.load %arg3[%c0_15, %c0_16, %c0_17] : memref<2x32x1xf32, #tpu.memory_space<vmem>>, vector<1x32x1xf32>
    %60 = vector.shape_cast %59 : vector<1x32x1xf32> to vector<32x1xf32>
    %61 = vector.broadcast %60 : vector<32x1xf32> to vector<32x256xf32>
    %62 = arith.addf %58, %61 : vector<32x256xf32>
    %cst_18 = arith.constant 0.000000e+00 : f32
    %63 = vector.broadcast %cst_18 : f32 to vector<32x256xf32>
    %64 = arith.maximumf %62, %63 : vector<32x256xf32>
    %65 = arith.truncf %64 : vector<32x256xf32> to vector<32x256xbf16>
    %c0_19 = arith.constant 0 : index
    %c0_20 = arith.constant 0 : index
    %c0_21 = arith.constant 0 : index
    %c0_22 = arith.constant 0 : index
    %66 = vector.load %arg4[%c0_19, %c0_20, %c0_21, %c0_22] : memref<2x3x32x96xbf16, #tpu.memory_space<vmem>>, vector<1x3x32x96xbf16>
    %67 = vector.shape_cast %66 : vector<1x3x32x96xbf16> to vector<3x32x96xbf16>
    %cst_23 = arith.constant 0.000000e+00 : bf16
    %68 = vector.broadcast %cst_23 : bf16 to vector<32x128xbf16>
    %69 = tpu.concatenate %68, %65, %68 in 1 : vector<32x128xbf16>, vector<32x256xbf16>, vector<32x128xbf16> -> vector<32x512xbf16>
    %70 = vector.extract_strided_slice %69 {offsets = [0, 111], sizes = [32, 256], strides = [1, 1]} : vector<32x512xbf16> to vector<32x256xbf16>
    %71 = vector.extract_strided_slice %69 {offsets = [0, 127], sizes = [32, 256], strides = [1, 1]} : vector<32x512xbf16> to vector<32x256xbf16>
    %72 = vector.extract_strided_slice %69 {offsets = [0, 143], sizes = [32, 256], strides = [1, 1]} : vector<32x512xbf16> to vector<32x256xbf16>
    %73 = tpu.concatenate %70, %71, %72 in 0 : vector<32x256xbf16>, vector<32x256xbf16>, vector<32x256xbf16> -> vector<96x256xbf16>
    %c0_i32_24 = arith.constant 0 : i32
    %74 = vector.broadcast %c0_i32_24 : i32 to vector<1x256xi32>
    %75 = arith.cmpi sgt, %16, %74 : vector<1x256xi32>
    %cst_25 = arith.constant 0.000000e+00 : bf16
    %76 = vector.broadcast %cst_25 : bf16 to vector<96x256xbf16>
    %77 = vector.shape_cast %75 : vector<1x256xi1> to vector<1x256xi1>
    %78 = vector.broadcast %77 : vector<1x256xi1> to vector<96x256xi1>
    %79 = arith.select %78, %73, %76 : vector<96x256xi1>, vector<96x256xbf16>
    %80 = vector.extract_strided_slice %67 {offsets = [0, 0, 0], sizes = [1, 32, 96], strides = [1, 1, 1]} : vector<3x32x96xbf16> to vector<1x32x96xbf16>
    %81 = vector.shape_cast %80 : vector<1x32x96xbf16> to vector<32x96xbf16>
    %cst_26 = arith.constant dense<0.000000e+00> : vector<32x256xf32>
    %82 = tpu.matmul %81, %79, %cst_26 {dimension_numbers = #tpu.dot_dimension_numbers<[1], [0], [0], [1], [0, 0, 1, 1], [], []>} : vector<32x96xbf16>, vector<96x256xbf16>, vector<32x256xf32> -> vector<32x256xf32>
    %83 = vector.extract_strided_slice %69 {offsets = [0, 112], sizes = [32, 256], strides = [1, 1]} : vector<32x512xbf16> to vector<32x256xbf16>
    %84 = vector.extract_strided_slice %69 {offsets = [0, 128], sizes = [32, 256], strides = [1, 1]} : vector<32x512xbf16> to vector<32x256xbf16>
    %85 = vector.extract_strided_slice %69 {offsets = [0, 144], sizes = [32, 256], strides = [1, 1]} : vector<32x512xbf16> to vector<32x256xbf16>
    %86 = tpu.concatenate %83, %84, %85 in 0 : vector<32x256xbf16>, vector<32x256xbf16>, vector<32x256xbf16> -> vector<96x256xbf16>
    %87 = vector.extract_strided_slice %67 {offsets = [1, 0, 0], sizes = [1, 32, 96], strides = [1, 1, 1]} : vector<3x32x96xbf16> to vector<1x32x96xbf16>
    %88 = vector.shape_cast %87 : vector<1x32x96xbf16> to vector<32x96xbf16>
    %cst_27 = arith.constant dense<0.000000e+00> : vector<32x256xf32>
    %89 = tpu.matmul %88, %86, %cst_27 {dimension_numbers = #tpu.dot_dimension_numbers<[1], [0], [0], [1], [0, 0, 1, 1], [], []>} : vector<32x96xbf16>, vector<96x256xbf16>, vector<32x256xf32> -> vector<32x256xf32>
    %90 = arith.addf %82, %89 : vector<32x256xf32>
    %91 = vector.extract_strided_slice %69 {offsets = [0, 113], sizes = [32, 256], strides = [1, 1]} : vector<32x512xbf16> to vector<32x256xbf16>
    %92 = vector.extract_strided_slice %69 {offsets = [0, 129], sizes = [32, 256], strides = [1, 1]} : vector<32x512xbf16> to vector<32x256xbf16>
    %93 = vector.extract_strided_slice %69 {offsets = [0, 145], sizes = [32, 256], strides = [1, 1]} : vector<32x512xbf16> to vector<32x256xbf16>
    %94 = tpu.concatenate %91, %92, %93 in 0 : vector<32x256xbf16>, vector<32x256xbf16>, vector<32x256xbf16> -> vector<96x256xbf16>
    %c15_i32_28 = arith.constant 15 : i32
    %95 = vector.broadcast %c15_i32_28 : i32 to vector<1x256xi32>
    %96 = arith.cmpi slt, %16, %95 : vector<1x256xi32>
    %cst_29 = arith.constant 0.000000e+00 : bf16
    %97 = vector.broadcast %cst_29 : bf16 to vector<96x256xbf16>
    %98 = vector.shape_cast %96 : vector<1x256xi1> to vector<1x256xi1>
    %99 = vector.broadcast %98 : vector<1x256xi1> to vector<96x256xi1>
    %100 = arith.select %99, %94, %97 : vector<96x256xi1>, vector<96x256xbf16>
    %101 = vector.extract_strided_slice %67 {offsets = [2, 0, 0], sizes = [1, 32, 96], strides = [1, 1, 1]} : vector<3x32x96xbf16> to vector<1x32x96xbf16>
    %102 = vector.shape_cast %101 : vector<1x32x96xbf16> to vector<32x96xbf16>
    %cst_30 = arith.constant dense<0.000000e+00> : vector<32x256xf32>
    %103 = tpu.matmul %102, %100, %cst_30 {dimension_numbers = #tpu.dot_dimension_numbers<[1], [0], [0], [1], [0, 0, 1, 1], [], []>} : vector<32x96xbf16>, vector<96x256xbf16>, vector<32x256xf32> -> vector<32x256xf32>
    %104 = arith.addf %90, %103 : vector<32x256xf32>
    %c0_31 = arith.constant 0 : index
    %c0_32 = arith.constant 0 : index
    %c0_33 = arith.constant 0 : index
    %105 = vector.load %arg5[%c0_31, %c0_32, %c0_33] : memref<2x32x1xf32, #tpu.memory_space<vmem>>, vector<1x32x1xf32>
    %106 = vector.shape_cast %105 : vector<1x32x1xf32> to vector<32x1xf32>
    %107 = vector.broadcast %106 : vector<32x1xf32> to vector<32x256xf32>
    %108 = arith.addf %104, %107 : vector<32x256xf32>
    %cst_34 = arith.constant dense<0.000000e+00> : vector<32xf32>
    %109 = vector.multi_reduction <add>, %108, %cst_34 [1] : vector<32x256xf32> to vector<32xf32>
    %110 = vector.shape_cast %109 : vector<32xf32> to vector<32x1xf32>
    %cst_35 = arith.constant 2.560000e+02 : f32
    %111 = vector.broadcast %cst_35 : f32 to vector<32x1xf32>
    %112 = arith.divf %110, %111 : vector<32x1xf32>
    %c0_36 = arith.constant 0 : index
    %c0_37 = arith.constant 0 : index
    %c0_38 = arith.constant 0 : index
    %113 = vector.load %arg6[%c0_36, %c0_37, %c0_38] : memref<2x32x4xf32, #tpu.memory_space<vmem>>, vector<1x32x4xf32>
    %114 = vector.shape_cast %113 : vector<1x32x4xf32> to vector<32x4xf32>
    %115 = vector.broadcast %112 : vector<32x1xf32> to vector<32x4xf32>
    %116 = arith.mulf %114, %115 : vector<32x4xf32>
    %cst_39 = arith.constant dense<0.000000e+00> : vector<4xf32>
    %117 = vector.multi_reduction <add>, %116, %cst_39 [0] : vector<32x4xf32> to vector<4xf32>
    %118 = vector.shape_cast %117 : vector<4xf32> to vector<1x4xf32>
    %c0_40 = arith.constant 0 : index
    %c0_41 = arith.constant 0 : index
    %c0_42 = arith.constant 0 : index
    %119 = vector.load %arg7[%c0_40, %c0_41, %c0_42] : memref<2x1x4xf32, #tpu.memory_space<vmem>>, vector<1x1x4xf32>
    %120 = vector.shape_cast %119 : vector<1x1x4xf32> to vector<1x4xf32>
    %121 = arith.addf %118, %120 : vector<1x4xf32>
    %cst_43 = arith.constant 0.000000e+00 : f32
    %122 = vector.broadcast %cst_43 : f32 to vector<1x4xf32>
    %123 = arith.maximumf %121, %122 : vector<1x4xf32>
    %c0_44 = arith.constant 0 : index
    %c0_45 = arith.constant 0 : index
    %c0_46 = arith.constant 0 : index
    %124 = vector.load %arg8[%c0_44, %c0_45, %c0_46] : memref<2x32x4xf32, #tpu.memory_space<vmem>>, vector<1x32x4xf32>
    %125 = vector.shape_cast %124 : vector<1x32x4xf32> to vector<32x4xf32>
    %126 = vector.broadcast %123 : vector<1x4xf32> to vector<32x4xf32>
    %127 = arith.mulf %125, %126 : vector<32x4xf32>
    %cst_47 = arith.constant dense<0.000000e+00> : vector<32xf32>
    %128 = vector.multi_reduction <add>, %127, %cst_47 [1] : vector<32x4xf32> to vector<32xf32>
    %129 = vector.shape_cast %128 : vector<32xf32> to vector<32x1xf32>
    %c0_48 = arith.constant 0 : index
    %c0_49 = arith.constant 0 : index
    %c0_50 = arith.constant 0 : index
    %130 = vector.load %arg9[%c0_48, %c0_49, %c0_50] : memref<2x32x1xf32, #tpu.memory_space<vmem>>, vector<1x32x1xf32>
    %131 = vector.shape_cast %130 : vector<1x32x1xf32> to vector<32x1xf32>
    %132 = arith.addf %129, %131 : vector<32x1xf32>
    %133 = arith.negf %132 : vector<32x1xf32>
    %134 = math.exp %133 : vector<32x1xf32>
    %cst_51 = arith.constant 1.000000e+00 : f32
    %135 = vector.broadcast %cst_51 : f32 to vector<32x1xf32>
    %136 = arith.addf %135, %134 : vector<32x1xf32>
    %137 = arith.divf %135, %136 : vector<32x1xf32>
    %138 = vector.broadcast %137 : vector<32x1xf32> to vector<32x256xf32>
    %139 = arith.mulf %108, %138 : vector<32x256xf32>
    %140 = arith.addf %139, %18 : vector<32x256xf32>
    %141 = arith.truncf %140 : vector<32x256xf32> to vector<32x256xbf16>
    %c1 = arith.constant 1 : index
    %c0_52 = arith.constant 0 : index
    %c0_53 = arith.constant 0 : index
    %c0_54 = arith.constant 0 : index
    %142 = vector.load %arg2[%c1, %c0_52, %c0_53, %c0_54] : memref<2x3x32x96xbf16, #tpu.memory_space<vmem>>, vector<1x3x32x96xbf16>
    %143 = vector.shape_cast %142 : vector<1x3x32x96xbf16> to vector<3x32x96xbf16>
    %cst_55 = arith.constant 0.000000e+00 : bf16
    %144 = vector.broadcast %cst_55 : bf16 to vector<32x128xbf16>
    %145 = tpu.concatenate %144, %141, %144 in 1 : vector<32x128xbf16>, vector<32x256xbf16>, vector<32x128xbf16> -> vector<32x512xbf16>
    %146 = vector.extract_strided_slice %145 {offsets = [0, 111], sizes = [32, 256], strides = [1, 1]} : vector<32x512xbf16> to vector<32x256xbf16>
    %147 = vector.extract_strided_slice %145 {offsets = [0, 127], sizes = [32, 256], strides = [1, 1]} : vector<32x512xbf16> to vector<32x256xbf16>
    %148 = vector.extract_strided_slice %145 {offsets = [0, 143], sizes = [32, 256], strides = [1, 1]} : vector<32x512xbf16> to vector<32x256xbf16>
    %149 = tpu.concatenate %146, %147, %148 in 0 : vector<32x256xbf16>, vector<32x256xbf16>, vector<32x256xbf16> -> vector<96x256xbf16>
    %c0_i32_56 = arith.constant 0 : i32
    %150 = vector.broadcast %c0_i32_56 : i32 to vector<1x256xi32>
    %151 = arith.cmpi sgt, %16, %150 : vector<1x256xi32>
    %cst_57 = arith.constant 0.000000e+00 : bf16
    %152 = vector.broadcast %cst_57 : bf16 to vector<96x256xbf16>
    %153 = vector.shape_cast %151 : vector<1x256xi1> to vector<1x256xi1>
    %154 = vector.broadcast %153 : vector<1x256xi1> to vector<96x256xi1>
    %155 = arith.select %154, %149, %152 : vector<96x256xi1>, vector<96x256xbf16>
    %156 = vector.extract_strided_slice %143 {offsets = [0, 0, 0], sizes = [1, 32, 96], strides = [1, 1, 1]} : vector<3x32x96xbf16> to vector<1x32x96xbf16>
    %157 = vector.shape_cast %156 : vector<1x32x96xbf16> to vector<32x96xbf16>
    %cst_58 = arith.constant dense<0.000000e+00> : vector<32x256xf32>
    %158 = tpu.matmul %157, %155, %cst_58 {dimension_numbers = #tpu.dot_dimension_numbers<[1], [0], [0], [1], [0, 0, 1, 1], [], []>} : vector<32x96xbf16>, vector<96x256xbf16>, vector<32x256xf32> -> vector<32x256xf32>
    %159 = vector.extract_strided_slice %145 {offsets = [0, 112], sizes = [32, 256], strides = [1, 1]} : vector<32x512xbf16> to vector<32x256xbf16>
    %160 = vector.extract_strided_slice %145 {offsets = [0, 128], sizes = [32, 256], strides = [1, 1]} : vector<32x512xbf16> to vector<32x256xbf16>
    %161 = vector.extract_strided_slice %145 {offsets = [0, 144], sizes = [32, 256], strides = [1, 1]} : vector<32x512xbf16> to vector<32x256xbf16>
    %162 = tpu.concatenate %159, %160, %161 in 0 : vector<32x256xbf16>, vector<32x256xbf16>, vector<32x256xbf16> -> vector<96x256xbf16>
    %163 = vector.extract_strided_slice %143 {offsets = [1, 0, 0], sizes = [1, 32, 96], strides = [1, 1, 1]} : vector<3x32x96xbf16> to vector<1x32x96xbf16>
    %164 = vector.shape_cast %163 : vector<1x32x96xbf16> to vector<32x96xbf16>
    %cst_59 = arith.constant dense<0.000000e+00> : vector<32x256xf32>
    %165 = tpu.matmul %164, %162, %cst_59 {dimension_numbers = #tpu.dot_dimension_numbers<[1], [0], [0], [1], [0, 0, 1, 1], [], []>} : vector<32x96xbf16>, vector<96x256xbf16>, vector<32x256xf32> -> vector<32x256xf32>
    %166 = arith.addf %158, %165 : vector<32x256xf32>
    %167 = vector.extract_strided_slice %145 {offsets = [0, 113], sizes = [32, 256], strides = [1, 1]} : vector<32x512xbf16> to vector<32x256xbf16>
    %168 = vector.extract_strided_slice %145 {offsets = [0, 129], sizes = [32, 256], strides = [1, 1]} : vector<32x512xbf16> to vector<32x256xbf16>
    %169 = vector.extract_strided_slice %145 {offsets = [0, 145], sizes = [32, 256], strides = [1, 1]} : vector<32x512xbf16> to vector<32x256xbf16>
    %170 = tpu.concatenate %167, %168, %169 in 0 : vector<32x256xbf16>, vector<32x256xbf16>, vector<32x256xbf16> -> vector<96x256xbf16>
    %c15_i32_60 = arith.constant 15 : i32
    %171 = vector.broadcast %c15_i32_60 : i32 to vector<1x256xi32>
    %172 = arith.cmpi slt, %16, %171 : vector<1x256xi32>
    %cst_61 = arith.constant 0.000000e+00 : bf16
    %173 = vector.broadcast %cst_61 : bf16 to vector<96x256xbf16>
    %174 = vector.shape_cast %172 : vector<1x256xi1> to vector<1x256xi1>
    %175 = vector.broadcast %174 : vector<1x256xi1> to vector<96x256xi1>
    %176 = arith.select %175, %170, %173 : vector<96x256xi1>, vector<96x256xbf16>
    %177 = vector.extract_strided_slice %143 {offsets = [2, 0, 0], sizes = [1, 32, 96], strides = [1, 1, 1]} : vector<3x32x96xbf16> to vector<1x32x96xbf16>
    %178 = vector.shape_cast %177 : vector<1x32x96xbf16> to vector<32x96xbf16>
    %cst_62 = arith.constant dense<0.000000e+00> : vector<32x256xf32>
    %179 = tpu.matmul %178, %176, %cst_62 {dimension_numbers = #tpu.dot_dimension_numbers<[1], [0], [0], [1], [0, 0, 1, 1], [], []>} : vector<32x96xbf16>, vector<96x256xbf16>, vector<32x256xf32> -> vector<32x256xf32>
    %180 = arith.addf %166, %179 : vector<32x256xf32>
    %c1_63 = arith.constant 1 : index
    %c0_64 = arith.constant 0 : index
    %c0_65 = arith.constant 0 : index
    %181 = vector.load %arg3[%c1_63, %c0_64, %c0_65] : memref<2x32x1xf32, #tpu.memory_space<vmem>>, vector<1x32x1xf32>
    %182 = vector.shape_cast %181 : vector<1x32x1xf32> to vector<32x1xf32>
    %183 = vector.broadcast %182 : vector<32x1xf32> to vector<32x256xf32>
    %184 = arith.addf %180, %183 : vector<32x256xf32>
    %cst_66 = arith.constant 0.000000e+00 : f32
    %185 = vector.broadcast %cst_66 : f32 to vector<32x256xf32>
    %186 = arith.maximumf %184, %185 : vector<32x256xf32>
    %187 = arith.truncf %186 : vector<32x256xf32> to vector<32x256xbf16>
    %c1_67 = arith.constant 1 : index
    %c0_68 = arith.constant 0 : index
    %c0_69 = arith.constant 0 : index
    %c0_70 = arith.constant 0 : index
    %188 = vector.load %arg4[%c1_67, %c0_68, %c0_69, %c0_70] : memref<2x3x32x96xbf16, #tpu.memory_space<vmem>>, vector<1x3x32x96xbf16>
    %189 = vector.shape_cast %188 : vector<1x3x32x96xbf16> to vector<3x32x96xbf16>
    %cst_71 = arith.constant 0.000000e+00 : bf16
    %190 = vector.broadcast %cst_71 : bf16 to vector<32x128xbf16>
    %191 = tpu.concatenate %190, %187, %190 in 1 : vector<32x128xbf16>, vector<32x256xbf16>, vector<32x128xbf16> -> vector<32x512xbf16>
    %192 = vector.extract_strided_slice %191 {offsets = [0, 111], sizes = [32, 256], strides = [1, 1]} : vector<32x512xbf16> to vector<32x256xbf16>
    %193 = vector.extract_strided_slice %191 {offsets = [0, 127], sizes = [32, 256], strides = [1, 1]} : vector<32x512xbf16> to vector<32x256xbf16>
    %194 = vector.extract_strided_slice %191 {offsets = [0, 143], sizes = [32, 256], strides = [1, 1]} : vector<32x512xbf16> to vector<32x256xbf16>
    %195 = tpu.concatenate %192, %193, %194 in 0 : vector<32x256xbf16>, vector<32x256xbf16>, vector<32x256xbf16> -> vector<96x256xbf16>
    %c0_i32_72 = arith.constant 0 : i32
    %196 = vector.broadcast %c0_i32_72 : i32 to vector<1x256xi32>
    %197 = arith.cmpi sgt, %16, %196 : vector<1x256xi32>
    %cst_73 = arith.constant 0.000000e+00 : bf16
    %198 = vector.broadcast %cst_73 : bf16 to vector<96x256xbf16>
    %199 = vector.shape_cast %197 : vector<1x256xi1> to vector<1x256xi1>
    %200 = vector.broadcast %199 : vector<1x256xi1> to vector<96x256xi1>
    %201 = arith.select %200, %195, %198 : vector<96x256xi1>, vector<96x256xbf16>
    %202 = vector.extract_strided_slice %189 {offsets = [0, 0, 0], sizes = [1, 32, 96], strides = [1, 1, 1]} : vector<3x32x96xbf16> to vector<1x32x96xbf16>
    %203 = vector.shape_cast %202 : vector<1x32x96xbf16> to vector<32x96xbf16>
    %cst_74 = arith.constant dense<0.000000e+00> : vector<32x256xf32>
    %204 = tpu.matmul %203, %201, %cst_74 {dimension_numbers = #tpu.dot_dimension_numbers<[1], [0], [0], [1], [0, 0, 1, 1], [], []>} : vector<32x96xbf16>, vector<96x256xbf16>, vector<32x256xf32> -> vector<32x256xf32>
    %205 = vector.extract_strided_slice %191 {offsets = [0, 112], sizes = [32, 256], strides = [1, 1]} : vector<32x512xbf16> to vector<32x256xbf16>
    %206 = vector.extract_strided_slice %191 {offsets = [0, 128], sizes = [32, 256], strides = [1, 1]} : vector<32x512xbf16> to vector<32x256xbf16>
    %207 = vector.extract_strided_slice %191 {offsets = [0, 144], sizes = [32, 256], strides = [1, 1]} : vector<32x512xbf16> to vector<32x256xbf16>
    %208 = tpu.concatenate %205, %206, %207 in 0 : vector<32x256xbf16>, vector<32x256xbf16>, vector<32x256xbf16> -> vector<96x256xbf16>
    %209 = vector.extract_strided_slice %189 {offsets = [1, 0, 0], sizes = [1, 32, 96], strides = [1, 1, 1]} : vector<3x32x96xbf16> to vector<1x32x96xbf16>
    %210 = vector.shape_cast %209 : vector<1x32x96xbf16> to vector<32x96xbf16>
    %cst_75 = arith.constant dense<0.000000e+00> : vector<32x256xf32>
    %211 = tpu.matmul %210, %208, %cst_75 {dimension_numbers = #tpu.dot_dimension_numbers<[1], [0], [0], [1], [0, 0, 1, 1], [], []>} : vector<32x96xbf16>, vector<96x256xbf16>, vector<32x256xf32> -> vector<32x256xf32>
    %212 = arith.addf %204, %211 : vector<32x256xf32>
    %213 = vector.extract_strided_slice %191 {offsets = [0, 113], sizes = [32, 256], strides = [1, 1]} : vector<32x512xbf16> to vector<32x256xbf16>
    %214 = vector.extract_strided_slice %191 {offsets = [0, 129], sizes = [32, 256], strides = [1, 1]} : vector<32x512xbf16> to vector<32x256xbf16>
    %215 = vector.extract_strided_slice %191 {offsets = [0, 145], sizes = [32, 256], strides = [1, 1]} : vector<32x512xbf16> to vector<32x256xbf16>
    %216 = tpu.concatenate %213, %214, %215 in 0 : vector<32x256xbf16>, vector<32x256xbf16>, vector<32x256xbf16> -> vector<96x256xbf16>
    %c15_i32_76 = arith.constant 15 : i32
    %217 = vector.broadcast %c15_i32_76 : i32 to vector<1x256xi32>
    %218 = arith.cmpi slt, %16, %217 : vector<1x256xi32>
    %cst_77 = arith.constant 0.000000e+00 : bf16
    %219 = vector.broadcast %cst_77 : bf16 to vector<96x256xbf16>
    %220 = vector.shape_cast %218 : vector<1x256xi1> to vector<1x256xi1>
    %221 = vector.broadcast %220 : vector<1x256xi1> to vector<96x256xi1>
    %222 = arith.select %221, %216, %219 : vector<96x256xi1>, vector<96x256xbf16>
    %223 = vector.extract_strided_slice %189 {offsets = [2, 0, 0], sizes = [1, 32, 96], strides = [1, 1, 1]} : vector<3x32x96xbf16> to vector<1x32x96xbf16>
    %224 = vector.shape_cast %223 : vector<1x32x96xbf16> to vector<32x96xbf16>
    %cst_78 = arith.constant dense<0.000000e+00> : vector<32x256xf32>
    %225 = tpu.matmul %224, %222, %cst_78 {dimension_numbers = #tpu.dot_dimension_numbers<[1], [0], [0], [1], [0, 0, 1, 1], [], []>} : vector<32x96xbf16>, vector<96x256xbf16>, vector<32x256xf32> -> vector<32x256xf32>
    %226 = arith.addf %212, %225 : vector<32x256xf32>
    %c1_79 = arith.constant 1 : index
    %c0_80 = arith.constant 0 : index
    %c0_81 = arith.constant 0 : index
    %227 = vector.load %arg5[%c1_79, %c0_80, %c0_81] : memref<2x32x1xf32, #tpu.memory_space<vmem>>, vector<1x32x1xf32>
    %228 = vector.shape_cast %227 : vector<1x32x1xf32> to vector<32x1xf32>
    %229 = vector.broadcast %228 : vector<32x1xf32> to vector<32x256xf32>
    %230 = arith.addf %226, %229 : vector<32x256xf32>
    %cst_82 = arith.constant dense<0.000000e+00> : vector<32xf32>
    %231 = vector.multi_reduction <add>, %230, %cst_82 [1] : vector<32x256xf32> to vector<32xf32>
    %232 = vector.shape_cast %231 : vector<32xf32> to vector<32x1xf32>
    %cst_83 = arith.constant 2.560000e+02 : f32
    %233 = vector.broadcast %cst_83 : f32 to vector<32x1xf32>
    %234 = arith.divf %232, %233 : vector<32x1xf32>
    %c1_84 = arith.constant 1 : index
    %c0_85 = arith.constant 0 : index
    %c0_86 = arith.constant 0 : index
    %235 = vector.load %arg6[%c1_84, %c0_85, %c0_86] : memref<2x32x4xf32, #tpu.memory_space<vmem>>, vector<1x32x4xf32>
    %236 = vector.shape_cast %235 : vector<1x32x4xf32> to vector<32x4xf32>
    %237 = vector.broadcast %234 : vector<32x1xf32> to vector<32x4xf32>
    %238 = arith.mulf %236, %237 : vector<32x4xf32>
    %cst_87 = arith.constant dense<0.000000e+00> : vector<4xf32>
    %239 = vector.multi_reduction <add>, %238, %cst_87 [0] : vector<32x4xf32> to vector<4xf32>
    %240 = vector.shape_cast %239 : vector<4xf32> to vector<1x4xf32>
    %c1_88 = arith.constant 1 : index
    %c0_89 = arith.constant 0 : index
    %c0_90 = arith.constant 0 : index
    %241 = vector.load %arg7[%c1_88, %c0_89, %c0_90] : memref<2x1x4xf32, #tpu.memory_space<vmem>>, vector<1x1x4xf32>
    %242 = vector.shape_cast %241 : vector<1x1x4xf32> to vector<1x4xf32>
    %243 = arith.addf %240, %242 : vector<1x4xf32>
    %cst_91 = arith.constant 0.000000e+00 : f32
    %244 = vector.broadcast %cst_91 : f32 to vector<1x4xf32>
    %245 = arith.maximumf %243, %244 : vector<1x4xf32>
    %c1_92 = arith.constant 1 : index
    %c0_93 = arith.constant 0 : index
    %c0_94 = arith.constant 0 : index
    %246 = vector.load %arg8[%c1_92, %c0_93, %c0_94] : memref<2x32x4xf32, #tpu.memory_space<vmem>>, vector<1x32x4xf32>
    %247 = vector.shape_cast %246 : vector<1x32x4xf32> to vector<32x4xf32>
    %248 = vector.broadcast %245 : vector<1x4xf32> to vector<32x4xf32>
    %249 = arith.mulf %247, %248 : vector<32x4xf32>
    %cst_95 = arith.constant dense<0.000000e+00> : vector<32xf32>
    %250 = vector.multi_reduction <add>, %249, %cst_95 [1] : vector<32x4xf32> to vector<32xf32>
    %251 = vector.shape_cast %250 : vector<32xf32> to vector<32x1xf32>
    %c1_96 = arith.constant 1 : index
    %c0_97 = arith.constant 0 : index
    %c0_98 = arith.constant 0 : index
    %252 = vector.load %arg9[%c1_96, %c0_97, %c0_98] : memref<2x32x1xf32, #tpu.memory_space<vmem>>, vector<1x32x1xf32>
    %253 = vector.shape_cast %252 : vector<1x32x1xf32> to vector<32x1xf32>
    %254 = arith.addf %251, %253 : vector<32x1xf32>
    %255 = arith.negf %254 : vector<32x1xf32>
    %256 = math.exp %255 : vector<32x1xf32>
    %cst_99 = arith.constant 1.000000e+00 : f32
    %257 = vector.broadcast %cst_99 : f32 to vector<32x1xf32>
    %258 = arith.addf %257, %256 : vector<32x1xf32>
    %259 = arith.divf %257, %258 : vector<32x1xf32>
    %260 = vector.broadcast %259 : vector<32x1xf32> to vector<32x256xf32>
    %261 = arith.mulf %230, %260 : vector<32x256xf32>
    %262 = arith.addf %261, %140 : vector<32x256xf32>
    %263 = arith.truncf %262 : vector<32x256xf32> to vector<32x256xbf16>
    %c0_100 = arith.constant 0 : index
    %c0_101 = arith.constant 0 : index
    %c0_102 = arith.constant 0 : index
    %264 = vector.load %arg10[%c0_100, %c0_101, %c0_102] : memref<3x32x96xbf16, #tpu.memory_space<vmem>>, vector<3x32x96xbf16>
    %cst_103 = arith.constant 0.000000e+00 : bf16
    %265 = vector.broadcast %cst_103 : bf16 to vector<32x128xbf16>
    %266 = tpu.concatenate %265, %263, %265 in 1 : vector<32x128xbf16>, vector<32x256xbf16>, vector<32x128xbf16> -> vector<32x512xbf16>
    %267 = vector.extract_strided_slice %266 {offsets = [0, 111], sizes = [32, 256], strides = [1, 1]} : vector<32x512xbf16> to vector<32x256xbf16>
    %268 = vector.extract_strided_slice %266 {offsets = [0, 127], sizes = [32, 256], strides = [1, 1]} : vector<32x512xbf16> to vector<32x256xbf16>
    %269 = vector.extract_strided_slice %266 {offsets = [0, 143], sizes = [32, 256], strides = [1, 1]} : vector<32x512xbf16> to vector<32x256xbf16>
    %270 = tpu.concatenate %267, %268, %269 in 0 : vector<32x256xbf16>, vector<32x256xbf16>, vector<32x256xbf16> -> vector<96x256xbf16>
    %c0_i32_104 = arith.constant 0 : i32
    %271 = vector.broadcast %c0_i32_104 : i32 to vector<1x256xi32>
    %272 = arith.cmpi sgt, %16, %271 : vector<1x256xi32>
    %cst_105 = arith.constant 0.000000e+00 : bf16
    %273 = vector.broadcast %cst_105 : bf16 to vector<96x256xbf16>
    %274 = vector.shape_cast %272 : vector<1x256xi1> to vector<1x256xi1>
    %275 = vector.broadcast %274 : vector<1x256xi1> to vector<96x256xi1>
    %276 = arith.select %275, %270, %273 : vector<96x256xi1>, vector<96x256xbf16>
    %277 = vector.extract_strided_slice %264 {offsets = [0, 0, 0], sizes = [1, 32, 96], strides = [1, 1, 1]} : vector<3x32x96xbf16> to vector<1x32x96xbf16>
    %278 = vector.shape_cast %277 : vector<1x32x96xbf16> to vector<32x96xbf16>
    %cst_106 = arith.constant dense<0.000000e+00> : vector<32x256xf32>
    %279 = tpu.matmul %278, %276, %cst_106 {dimension_numbers = #tpu.dot_dimension_numbers<[1], [0], [0], [1], [0, 0, 1, 1], [], []>} : vector<32x96xbf16>, vector<96x256xbf16>, vector<32x256xf32> -> vector<32x256xf32>
    %280 = vector.extract_strided_slice %266 {offsets = [0, 112], sizes = [32, 256], strides = [1, 1]} : vector<32x512xbf16> to vector<32x256xbf16>
    %281 = vector.extract_strided_slice %266 {offsets = [0, 128], sizes = [32, 256], strides = [1, 1]} : vector<32x512xbf16> to vector<32x256xbf16>
    %282 = vector.extract_strided_slice %266 {offsets = [0, 144], sizes = [32, 256], strides = [1, 1]} : vector<32x512xbf16> to vector<32x256xbf16>
    %283 = tpu.concatenate %280, %281, %282 in 0 : vector<32x256xbf16>, vector<32x256xbf16>, vector<32x256xbf16> -> vector<96x256xbf16>
    %284 = vector.extract_strided_slice %264 {offsets = [1, 0, 0], sizes = [1, 32, 96], strides = [1, 1, 1]} : vector<3x32x96xbf16> to vector<1x32x96xbf16>
    %285 = vector.shape_cast %284 : vector<1x32x96xbf16> to vector<32x96xbf16>
    %cst_107 = arith.constant dense<0.000000e+00> : vector<32x256xf32>
    %286 = tpu.matmul %285, %283, %cst_107 {dimension_numbers = #tpu.dot_dimension_numbers<[1], [0], [0], [1], [0, 0, 1, 1], [], []>} : vector<32x96xbf16>, vector<96x256xbf16>, vector<32x256xf32> -> vector<32x256xf32>
    %287 = arith.addf %279, %286 : vector<32x256xf32>
    %288 = vector.extract_strided_slice %266 {offsets = [0, 113], sizes = [32, 256], strides = [1, 1]} : vector<32x512xbf16> to vector<32x256xbf16>
    %289 = vector.extract_strided_slice %266 {offsets = [0, 129], sizes = [32, 256], strides = [1, 1]} : vector<32x512xbf16> to vector<32x256xbf16>
    %290 = vector.extract_strided_slice %266 {offsets = [0, 145], sizes = [32, 256], strides = [1, 1]} : vector<32x512xbf16> to vector<32x256xbf16>
    %291 = tpu.concatenate %288, %289, %290 in 0 : vector<32x256xbf16>, vector<32x256xbf16>, vector<32x256xbf16> -> vector<96x256xbf16>
    %c15_i32_108 = arith.constant 15 : i32
    %292 = vector.broadcast %c15_i32_108 : i32 to vector<1x256xi32>
    %293 = arith.cmpi slt, %16, %292 : vector<1x256xi32>
    %cst_109 = arith.constant 0.000000e+00 : bf16
    %294 = vector.broadcast %cst_109 : bf16 to vector<96x256xbf16>
    %295 = vector.shape_cast %293 : vector<1x256xi1> to vector<1x256xi1>
    %296 = vector.broadcast %295 : vector<1x256xi1> to vector<96x256xi1>
    %297 = arith.select %296, %291, %294 : vector<96x256xi1>, vector<96x256xbf16>
    %298 = vector.extract_strided_slice %264 {offsets = [2, 0, 0], sizes = [1, 32, 96], strides = [1, 1, 1]} : vector<3x32x96xbf16> to vector<1x32x96xbf16>
    %299 = vector.shape_cast %298 : vector<1x32x96xbf16> to vector<32x96xbf16>
    %cst_110 = arith.constant dense<0.000000e+00> : vector<32x256xf32>
    %300 = tpu.matmul %299, %297, %cst_110 {dimension_numbers = #tpu.dot_dimension_numbers<[1], [0], [0], [1], [0, 0, 1, 1], [], []>} : vector<32x96xbf16>, vector<96x256xbf16>, vector<32x256xf32> -> vector<32x256xf32>
    %301 = arith.addf %287, %300 : vector<32x256xf32>
    %c0_111 = arith.constant 0 : index
    %c0_112 = arith.constant 0 : index
    %302 = vector.load %arg11[%c0_111, %c0_112] : memref<32x1xf32, #tpu.memory_space<vmem>>, vector<32x1xf32>
    %303 = vector.broadcast %302 : vector<32x1xf32> to vector<32x256xf32>
    %304 = arith.addf %301, %303 : vector<32x256xf32>
    %c0_113 = arith.constant 0 : index
    %c0_114 = arith.constant 0 : index
    %c0_115 = arith.constant 0 : index
    %305 = vector.load %arg1[%c0_113, %c0_114, %c0_115] : memref<1x32x256xf32, #tpu.memory_space<vmem>>, vector<1x32x256xf32>
    %306 = vector.shape_cast %305 : vector<1x32x256xf32> to vector<32x256xf32>
    %307 = arith.addf %304, %306 : vector<32x256xf32>
    %c0_116 = arith.constant 0 : index
    %c0_117 = arith.constant 0 : index
    %c0_118 = arith.constant 0 : index
    %308 = vector.load %arg12[%c0_116, %c0_117, %c0_118] : memref<1x32x256xf32, #tpu.memory_space<vmem>>, vector<1x32x256xf32>
    %309 = vector.shape_cast %308 : vector<1x32x256xf32> to vector<32x256xf32>
    %310 = vector.shape_cast %307 : vector<32x256xf32> to vector<1x32x256xf32>
    tpu.vector_store %arg12[%c0_116, %c0_117, %c0_118], %310 {strides = array<i32>} : memref<1x32x256xf32, #tpu.memory_space<vmem>>, vector<1x32x256xf32>,
    return
  }
  func.func @transform_0(%arg0: i32) -> (i32, i32, i32) {
    %c0_i32 = arith.constant 0 : i32
    %c0_i32_0 = arith.constant 0 : i32
    %c0_i32_1 = arith.constant 0 : i32
    return %arg0, %c0_i32, %c0_i32_0 : i32, i32, i32
  }
  func.func @transform_1(%arg0: i32) -> (i32, i32, i32, i32) {
    %c0_i32 = arith.constant 0 : i32
    %c0_i32_0 = arith.constant 0 : i32
    %c0_i32_1 = arith.constant 0 : i32
    %c0_i32_2 = arith.constant 0 : i32
    %c0_i32_3 = arith.constant 0 : i32
    return %c0_i32, %c0_i32_0, %c0_i32_1, %c0_i32_2 : i32, i32, i32, i32
  }
  func.func @transform_2(%arg0: i32) -> (i32, i32, i32) {
    %c0_i32 = arith.constant 0 : i32
    %c0_i32_0 = arith.constant 0 : i32
    %c0_i32_1 = arith.constant 0 : i32
    %c0_i32_2 = arith.constant 0 : i32
    return %c0_i32, %c0_i32_0, %c0_i32_1 : i32, i32, i32
  }
  func.func @transform_3(%arg0: i32) -> (i32, i32, i32, i32) {
    %c0_i32 = arith.constant 0 : i32
    %c0_i32_0 = arith.constant 0 : i32
    %c0_i32_1 = arith.constant 0 : i32
    %c0_i32_2 = arith.constant 0 : i32
    %c0_i32_3 = arith.constant 0 : i32
    return %c0_i32, %c0_i32_0, %c0_i32_1, %c0_i32_2 : i32, i32, i32, i32
  }
  func.func @transform_4(%arg0: i32) -> (i32, i32, i32) {
    %c0_i32 = arith.constant 0 : i32
    %c0_i32_0 = arith.constant 0 : i32
    %c0_i32_1 = arith.constant 0 : i32
    %c0_i32_2 = arith.constant 0 : i32
    return %c0_i32, %c0_i32_0, %c0_i32_1 : i32, i32, i32
  }
  func.func @transform_5(%arg0: i32) -> (i32, i32, i32) {
    %c0_i32 = arith.constant 0 : i32
    %c0_i32_0 = arith.constant 0 : i32
    %c0_i32_1 = arith.constant 0 : i32
    %c0_i32_2 = arith.constant 0 : i32
    return %c0_i32, %c0_i32_0, %c0_i32_1 : i32, i32, i32
  }
  func.func @transform_6(%arg0: i32) -> (i32, i32, i32) {
    %c0_i32 = arith.constant 0 : i32
    %c0_i32_0 = arith.constant 0 : i32
    %c0_i32_1 = arith.constant 0 : i32
    %c0_i32_2 = arith.constant 0 : i32
    return %c0_i32, %c0_i32_0, %c0_i32_1 : i32, i32, i32
  }
  func.func @transform_7(%arg0: i32) -> (i32, i32, i32) {
    %c0_i32 = arith.constant 0 : i32
    %c0_i32_0 = arith.constant 0 : i32
    %c0_i32_1 = arith.constant 0 : i32
    %c0_i32_2 = arith.constant 0 : i32
    return %c0_i32, %c0_i32_0, %c0_i32_1 : i32, i32, i32
  }
  func.func @transform_8(%arg0: i32) -> (i32, i32, i32) {
    %c0_i32 = arith.constant 0 : i32
    %c0_i32_0 = arith.constant 0 : i32
    %c0_i32_1 = arith.constant 0 : i32
    %c0_i32_2 = arith.constant 0 : i32
    return %c0_i32, %c0_i32_0, %c0_i32_1 : i32, i32, i32
  }
  func.func @transform_9(%arg0: i32) -> (i32, i32, i32) {
    %c0_i32 = arith.constant 0 : i32
    %c0_i32_0 = arith.constant 0 : i32
    %c0_i32_1 = arith.constant 0 : i32
    %c0_i32_2 = arith.constant 0 : i32
    return %c0_i32, %c0_i32_0, %c0_i32_1 : i32, i32, i32
  }
  func.func @transform_10(%arg0: i32) -> (i32, i32) {
    %c0_i32 = arith.constant 0 : i32
    %c0_i32_0 = arith.constant 0 : i32
    %c0_i32_1 = arith.constant 0 : i32
    return %c0_i32, %c0_i32_0 : i32, i32
  }
  func.func @transform_11(%arg0: i32) -> (i32, i32, i32) {
    %c0_i32 = arith.constant 0 : i32
    %c0_i32_0 = arith.constant 0 : i32
    %c0_i32_1 = arith.constant 0 : i32
    return %arg0, %c0_i32, %c0_i32_0 : i32, i32, i32
  }
}

</mosaic_0001>

<bundles_post_ra>
// kernel: residual_group_forward.1
= control target key start
LH: loop header
LB: loop body
LE: loop exit
PB: predicated region body
PF: predicated region fallthrough
CT: control target
= control target key end

     0   :  { %s3868_s17 = smov 0   ;;  %s5518_s0 = inlined_call_operand.vmem [shape: f32[2,32,256], index: 0, kind: input, shape index: {}]   ;;  %s5519_s1 = inlined_call_operand.vmem [shape: bf16[2,3,32,96], index: 1, kind: input, shape index: {}]   ;;  %s5520_s2 = inlined_call_operand.vmem [shape: f32[2,32,1], index: 2, kind: input, shape index: {}]   ;;  %s5521_s3 = inlined_call_operand.vmem [shape: bf16[2,3,32,96], index: 3, kind: input, shape index: {}]   ;;  %s5522_s4 = inlined_call_operand.vmem [shape: f32[2,32,1], index: 4, kind: input, shape index: {}]   ;;  %s5523_s5 = inlined_call_operand.vmem [shape: f32[2,32,4], index: 5, kind: input, shape index: {}]   ;;  %s5524_s6 = inlined_call_operand.vmem [shape: f32[2,1,4], index: 6, kind: input, shape index: {}]   ;;  %s5525_s7 = inlined_call_operand.vmem [shape: f32[2,32,4], index: 7, kind: input, shape index: {}]   ;;  %s5526_s8 = inlined_call_operand.vmem [shape: f32[2,32,1], index: 8, kind: input, shape index: {}]   ;;  %s5527_s9 = inlined_call_operand.vmem [shape: bf16[3,32,96], index: 9, kind: input, shape index: {}]   ;;  %s5528_s10 = inlined_call_operand.vmem [shape: f32[32,1], index: 10, kind: input, shape index: {}]   ;;  %s5529_s11 = inlined_call_operand.vmem [shape: f32[2,32,256], index: 11, kind: output, shape index: {}]  }
   0x1 LB: > { %s3558_s18 = sadd.s32 4294967295, %s3798_s17   ;;  %p3562_p0 = scmp.ge.s32.totalorder %s3798_s17, 1  ;;  %s3798_s17 = sphi %s3868_s17, %s21_s17  }
   0x2   : > { %p337_p1 = scmp.lt.s32.totalorder %s3798_s17, 3 }
   0x4   : > { %p338_p2 = pnand %p3562_p0, %p337_p1 }
   0x5   : > { %p377_p3 = scmp.lt.s32.totalorder (!%p338_p2), %s3558_s18, 1  ;;  %s3801_s19 = smov (!%p338_p2), 96  }
   0x6   : > { %341 = sbr.rel (%p338_p2) target bundleno = 3622 (0xe26), region = 64  ;;  %s3802_s24 = smov (!%p338_p2), 112  }
   0x7   : > { %s3803_s25 = smov (!%p338_p2), 111   ;;  %s3804_s26 = smov (!%p338_p2), 113  }
   0x8   : > { %s3805_s27 = smov (!%p338_p2), 16   ;;  %s3806_s28 = smov (!%p338_p2), 17  }
   0x9   : > { %s3807_s29 = smov (!%p338_p2), 15  }
   0xb   : > { %v390_v0 = vlaneseq  ;;  %v3800_v1 = vmov 0   ;;  %s5531_s18 = smov (!%p377_p3, %s3558_s18), 1  ;;  %vm477_vm6 = vcmask 785408   ;;  %vm456_vm7 = vcmask 916480  }
   0xc   : > { %471 = vrot.lane.b32.xlu0 %v3800_v1, %s3801_s19  ;;  %637 = vmatprep.mubr.bf16.mxu0 %v3800_v1  ;;  %s3682_s20 = sshll.u32 %s5531_s18, 6  ;;  %vm508_vm12 = vcmask 908288   ;;  %vm828_vm13 = vcmask 924672  }
   0xd   : > { %v391_v2 = vand.u32 127, %v390_v0  ;;  %781 = vmatprep.mubr.bf16.mxu1 %v3800_v1  ;;  %3712 = vset.pattern.permute.xlu1 %v3800_v1  ;;  %s3890_s23 = scalar_lea.vmem %s5518_s0, %s3682_s20  ;;  %v497_v13 = vshrl.u32 %v390_v0, 7  ;;  %s5497_s16 = scalar_lea.vmem %s5529_s11, %s3682_s20 }
   0xe   : > { %3713 = vset.pattern.permute.xlu0 %v3800_v1  ;;  %v422_v5 = vld [vmem:[%s3890_s23 + $0x28] sm:$0xff]  ;;  %v424_v6 = vld [vmem:[%s3890_s23 + $0x38] sm:$0xff]  ;;  %v421_v7 = vld [vmem:[%s3890_s23 + $0x20] sm:$0xff] }
   0xf   : > { %v392_v3 = vadd.s32 128, %v391_v2  ;;  %v397_v4 = vand.u32 15, %v391_v2  ;;  %v3895_v9 = vpack.c.bf16 %v424_v6, %v422_v5  ;;  %v423_v10 = vld [vmem:[%s3890_s23 + $0x30] sm:$0xff]  ;;  %v418_v11 = vld [vmem:[%s3890_s23 + $0x8] sm:$0xff]  ;;  %v420_v12 = vld [vmem:[%s3890_s23 + $0x18] sm:$0xff]  ;;  %v3912_v19 = vsub.s32 0, %v497_v13 }
  0x10   : > { %v3900_v14 = vpack.c.bf16 %v423_v10, %v421_v7  ;;  %v417_v15 = vld [vmem:[%s3890_s23] sm:$0xff]  ;;  %v419_v16 = vld [vmem:[%s3890_s23 + $0x10] sm:$0xff]  ;;  %v3910_v18 = vpack.c.bf16 %v420_v12, %v418_v11  ;;  %v502_v20 = vsub.s32 4, %v497_v13 }
  0x11   : > { %v404_v8 = vand.u32 15, %v392_v3  ;;  %vm488_vm0 = vcmp.gt.s32.totalorder %v397_v4, 0  ;;  %475 = vrot.lane.b32.xlu1 %v3895_v9, %s3801_s19  ;;  %v3906_v17 = vpack.c.bf16 %v419_v16, %v417_v15  ;;  %vm808_vm2 = vcmp.lt.s32.totalorder %v397_v4, 15 }
  0x12   : > { %473 = vrot.lane.b32.xlu0 %v3900_v14, %s3801_s19 }
  0x13   : > { %vm489_vm1 = vcmp.gt.s32.totalorder %v404_v8, 0  ;;  %vm809_vm3 = vcmp.lt.s32.totalorder %v404_v8, 15 }
  0x14   : > { %vm494_vm4 = vmpackc.low %vm489_vm1, %vm488_vm0  ;;  %vm573_vm0 = vcmask 130048   ;;  %vm718_vm1 = vcmask 138240  }
  0x15   : > { %vm814_vm5 = vmpackc.low %vm809_vm3, %vm808_vm2  ;;  %467 = vrot.lane.b32.xlu1 %v3906_v17, %s3801_s19  ;;  %v495_v21 = vsel %vm494_vm4, 65537, %v3800_v1  ;;  %vm909_vm2 = vcmask 121856   ;;  %vm1607_vm3 = vcmask 31744  }
  0x16   : > { %469 = vrot.lane.b32.xlu0 %v3910_v18, %s3801_s19  ;;  %v815_v22 = vsel %vm814_vm5, 65537, %v3800_v1  ;;  %v499_v23 = vrot.slane %v495_v21, %v3912_v19  ;;  %v503_v24 = vrot.slane %v495_v21, %v502_v20 }
  0x17   : > { %v819_v25 = vrot.slane %v815_v22, %v3912_v19  ;;  %v823_v26 = vrot.slane %v815_v22, %v502_v20 }
  0x19   : > { %452 = vrot.lane.b32.xlu1 %v3900_v14, %s3802_s24 }
  0x1a   : > { %454 = vrot.lane.b32.xlu0 %v3895_v9, %s3802_s24 }
  0x1d   : > { %448 = vrot.lane.b32.xlu1 %v3906_v17, %s3802_s24 }
  0x1e   : > { %450 = vrot.lane.b32.xlu0 %v3910_v18, %s3802_s24 }
  0x21   : > { %504 = vrot.lane.b32.xlu1 %v499_v23, %s3803_s25 }
  0x22   : > { %506 = vrot.lane.b32.xlu0 %v503_v24, %s3803_s25 }
  0x25   : > { %824 = vrot.lane.b32.xlu1 %v819_v25, %s3804_s26 }
  0x26   : > { %826 = vrot.lane.b32.xlu0 %v823_v26, %s3804_s26  ;;  %v1004_v26 = vld [vmem:[%s5520_s2 + $0x18] sm:$0xff] }
  0x29   : > { %446 = vrot.lane.b32.xlu1 %v3800_v1, %s3802_s24 }
  0x2a   : > { %545 = vrot.lane.b32.xlu0 %v3900_v14, %s3805_s27 }
  0x2d   : > { %547 = vrot.lane.b32.xlu1 %v3895_v9, %s3805_s27 }
  0x2e   : > { %539 = vrot.lane.b32.xlu0 %v3800_v1, %s3805_s27 }
  0x31   : > { %541 = vrot.lane.b32.xlu1 %v3906_v17, %s3805_s27 }
  0x32   : > { %543 = vrot.lane.b32.xlu0 %v3910_v18, %s3805_s27 }
  0x35   : > { %684 = vrot.lane.b32.xlu1 %v3800_v1, %s3806_s28 }
  0x36   : > { %875 = vrot.lane.b32.xlu0 %v3800_v1, %s3807_s29 }
  0x7e   : > { %v3946_v27 = vpop.permute.xlu0 %471 }
  0x83   : > { %v476_v28 = vpop.permute.xlu1 %475 }
  0x84   : > { %v474_v29 = vpop.permute.xlu0 %473  ;;  %v481_v37 = vsel %vm477_vm6, %v476_v28, %v3946_v27 }
  0x85   : > { %567 = vrot.lane.b32.xlu0 %v474_v29, %s3805_s27  ;;  %v3955_v36 = vsel %vm477_vm6, %v474_v29, %v476_v28 }
  0x87   : > { %v468_v30 = vpop.permute.xlu1 %467 }
  0x88   : > { %v470_v31 = vpop.permute.xlu0 %469  ;;  %561 = vrot.lane.b32.xlu1 %v468_v30, %s3805_s27 }
  0x89   : > { %v479_v40 = vsel %vm477_vm6, %v470_v31, %v3946_v27  ;;  %v3969_v41 = vsel %vm477_vm6, %v468_v30, %v470_v31 }
  0x8b   : > { %v453_v32 = vpop.permute.xlu1 %452 }
  0x8c   : > { %v455_v33 = vpop.permute.xlu0 %454  ;;  %555 = vrot.lane.b32.xlu0 %v453_v32, %s3805_s27 }
  0x8d   : > { %559 = vrot.lane.b32.xlu1 %v455_v33, %s3805_s27  ;;  %v3975_v42 = vsel %vm456_vm7, %v453_v32, %v455_v33 }
  0x8f   : > { %v449_v34 = vpop.permute.xlu1 %448 }
  0x90   : > { %v451_v35 = vpop.permute.xlu0 %450 }
  0x91   : > { %553 = vrot.lane.b32.xlu0 %v451_v35, %s3805_s27  ;;  %549 = vrot.lane.b32.xlu1 %v449_v34, %s3805_s27  ;;  %v3978_v43 = vsel %vm456_vm7, %v449_v34, %v451_v35 }
  0x93   : > { %v3964_v39 = vpop.permute.xlu1 %504 }
  0x94   : > { %v3962_v38 = vpop.permute.xlu0 %506  ;;  %vm512_vm9 = vcmp.ne.s16.totalorder %v3964_v39, 0 }
  0x95   : > { %569 = vrot.lane.b32.xlu0 %v3955_v36, %s3805_s27  ;;  %571 = vrot.lane.b32.xlu1 %v481_v37, %s3805_s27  ;;  %vm511_vm8 = vcmp.ne.s16.totalorder %v3962_v38, 0  ;;  %v526_v47 = vsel %vm512_vm9, %v474_v29, 0  ;;  %v523_v50 = vsel %vm512_vm9, %v468_v30, 0  ;;  %v4052_v4 = vsel %vm508_vm12, %v3964_v39, %v3962_v38 }
  0x96   : > { %v528_v46 = vsel %vm511_vm8, %v481_v37, 0  ;;  %v525_v51 = vsel %vm511_vm8, %v479_v40, 0  ;;  %v522_v56 = vsel %vm511_vm8, %v455_v33, 0  ;;  %v519_v62 = vsel %vm511_vm8, %v451_v35, 0 }
  0x97   : > { %v3988_v45 = vpop.permute.xlu1 %824  ;;  %v516_v5 = vsel %vm511_vm8, %v3895_v9, 0  ;;  %vm510_vm14 = vcmp.ne.s16.totalorder %v4052_v4, 0  ;;  %v514_v8 = vsel %vm511_vm8, %v3910_v18, 0 }
  0x98   : > { %v3986_v44 = vpop.permute.xlu0 %826  ;;  %vm832_vm11 = vcmp.ne.s16.totalorder %v3988_v45, 0  ;;  %v527_v10 = vsel %vm510_vm14, %v3955_v36, 0  ;;  %v524_v11 = vsel %vm510_vm14, %v3969_v41, 0  ;;  %v521_v13 = vsel %vm510_vm14, %v3975_v42, 0 }
  0x99   : > { %565 = vrot.lane.b32.xlu0 %v479_v40, %s3805_s27  ;;  %563 = vrot.lane.b32.xlu1 %v3969_v41, %s3805_s27  ;;  %vm831_vm10 = vcmp.ne.s16.totalorder %v3986_v44, 0  ;;  %v846_v49 = vsel %vm832_vm11, %v474_v29, 0  ;;  %v843_v54 = vsel %vm832_vm11, %v468_v30, 0  ;;  %v840_v59 = vsel %vm832_vm11, %v453_v32, 0 }
  0x9a   : > { %v848_v48 = vsel %vm831_vm10, %v481_v37, 0  ;;  %v845_v53 = vsel %vm831_vm10, %v479_v40, 0  ;;  %v837_v2 = vsel %vm832_vm11, %v449_v34, 0  ;;  %v836_v6 = vsel %vm831_vm10, %v3895_v9, 0 }
  0x9b   : > { %v4010_v52 = vpop.permute.xlu1 %446  ;;  %v4065_v7 = vsel %vm828_vm13, %v3988_v45, %v3986_v44  ;;  %v518_v16 = vsel %vm510_vm14, %v3978_v43, 0  ;;  %v515_v21 = vsel %vm510_vm14, %v3900_v14, 0  ;;  %v513_v23 = vsel %vm510_vm14, %v3906_v17, 0 }
  0x9c   : > { %v459_v55 = vsel %vm456_vm7, %v4010_v52, %v453_v32  ;;  %v803_v58 = vsel %vm456_vm7, %v455_v33, %v4010_v52  ;;  %v457_v61 = vsel %vm456_vm7, %v4010_v52, %v449_v34  ;;  %v802_v0 = vsel %vm456_vm7, %v451_v35, %v4010_v52  ;;  %v546_v28 = vpop.permute.xlu0 %545 }
  0x9d   : > { %557 = vrot.lane.b32.xlu0 %v3975_v42, %s3805_s27  ;;  %551 = vrot.lane.b32.xlu1 %v3978_v43, %s3805_s27  ;;  %v520_v57 = vsel %vm512_vm9, %v459_v55, 0  ;;  %v842_v60 = vsel %vm831_vm10, %v803_v58, 0  ;;  %v517_v63 = vsel %vm512_vm9, %v457_v61, 0  ;;  %v839_v3 = vsel %vm831_vm10, %v802_v0, 0 }
  0x9e   : > { %vm830_vm15 = vcmp.ne.s16.totalorder %v4065_v7, 0  ;;  %v834_v24 = vsel %vm831_vm10, %v3910_v18, 0  ;;  %v1001_v18 = vld [vmem:[%s5520_s2] sm:$0xff]  ;;  %v3457_v7 = vld [vmem:[%s5528_s10 + $0x10] sm:$0xff] }
  0x9f   : > { %v847_v9 = vsel %vm830_vm15, %v3955_v36, 0  ;;  %v844_v12 = vsel %vm830_vm15, %v3969_v41, 0  ;;  %v841_v15 = vsel %vm830_vm15, %v3975_v42, 0  ;;  %v838_v20 = vsel %vm830_vm15, %v3978_v43, 0  ;;  %v548_v30 = vpop.permute.xlu1 %547 }
  0xa0   : > { %v835_v22 = vsel %vm830_vm15, %v3900_v14, 0  ;;  %v833_v25 = vsel %vm830_vm15, %v3906_v17, 0  ;;  %v1003_v14 = vld [vmem:[%s5520_s2 + $0x10] sm:$0xff]  ;;  %v1002_v17 = vld [vmem:[%s5520_s2 + $0x8] sm:$0xff]  ;;  %v4136_v29 = vpop.permute.xlu0 %539 }
  0xa1   : > { %716 = vrot.lane.b32.xlu0 %v528_v46, %s3806_s28  ;;  %712 = vrot.lane.b32.xlu1 %v526_v47, %s3806_s28 }
  0xa3   : > { %v542_v32 = vpop.permute.xlu1 %541 }
  0xa4   : > { %v544_v31 = vpop.permute.xlu0 %543 }
  0xa5   : > { %907 = vrot.lane.b32.xlu1 %v848_v48, %s3807_s29  ;;  %903 = vrot.lane.b32.xlu0 %v846_v49, %s3807_s29 }
  0xa7   : > { %v4140_v34 = vpop.permute.xlu1 %684 }
  0xa8   : > { %v4138_v33 = vpop.permute.xlu0 %875 }
  0xa9   : > { %706 = vrot.lane.b32.xlu1 %v523_v50, %s3806_s28  ;;  %710 = vrot.lane.b32.xlu0 %v525_v51, %s3806_s28 }
  0xad   : > { %901 = vrot.lane.b32.xlu1 %v845_v53, %s3807_s29  ;;  %897 = vrot.lane.b32.xlu0 %v843_v54, %s3807_s29 }
  0xb1   : > { %704 = vrot.lane.b32.xlu0 %v522_v56, %s3806_s28  ;;  %700 = vrot.lane.b32.xlu1 %v520_v57, %s3806_s28 }
  0xb5   : > { %891 = vrot.lane.b32.xlu0 %v840_v59, %s3807_s29  ;;  %895 = vrot.lane.b32.xlu1 %v842_v60, %s3807_s29 }
  0xb9   : > { %698 = vrot.lane.b32.xlu0 %v519_v62, %s3806_s28  ;;  %694 = vrot.lane.b32.xlu1 %v517_v63, %s3806_s28  ;;  %v577_v62 = vsel %vm573_vm0, %v546_v28, %v548_v30 }
  0xbd   : > { %885 = vrot.lane.b32.xlu0 %v837_v2, %s3807_s29  ;;  %889 = vrot.lane.b32.xlu1 %v839_v3, %s3807_s29  ;;  %v576_v2 = vsel %vm573_vm0, %v4136_v29, %v546_v28  ;;  %v575_v3 = vsel %vm573_vm0, %v542_v32, %v544_v31 }
  0xc1   : > { %692 = vrot.lane.b32.xlu0 %v516_v5, %s3806_s28  ;;  %883 = vrot.lane.b32.xlu1 %v836_v6, %s3807_s29 }
  0xc5   : > { %688 = vrot.lane.b32.xlu0 %v514_v8, %s3806_s28  ;;  %714 = vrot.lane.b32.xlu1 %v527_v10, %s3806_s28  ;;  %v574_v8 = vsel %vm573_vm0, %v4136_v29, %v542_v32  ;;  %v3714_v10 = vld [vmem:[%s5519_s1 + $0x10] sm:$0xff]  }
  0xc9   : > { %905 = vrot.lane.b32.xlu0 %v847_v9, %s3807_s29  ;;  %708 = vrot.lane.b32.xlu1 %v524_v11, %s3806_s28 }
  0xcd   : > { %899 = vrot.lane.b32.xlu0 %v844_v12, %s3807_s29  ;;  %702 = vrot.lane.b32.xlu1 %v521_v13, %s3806_s28 }
  0xd1   : > { %893 = vrot.lane.b32.xlu0 %v841_v15, %s3807_s29  ;;  %696 = vrot.lane.b32.xlu1 %v518_v16, %s3806_s28  ;;  %v3715_v15 = vld [vmem:[%s5519_s1 + $0x18] sm:$0xff]  }
  0xd5   : > { %887 = vrot.lane.b32.xlu0 %v838_v20, %s3807_s29  ;;  %690 = vrot.lane.b32.xlu1 %v515_v21, %s3806_s28 }
  0xd9   : > { %881 = vrot.lane.b32.xlu0 %v835_v22, %s3807_s29  ;;  %686 = vrot.lane.b32.xlu1 %v513_v23, %s3806_s28 }
  0xdd   : > { %879 = vrot.lane.b32.xlu0 %v834_v24, %s3807_s29  ;;  %877 = vrot.lane.b32.xlu1 %v833_v25, %s3807_s29 }
  0xe1   : > { %1017 = vperm.xlu1 %3712, %v1003_v14   ;;  %1022 = vperm.xlu0 %3713, %v1004_v26  }
  0xe5   : > { %1007 = vperm.xlu1 %3712, %v1001_v18  }
  0xe9   : > { %1012 = vperm.xlu1 %3712, %v1002_v17  }
  0xf7   : > { %v568_v35 = vpop.permute.xlu0 %567 }
  0xfa   : > { %v562_v36 = vpop.permute.xlu1 %561 }
  0xfe   : > { %v556_v37 = vpop.permute.xlu0 %555 }
  0xff   : > { %v560_v40 = vpop.permute.xlu1 %559 }
 0x103   : > { %v554_v41 = vpop.permute.xlu0 %553  ;;  %v550_v42 = vpop.permute.xlu1 %549 }
 0x107   : > { %v570_v43 = vpop.permute.xlu0 %569  ;;  %v572_v46 = vpop.permute.xlu1 %571 }
 0x108   : > { %v585_v47 = vsel %vm573_vm0, %v570_v43, %v572_v46  ;;  %v584_v48 = vsel %vm573_vm0, %v568_v35, %v570_v43 }
 0x109   : > { %609 = vmatprep.subr.bf16.mxu0 %v585_v47 }
 0x10a   : > { %610 = vmatpush1.bf16.msra.mxu0 %v584_v48 }
 0x10b   : > { %v566_v49 = vpop.permute.xlu0 %565  ;;  %v564_v50 = vpop.permute.xlu1 %563 }
 0x10c   : > { %v583_v51 = vsel %vm573_vm0, %v564_v50, %v566_v49  ;;  %v582_v53 = vsel %vm573_vm0, %v562_v36, %v564_v50 }
 0x10d   : > { %611 = vmatprep.subr.bf16.mxu0 %v583_v51 }
 0x10e   : > { %612 = vmatpush1.bf16.msra.mxu0 %v582_v53 }
 0x10f   : > { %v558_v54 = vpop.permute.xlu0 %557  ;;  %v552_v55 = vpop.permute.xlu1 %551 }
 0x110   : > { %v581_v56 = vsel %vm573_vm0, %v558_v54, %v560_v40  ;;  %v580_v57 = vsel %vm573_vm0, %v556_v37, %v558_v54  ;;  %v579_v58 = vsel %vm573_vm0, %v552_v55, %v554_v41  ;;  %v578_v61 = vsel %vm573_vm0, %v550_v42, %v552_v55 }
 0x111   : > { %613 = vmatprep.subr.bf16.mxu0 %v581_v56 }
 0x112   : > { %614 = vmatpush1.bf16.msra.mxu0 %v580_v57 }
 0x113   : > { %v717_v59 = vpop.permute.xlu0 %716  ;;  %615 = vmatprep.subr.bf16.mxu0 %v579_v58  ;;  %v713_v60 = vpop.permute.xlu1 %712 }
 0x116   : > { %616 = vmatpush1.bf16.msra.mxu0 %v578_v61 }
 0x117   : > { %v904_v63 = vpop.permute.xlu0 %903  ;;  %617 = vmatprep.subr.bf16.mxu0 %v577_v62  ;;  %v908_v0 = vpop.permute.xlu1 %907 }
 0x11a   : > { %618 = vmatpush1.bf16.msra.mxu0 %v576_v2 }
 0x11b   : > { %v711_v5 = vpop.permute.xlu0 %710  ;;  %619 = vmatprep.subr.bf16.mxu0 %v575_v3  ;;  %v707_v6 = vpop.permute.xlu1 %706 }
 0x11e   : > { %620 = vmatpush1.bf16.msra.mxu0 %v574_v8 }
 0x11f   : > { %v898_v9 = vpop.permute.xlu0 %897  ;;  %v902_v11 = vpop.permute.xlu1 %901 }
 0x121   : > { %3569 = vmatmul.mubr.msk.bf16.vlgmr.msra.gmra.mxu0 %vm477_vm6, %v3714_v10 }
 0x122   : > { %647 = vmatprep.mubr.bf16.mxu0 %v3800_v1 }
 0x123   : > { %v705_v12 = vpop.permute.xlu0 %704  ;;  %v701_v13 = vpop.permute.xlu1 %700 }
 0x127   : > { %v892_v16 = vpop.permute.xlu0 %891  ;;  %v896_v20 = vpop.permute.xlu1 %895 }
 0x129   : > { %3570 = vmatmul.mubr.msk.bf16.gmra.mxu0 %vm477_vm6, %v3715_v15 }
 0x12a   : > { %972 = vmatprep.mubr.bf16.mxu0 %v3800_v1 }
 0x12b   : > { %v699_v21 = vpop.permute.xlu0 %698  ;;  %v695_v22 = vpop.permute.xlu1 %694 }
 0x12f   : > { %v886_v23 = vpop.permute.xlu0 %885  ;;  %v890_v24 = vpop.permute.xlu1 %889 }
 0x133   : > { %v693_v25 = vpop.permute.xlu0 %692  ;;  %v884_v14 = vpop.permute.xlu1 %883 }
 0x137   : > { %v689_v26 = vpop.permute.xlu0 %688  ;;  %v715_v28 = vpop.permute.xlu1 %714 }
 0x138   : > { %v730_v18 = vsel %vm718_vm1, %v715_v28, %v717_v59  ;;  %v729_v17 = vsel %vm718_vm1, %v713_v60, %v715_v28 }
 0x139   : > { %753 = vmatprep.subr.bf16.mxu1 %v730_v18 }
 0x13a   : > { %754 = vmatpush1.bf16.msra.mxu1 %v729_v17 }
 0x13b   : > { %v906_v30 = vpop.permute.xlu0 %905  ;;  %v709_v31 = vpop.permute.xlu1 %708 }
 0x13c   : > { %v728_v32 = vsel %vm718_vm1, %v709_v31, %v711_v5  ;;  %v921_v35 = vsel %vm909_vm2, %v906_v30, %v908_v0  ;;  %v727_v36 = vsel %vm718_vm1, %v707_v6, %v709_v31  ;;  %v920_v37 = vsel %vm909_vm2, %v904_v63, %v906_v30  ;;  %v3716_v5 = vld [vmem:[%s5519_s1] sm:$0xff]  }
 0x13d   : > { %755 = vmatprep.subr.bf16.mxu1 %v728_v32  ;;  %944 = vmatprep.subr.bf16.mxu0 %v921_v35 }
 0x13e   : > { %756 = vmatpush1.bf16.msra.mxu1 %v727_v36  ;;  %945 = vmatpush1.bf16.msra.mxu0 %v920_v37 }
 0x13f   : > { %v900_v40 = vpop.permute.xlu0 %899  ;;  %v703_v41 = vpop.permute.xlu1 %702 }
 0x140   : > { %v726_v42 = vsel %vm718_vm1, %v703_v41, %v705_v12  ;;  %v919_v43 = vsel %vm909_vm2, %v900_v40, %v902_v11  ;;  %v725_v46 = vsel %vm718_vm1, %v701_v13, %v703_v41  ;;  %v918_v47 = vsel %vm909_vm2, %v898_v9, %v900_v40  ;;  %v3717_v11 = vld [vmem:[%s5519_s1 + $0x20] sm:$0xff]   ;;  %v3718_v12 = vld [vmem:[%s5519_s1 + $0x8] sm:$0xff]  }
 0x141   : > { %757 = vmatprep.subr.bf16.mxu1 %v726_v42  ;;  %946 = vmatprep.subr.bf16.mxu0 %v919_v43  ;;  %v3719_v13 = vld [vmem:[%s5519_s1 + $0x28] sm:$0xff]  }
 0x142   : > { %758 = vmatpush1.bf16.msra.mxu1 %v725_v46  ;;  %947 = vmatpush1.bf16.msra.mxu0 %v918_v47 }
 0x143   : > { %v894_v48 = vpop.permute.xlu0 %893  ;;  %v697_v49 = vpop.permute.xlu1 %696 }
 0x144   : > { %v724_v50 = vsel %vm718_vm1, %v697_v49, %v699_v21  ;;  %v917_v51 = vsel %vm909_vm2, %v894_v48, %v896_v20  ;;  %v723_v53 = vsel %vm718_vm1, %v695_v22, %v697_v49  ;;  %v916_v54 = vsel %vm909_vm2, %v892_v16, %v894_v48 }
 0x145   : > { %759 = vmatprep.subr.bf16.mxu1 %v724_v50  ;;  %948 = vmatprep.subr.bf16.mxu0 %v917_v51 }
 0x146   : > { %760 = vmatpush1.bf16.msra.mxu1 %v723_v53  ;;  %949 = vmatpush1.bf16.msra.mxu0 %v916_v54 }
 0x147   : > { %v888_v55 = vpop.permute.xlu0 %887  ;;  %v691_v56 = vpop.permute.xlu1 %690 }
 0x148   : > { %v722_v57 = vsel %vm718_vm1, %v691_v56, %v693_v25  ;;  %v915_v58 = vsel %vm909_vm2, %v888_v55, %v890_v24  ;;  %v721_v59 = vsel %vm718_vm1, %v4140_v34, %v691_v56  ;;  %v914_v60 = vsel %vm909_vm2, %v886_v23, %v888_v55 }
 0x149   : > { %761 = vmatprep.subr.bf16.mxu1 %v722_v57  ;;  %950 = vmatprep.subr.bf16.mxu0 %v915_v58 }
 0x14a   : > { %762 = vmatpush1.bf16.msra.mxu1 %v721_v59  ;;  %951 = vmatpush1.bf16.msra.mxu0 %v914_v60 }
 0x14b   : > { %v882_v61 = vpop.permute.xlu0 %881  ;;  %v687_v62 = vpop.permute.xlu1 %686 }
 0x14c   : > { %v720_v63 = vsel %vm718_vm1, %v687_v62, %v689_v26  ;;  %v913_v0 = vsel %vm909_vm2, %v882_v61, %v884_v14  ;;  %v719_v2 = vsel %vm718_vm1, %v4140_v34, %v687_v62  ;;  %v912_v3 = vsel %vm909_vm2, %v4138_v33, %v882_v61 }
 0x14d   : > { %763 = vmatprep.subr.bf16.mxu1 %v720_v63  ;;  %952 = vmatprep.subr.bf16.mxu0 %v913_v0 }
 0x14e   : > { %764 = vmatpush1.bf16.msra.mxu1 %v719_v2  ;;  %953 = vmatpush1.bf16.msra.mxu0 %v912_v3 }
 0x14f   : > { %v880_v6 = vpop.permute.xlu0 %879  ;;  %v878_v8 = vpop.permute.xlu1 %877 }
 0x150   : > { %v911_v10 = vsel %vm909_vm2, %v878_v8, %v880_v6  ;;  %v910_v9 = vsel %vm909_vm2, %v4138_v33, %v878_v8 }
 0x151   : > { %3573 = vmatmul.mubr.msk.bf16.vlgmr.msra.gmra.mxu1 %vm477_vm6, %v3716_v5  ;;  %954 = vmatprep.subr.bf16.mxu0 %v911_v10 }
 0x152   : > { %955 = vmatpush1.bf16.msra.mxu0 %v910_v9  ;;  %791 = vmatprep.mubr.bf16.mxu1 %v3800_v1 }
 0x155   : > { %3577 = vmatmul.mubr.msk.bf16.vlgmr.msra.gmra.mxu0 %vm477_vm6, %v3717_v11 }
 0x156   : > { %982 = vmatprep.mubr.bf16.mxu0 %v3800_v1 }
 0x159   : > { %3574 = vmatmul.mubr.msk.bf16.gmra.mxu1 %vm477_vm6, %v3718_v12 }
 0x15a   : > { %1217 = vmatprep.mubr.bf16.mxu1 %v3800_v1 }
 0x15c   : > { %v1018_v24 = vpop.permute.xlu1 %1017  ;;  %v1023_v11 = vpop.permute.xlu0 %1022 }
 0x15d   : > { %3578 = vmatmul.mubr.msk.bf16.gmra.mxu0 %vm477_vm6, %v3719_v13 }
 0x15e   : > { %1358 = vmatprep.mubr.bf16.mxu0 %v3800_v1 }
 0x160   : > { %v1008_v17 = vpop.permute.xlu1 %1007 }
 0x164   : > { %v1013_v49 = vpop.permute.xlu1 %1012 }
 0x1e1   : > { %v639_v15 = vpop.f32.mrf.mxu0 }
 0x1e3   : > { %v641_v16 = vpop.f32.mrf.mxu0 }
 0x1e5   : > { %v643_v20 = vpop.f32.mrf.mxu0 }
 0x1e7   : > { %v645_v21 = vpop.f32.mrf.mxu0 }
 0x1e9   : > { %v649_v22 = vpop.f32.mrf.mxu0 }
 0x1eb   : > { %v651_v23 = vpop.f32.mrf.mxu0 }
 0x1ed   : > { %v653_v25 = vpop.f32.mrf.mxu0 }
 0x1ef   : > { %v655_v26 = vpop.f32.mrf.mxu0 }
 0x211   : > { %v783_v14 = vpop.f32.mrf.mxu1 }
 0x212   : > { %v784_v18 = vadd.f32 %v783_v14, %v639_v15 }
 0x213   : > { %v785_v28 = vpop.f32.mrf.mxu1 }
 0x214   : > { %v786_v32 = vadd.f32 %v785_v28, %v641_v16 }
 0x215   : > { %v787_v30 = vpop.f32.mrf.mxu1  ;;  %v974_v31 = vpop.f32.mrf.mxu0 }
 0x216   : > { %v993_v35 = vadd.f32 %v974_v31, %v784_v18  ;;  %v788_v40 = vadd.f32 %v787_v30, %v643_v20 }
 0x217   : > { %v789_v36 = vpop.f32.mrf.mxu1  ;;  %v976_v37 = vpop.f32.mrf.mxu0 }
 0x218   : > { %v994_v41 = vadd.f32 %v976_v37, %v786_v32  ;;  %v1025_v46 = vadd.f32 %v1008_v17, %v993_v35  ;;  %v790_v47 = vadd.f32 %v789_v36, %v645_v21 }
 0x219   : > { %v793_v42 = vpop.f32.mrf.mxu1  ;;  %v978_v43 = vpop.f32.mrf.mxu0 }
 0x21a   : > { %v995_v48 = vadd.f32 %v978_v43, %v788_v40  ;;  %v1026_v53 = vadd.f32 %v1008_v17, %v994_v41  ;;  %v794_v54 = vadd.f32 %v793_v42, %v649_v22  ;;  %v1033_v59 = vmax.f32 %v1025_v46, 0.0 }
 0x21b   : > { %v795_v50 = vpop.f32.mrf.mxu1  ;;  %v980_v51 = vpop.f32.mrf.mxu0 }
 0x21c   : > { %v1027_v55 = vadd.f32 %v1013_v49, %v995_v48  ;;  %v996_v56 = vadd.f32 %v980_v51, %v790_v47  ;;  %v796_v63 = vadd.f32 %v795_v50, %v651_v23  ;;  %v1034_v3 = vmax.f32 %v1026_v53, 0.0 }
 0x21d   : > { %v797_v57 = vpop.f32.mrf.mxu1  ;;  %v984_v58 = vpop.f32.mrf.mxu0 }
 0x21e   : > { %v1035_v60 = vmax.f32 %v1027_v55, 0.0  ;;  %v1028_v61 = vadd.f32 %v1013_v49, %v996_v56  ;;  %v997_v62 = vadd.f32 %v984_v58, %v794_v54  ;;  %v798_v8 = vadd.f32 %v797_v57, %v653_v25 }
 0x21f   : > { %v799_v0 = vpop.f32.mrf.mxu1  ;;  %v986_v2 = vpop.f32.mrf.mxu0 }
 0x220   : > { %v4214_v5 = vpack.c.bf16 %v1035_v60, %v1033_v59  ;;  %v1036_v6 = vmax.f32 %v1028_v61, 0.0  ;;  %v998_v10 = vadd.f32 %v986_v2, %v796_v63  ;;  %v1029_v13 = vadd.f32 %v1018_v24, %v997_v62 }
 0x221   : > { %v988_v9 = vpop.f32.mrf.mxu0  ;;  %v800_v15 = vadd.f32 %v799_v0, %v655_v26 }
 0x222   : > { %v4216_v12 = vpack.c.bf16 %v1036_v6, %v1034_v3  ;;  %v999_v16 = vadd.f32 %v988_v9, %v798_v8  ;;  %1079 = vrot.lane.b32.xlu0 %v4214_v5, %s3801_s19  ;;  %v1030_v21 = vadd.f32 %v1018_v24, %v998_v10  ;;  %v1037_v14 = vmax.f32 %v1029_v13, 0.0 }
 0x223   : > { %v990_v20 = vpop.f32.mrf.mxu0 }
 0x224   : > { %v1031_v22 = vadd.f32 %v1023_v11, %v999_v16  ;;  %v1000_v23 = vadd.f32 %v990_v20, %v800_v15  ;;  %1081 = vrot.lane.b32.xlu1 %v4216_v12, %s3801_s19  ;;  %v1038_v18 = vmax.f32 %v1030_v21, 0.0 }
 0x226   : > { %v1039_v25 = vmax.f32 %v1031_v22, 0.0  ;;  %v1032_v28 = vadd.f32 %v1023_v11, %v1000_v23 }
 0x228   : > { %v4222_v17 = vpack.c.bf16 %v1039_v25, %v1037_v14  ;;  %v1040_v30 = vmax.f32 %v1032_v28, 0.0 }
 0x22a   : > { %v4224_v31 = vpack.c.bf16 %v1040_v30, %v1038_v18  ;;  %1083 = vrot.lane.b32.xlu0 %v4222_v17, %s3801_s19  ;;  %v1099_v11 = vsel %vm510_vm14, %v4222_v17, 0  ;;  %v1387_v18 = vsel %vm830_vm15, %v4222_v17, 0  ;;  %v1098_v30 = vsel %vm511_vm8, %v4216_v12, 0 }
 0x22c   : > { %1085 = vrot.lane.b32.xlu1 %v4224_v31, %s3801_s19  ;;  %v1100_v21 = vsel %vm511_vm8, %v4224_v31, 0  ;;  %v1388_v28 = vsel %vm831_vm10, %v4224_v31, 0 }
 0x22e   : > { %1061 = vrot.lane.b32.xlu0 %v4214_v5, %s3802_s24 }
 0x230   : > { %1063 = vrot.lane.b32.xlu1 %v4216_v12, %s3802_s24 }
 0x232   : > { %1065 = vrot.lane.b32.xlu0 %v4222_v17, %s3802_s24 }
 0x234   : > { %1067 = vrot.lane.b32.xlu1 %v4224_v31, %s3802_s24 }
 0x236   : > { %1127 = vrot.lane.b32.xlu0 %v4222_v17, %s3805_s27  ;;  %v1385_v17 = vsel %vm830_vm15, %v4214_v5, 0 }
 0x238   : > { %1125 = vrot.lane.b32.xlu1 %v4216_v12, %s3805_s27 }
 0x23a   : > { %1123 = vrot.lane.b32.xlu0 %v4214_v5, %s3805_s27 }
 0x23c   : > { %1129 = vrot.lane.b32.xlu1 %v4224_v31, %s3805_s27  ;;  %v1386_v31 = vsel %vm831_vm10, %v4216_v12, 0  ;;  %v1553_v12 = vld [vmem:[%s5522_s4 + $0x18] sm:$0xff] }
 0x294   : > { %v1080_v24 = vpop.permute.xlu0 %1079 }
 0x295   : > { %1143 = vrot.lane.b32.xlu1 %v1080_v24, %s3805_s27  ;;  %v1107_v26 = vsel %vm512_vm9, %v1080_v24, 0  ;;  %v1395_v41 = vsel %vm832_vm11, %v1080_v24, 0 }
 0x296   : > { %1284 = vrot.lane.b32.xlu0 %v1107_v26, %s3806_s28  ;;  %v1082_v32 = vpop.permute.xlu1 %1081  ;;  %v1551_v26 = vld [vmem:[%s5522_s4 + $0x8] sm:$0xff] }
 0x297   : > { %v1088_v42 = vsel %vm477_vm6, %v1082_v32, %v3946_v27  ;;  %v1087_v43 = vsel %vm477_vm6, %v1080_v24, %v1082_v32  ;;  %v1097_v24 = vsel %vm510_vm14, %v4214_v5, 0  ;;  %v1550_v32 = vld [vmem:[%s5522_s4] sm:$0xff]  ;;  %v1552_v5 = vld [vmem:[%s5522_s4 + $0x10] sm:$0xff] }
 0x298   : > { %v1108_v46 = vsel %vm510_vm14, %v1087_v43, 0  ;;  %v1397_v48 = vsel %vm831_vm10, %v1088_v42, 0  ;;  %v1109_v49 = vsel %vm511_vm8, %v1088_v42, 0  ;;  %v1396_v51 = vsel %vm830_vm15, %v1087_v43, 0 }
 0x29c   : > { %v1084_v35 = vpop.permute.xlu0 %1083 }
 0x29d   : > { %v1398_v53 = vsel %vm832_vm11, %v1084_v35, 0  ;;  %v1110_v56 = vsel %vm512_vm9, %v1084_v35, 0 }
 0x29e   : > { %v1086_v36 = vpop.permute.xlu1 %1085 }
 0x29f   : > { %v1090_v60 = vsel %vm477_vm6, %v1086_v36, %v3946_v27  ;;  %v1089_v61 = vsel %vm477_vm6, %v1084_v35, %v1086_v36 }
 0x2a0   : > { %v1062_v37 = vpop.permute.xlu0 %1061  ;;  %v1112_v13 = vsel %vm511_vm8, %v1090_v60, 0  ;;  %v1111_v15 = vsel %vm510_vm14, %v1089_v61, 0  ;;  %v1399_v16 = vsel %vm830_vm15, %v1089_v61, 0  ;;  %v1400_v20 = vsel %vm831_vm10, %v1090_v60, 0 }
 0x2a1   : > { %1131 = vrot.lane.b32.xlu1 %v1062_v37, %s3805_s27  ;;  %v1069_v62 = vsel %vm456_vm7, %v4010_v52, %v1062_v37  ;;  %v1389_v8 = vsel %vm832_vm11, %v1062_v37, 0 }
 0x2a2   : > { %v1064_v40 = vpop.permute.xlu1 %1063  ;;  %v1101_v0 = vsel %vm512_vm9, %v1069_v62, 0 }
 0x2a3   : > { %1135 = vrot.lane.b32.xlu0 %v1064_v40, %s3805_s27  ;;  %v1070_v47 = vsel %vm456_vm7, %v1062_v37, %v1064_v40  ;;  %v1103_v63 = vsel %vm511_vm8, %v1064_v40, 0  ;;  %v1379_v6 = vsel %vm456_vm7, %v1064_v40, %v4010_v52 }
 0x2a4   : > { %v1102_v50 = vsel %vm510_vm14, %v1070_v47, 0  ;;  %v1066_v54 = vpop.permute.xlu0 %1065  ;;  %v1390_v2 = vsel %vm830_vm15, %v1070_v47, 0  ;;  %v1391_v10 = vsel %vm831_vm10, %v1379_v6, 0 }
 0x2a5   : > { %1447 = vrot.lane.b32.xlu1 %v1395_v41, %s3807_s29  ;;  %v1392_v55 = vsel %vm832_vm11, %v1066_v54, 0  ;;  %v1071_v57 = vsel %vm456_vm7, %v4010_v52, %v1066_v54 }
 0x2a6   : > { %v1068_v58 = vpop.permute.xlu1 %1067  ;;  %v1104_v59 = vsel %vm512_vm9, %v1071_v57, 0 }
 0x2a7   : > { %1147 = vrot.lane.b32.xlu0 %v1088_v42, %s3805_s27  ;;  %v1072_v3 = vsel %vm456_vm7, %v1066_v54, %v1068_v58  ;;  %v1106_v9 = vsel %vm511_vm8, %v1068_v58, 0  ;;  %v1380_v23 = vsel %vm456_vm7, %v1068_v58, %v4010_v52 }
 0x2a8   : > { %v1105_v22 = vsel %vm510_vm14, %v1072_v3, 0  ;;  %v1393_v14 = vsel %vm830_vm15, %v1072_v3, 0  ;;  %v1394_v25 = vsel %vm831_vm10, %v1380_v23, 0  ;;  %v1128_v36 = vpop.permute.xlu0 %1127 }
 0x2a9   : > { %1145 = vrot.lane.b32.xlu1 %v1087_v43, %s3805_s27 }
 0x2ab   : > { %1286 = vrot.lane.b32.xlu0 %v1108_v46, %s3806_s28 }
 0x2ac   : > { %v1124_v40 = vpop.permute.xlu0 %1123 }
 0x2ad   : > { %1133 = vrot.lane.b32.xlu1 %v1070_v47, %s3805_s27 }
 0x2af   : > { %1451 = vrot.lane.b32.xlu0 %v1397_v48, %s3807_s29 }
 0x2b1   : > { %1288 = vrot.lane.b32.xlu1 %v1109_v49, %s3806_s28 }
 0x2b3   : > { %1274 = vrot.lane.b32.xlu0 %v1102_v50, %s3806_s28 }
 0x2b5   : > { %1449 = vrot.lane.b32.xlu1 %v1396_v51, %s3807_s29 }
 0x2b7   : > { %1149 = vrot.lane.b32.xlu0 %v1084_v35, %s3805_s27  ;;  %v1126_v35 = vpop.permute.xlu1 %1125 }
 0x2b9   : > { %1453 = vrot.lane.b32.xlu1 %v1398_v53, %s3807_s29 }
 0x2bb   : > { %1137 = vrot.lane.b32.xlu0 %v1066_v54, %s3805_s27  ;;  %v1130_v37 = vpop.permute.xlu1 %1129 }
 0x2bd   : > { %1441 = vrot.lane.b32.xlu1 %v1392_v55, %s3807_s29 }
 0x2bf   : > { %1290 = vrot.lane.b32.xlu0 %v1110_v56, %s3806_s28 }
 0x2c1   : > { %1141 = vrot.lane.b32.xlu1 %v1068_v58, %s3805_s27 }
 0x2c3   : > { %1278 = vrot.lane.b32.xlu0 %v1104_v59, %s3806_s28 }
 0x2c5   : > { %1153 = vrot.lane.b32.xlu1 %v1090_v60, %s3805_s27 }
 0x2c7   : > { %1151 = vrot.lane.b32.xlu0 %v1089_v61, %s3805_s27 }
 0x2c9   : > { %1276 = vrot.lane.b32.xlu1 %v1103_v63, %s3806_s28 }
 0x2cb   : > { %1272 = vrot.lane.b32.xlu0 %v1101_v0, %s3806_s28 }
 0x2cd   : > { %1437 = vrot.lane.b32.xlu1 %v1390_v2, %s3807_s29 }
 0x2cf   : > { %1139 = vrot.lane.b32.xlu0 %v1072_v3, %s3805_s27 }
 0x2d1   : > { %1435 = vrot.lane.b32.xlu1 %v1389_v8, %s3807_s29 }
 0x2d3   : > { %1439 = vrot.lane.b32.xlu0 %v1391_v10, %s3807_s29 }
 0x2d5   : > { %1282 = vrot.lane.b32.xlu1 %v1106_v9, %s3806_s28 }
 0x2d7   : > { %1268 = vrot.lane.b32.xlu0 %v1099_v11, %s3806_s28 }
 0x2d9   : > { %1294 = vrot.lane.b32.xlu1 %v1112_v13, %s3806_s28 }
 0x2db   : > { %1292 = vrot.lane.b32.xlu0 %v1111_v15, %s3806_s28 }
 0x2dd   : > { %1455 = vrot.lane.b32.xlu1 %v1399_v16, %s3807_s29 }
 0x2df   : > { %1457 = vrot.lane.b32.xlu0 %v1400_v20, %s3807_s29 }
 0x2e1   : > { %1270 = vrot.lane.b32.xlu1 %v1100_v21, %s3806_s28 }
 0x2e3   : > { %1280 = vrot.lane.b32.xlu0 %v1105_v22, %s3806_s28 }
 0x2e5   : > { %1443 = vrot.lane.b32.xlu1 %v1393_v14, %s3807_s29 }
 0x2e7   : > { %1445 = vrot.lane.b32.xlu0 %v1394_v25, %s3807_s29 }
 0x2e9   : > { %1433 = vrot.lane.b32.xlu1 %v1388_v28, %s3807_s29  ;;  %v1158_v28 = vsel %vm573_vm0, %v1128_v36, %v1130_v37  ;;  %v3720_v37 = vld [vmem:[%s5521_s3 + $0x10] sm:$0xff]  }
 0x2eb   : > { %1431 = vrot.lane.b32.xlu0 %v1387_v18, %s3807_s29 }
 0x2ed   : > { %1266 = vrot.lane.b32.xlu1 %v1098_v30, %s3806_s28 }
 0x2ef   : > { %1264 = vrot.lane.b32.xlu0 %v1097_v24, %s3806_s28  ;;  %v1157_v24 = vsel %vm573_vm0, %v4136_v29, %v1128_v36 }
 0x2f1   : > { %1429 = vrot.lane.b32.xlu1 %v1386_v31, %s3807_s29  ;;  %v1156_v31 = vsel %vm573_vm0, %v1124_v40, %v1126_v35 }
 0x2f3   : > { %1427 = vrot.lane.b32.xlu0 %v1385_v17, %s3807_s29 }
 0x2f5   : > { %1561 = vperm.xlu1 %3712, %v1551_v26  }
 0x2f7   : > { %1556 = vperm.xlu0 %3713, %v1550_v32  }
 0x2f9   : > { %1571 = vperm.xlu1 %3712, %v1553_v12  }
 0x2fb   : > { %1566 = vperm.xlu0 %3713, %v1552_v5   ;;  %v1155_v5 = vsel %vm573_vm0, %v4136_v29, %v1124_v40 }
 0x307   : > { %v1144_v41 = vpop.permute.xlu1 %1143 }
 0x308   : > { %v4390_v42 = vpop.permute.xlu0 %1284 }
 0x313   : > { %v1132_v43 = vpop.permute.xlu1 %1131 }
 0x315   : > { %v1136_v46 = vpop.permute.xlu0 %1135 }
 0x317   : > { %v4392_v47 = vpop.permute.xlu1 %1447 }
 0x319   : > { %v1148_v48 = vpop.permute.xlu0 %1147 }
 0x31b   : > { %v1146_v49 = vpop.permute.xlu1 %1145 }
 0x31c   : > { %v1164_v10 = vsel %vm573_vm0, %v1146_v49, %v1148_v48  ;;  %v1163_v13 = vsel %vm573_vm0, %v1144_v41, %v1146_v49 }
 0x31d   : > { %v4394_v50 = vpop.permute.xlu0 %1286 }
 0x31e   : > { %v1304_v40 = vsel %vm718_vm1, %v4390_v42, %v4394_v50 }
 0x31f   : > { %v1134_v51 = vpop.permute.xlu1 %1133 }
 0x320   : > { %v1160_v22 = vsel %vm573_vm0, %v1134_v51, %v1136_v46  ;;  %v1159_v25 = vsel %vm573_vm0, %v1132_v43, %v1134_v51 }
 0x321   : > { %v4396_v53 = vpop.permute.xlu0 %1451 }
 0x323   : > { %v1289_v54 = vpop.permute.xlu1 %1288 }
 0x324   : > { %v1305_v35 = vsel %vm718_vm1, %v4394_v50, %v1289_v54  ;;  %v3721_v50 = vld [vmem:[%s5521_s3 + $0x18] sm:$0xff]  }
 0x325   : > { %v4398_v55 = vpop.permute.xlu0 %1274 }
 0x327   : > { %v4400_v56 = vpop.permute.xlu1 %1449 }
 0x328   : > { %v1468_v48 = vsel %vm909_vm2, %v4400_v56, %v4396_v53  ;;  %v1467_v42 = vsel %vm909_vm2, %v4392_v47, %v4400_v56 }
 0x329   : > { %v1150_v57 = vpop.permute.xlu0 %1149 }
 0x32b   : > { %v1454_v58 = vpop.permute.xlu1 %1453 }
 0x32d   : > { %v1138_v59 = vpop.permute.xlu0 %1137 }
 0x32f   : > { %v4402_v60 = vpop.permute.xlu1 %1441 }
 0x331   : > { %v1291_v61 = vpop.permute.xlu0 %1290 }
 0x333   : > { %v1142_v62 = vpop.permute.xlu1 %1141 }
 0x335   : > { %v1279_v63 = vpop.permute.xlu0 %1278 }
 0x337   : > { %v1154_v0 = vpop.permute.xlu1 %1153 }
 0x339   : > { %v1152_v2 = vpop.permute.xlu0 %1151 }
 0x33a   : > { %v1166_v3 = vsel %vm573_vm0, %v1152_v2, %v1154_v0  ;;  %v1165_v6 = vsel %vm573_vm0, %v1150_v57, %v1152_v2 }
 0x33b   : > { %v1277_v8 = vpop.permute.xlu1 %1276  ;;  %1189 = vmatprep.subr.bf16.mxu1 %v1166_v3 }
 0x33c   : > { %1190 = vmatpush1.bf16.msra.mxu1 %v1165_v6  ;;  %v1301_v53 = vsel %vm718_vm1, %v4398_v55, %v1277_v8 }
 0x33d   : > { %1191 = vmatprep.subr.bf16.mxu1 %v1164_v10  ;;  %v1273_v9 = vpop.permute.xlu0 %1272 }
 0x33f   : > { %v4407_v11 = vpop.permute.xlu1 %1437 }
 0x340   : > { %1192 = vmatpush1.bf16.msra.mxu1 %v1163_v13 }
 0x341   : > { %v1140_v15 = vpop.permute.xlu0 %1139 }
 0x342   : > { %v1162_v16 = vsel %vm573_vm0, %v1140_v15, %v1142_v62  ;;  %v1161_v20 = vsel %vm573_vm0, %v1138_v59, %v1140_v15 }
 0x343   : > { %v4412_v21 = vpop.permute.xlu1 %1435  ;;  %1193 = vmatprep.subr.bf16.mxu1 %v1162_v16 }
 0x344   : > { %1194 = vmatpush1.bf16.msra.mxu1 %v1161_v20 }
 0x345   : > { %1195 = vmatprep.subr.bf16.mxu1 %v1160_v22  ;;  %v1440_v23 = vpop.permute.xlu0 %1439  ;;  %v3724_v22 = vld [vmem:[%s5521_s3 + $0x8] sm:$0xff]  }
 0x347   : > { %v1283_v14 = vpop.permute.xlu1 %1282 }
 0x348   : > { %1196 = vmatpush1.bf16.msra.mxu1 %v1159_v25 }
 0x349   : > { %1197 = vmatprep.subr.bf16.mxu1 %v1158_v28  ;;  %v1269_v18 = vpop.permute.xlu0 %1268 }
 0x34b   : > { %v1295_v30 = vpop.permute.xlu1 %1294 }
 0x34c   : > { %1198 = vmatpush1.bf16.msra.mxu1 %v1157_v24 }
 0x34d   : > { %1199 = vmatprep.subr.bf16.mxu1 %v1156_v31  ;;  %v1293_v17 = vpop.permute.xlu0 %1292 }
 0x34e   : > { %v1307_v26 = vsel %vm718_vm1, %v1293_v17, %v1295_v30  ;;  %v1306_v32 = vsel %vm718_vm1, %v1291_v61, %v1293_v17  ;;  %v1300_v61 = vsel %vm718_vm1, %v1273_v9, %v4398_v55  ;;  %v1463_v55 = vsel %vm909_vm2, %v4412_v21, %v4407_v11  ;;  %v3723_v21 = vld [vmem:[%s5521_s3 + $0x20] sm:$0xff]  }
 0x34f   : > { %v1456_v12 = vpop.permute.xlu1 %1455  ;;  %1330 = vmatprep.subr.bf16.mxu0 %v1307_v26 }
 0x350   : > { %1200 = vmatpush1.bf16.msra.mxu1 %v1155_v5  ;;  %1331 = vmatpush1.bf16.msra.mxu0 %v1306_v32  ;;  %v1469_v46 = vsel %vm909_vm2, %v1454_v58, %v1456_v12 }
 0x351   : > { %1332 = vmatprep.subr.bf16.mxu0 %v1305_v35  ;;  %v1458_v36 = vpop.permute.xlu0 %1457 }
 0x352   : > { %v1470_v41 = vsel %vm909_vm2, %v1456_v12, %v1458_v36 }
 0x353   : > { %v1271_v43 = vpop.permute.xlu1 %1270  ;;  %3581 = vmatmul.mubr.msk.bf16.vlgmr.msra.gmra.mxu1 %vm477_vm6, %v3720_v37  ;;  %1493 = vmatprep.subr.bf16.mxu1 %v1470_v41 }
 0x354   : > { %1333 = vmatpush1.bf16.msra.mxu0 %v1304_v40  ;;  %1494 = vmatpush1.bf16.msra.mxu1 %v1469_v46  ;;  %v1299_v56 = vsel %vm718_vm1, %v1269_v18, %v1271_v43 }
 0x355   : > { %1495 = vmatprep.subr.bf16.mxu1 %v1468_v48  ;;  %v1281_v49 = vpop.permute.xlu0 %1280  ;;  %1227 = vmatprep.mubr.bf16.mxu1 %v3800_v1 }
 0x356   : > { %v1303_v51 = vsel %vm718_vm1, %v1281_v49, %v1283_v14  ;;  %v1302_v54 = vsel %vm718_vm1, %v1279_v63, %v1281_v49  ;;  %v1464_v63 = vsel %vm909_vm2, %v4407_v11, %v1440_v23  ;;  %v3722_v11 = vld [vmem:[%s5521_s3] sm:$0xff]   ;;  %v3725_v23 = vld [vmem:[%s5521_s3 + $0x28] sm:$0xff]  }
 0x357   : > { %v1444_v57 = vpop.permute.xlu1 %1443  ;;  %1334 = vmatprep.subr.bf16.mxu0 %v1303_v51 }
 0x358   : > { %1335 = vmatpush1.bf16.msra.mxu0 %v1302_v54  ;;  %1496 = vmatpush1.bf16.msra.mxu1 %v1467_v42  ;;  %v1465_v47 = vsel %vm909_vm2, %v4402_v60, %v1444_v57  ;;  %v1298_v60 = vsel %vm718_vm1, %v4140_v34, %v1269_v18 }
 0x359   : > { %1336 = vmatprep.subr.bf16.mxu0 %v1301_v53  ;;  %v1446_v58 = vpop.permute.xlu0 %1445 }
 0x35a   : > { %v1466_v59 = vsel %vm909_vm2, %v1444_v57, %v1446_v58 }
 0x35b   : > { %v1434_v62 = vpop.permute.xlu1 %1433  ;;  %1497 = vmatprep.subr.bf16.mxu1 %v1466_v59  ;;  %3582 = vmatmul.mubr.msk.bf16.gmra.mxu1 %vm477_vm6, %v3721_v50 }
 0x35c   : > { %1337 = vmatpush1.bf16.msra.mxu0 %v1300_v61  ;;  %1498 = vmatpush1.bf16.msra.mxu1 %v1465_v47 }
 0x35d   : > { %1338 = vmatprep.subr.bf16.mxu0 %v1299_v56  ;;  %1499 = vmatprep.subr.bf16.mxu1 %v1464_v63  ;;  %v1432_v0 = vpop.permute.xlu0 %1431 }
 0x35e   : > { %1521 = vmatprep.mubr.bf16.mxu1 %v3800_v1  ;;  %v1462_v3 = vsel %vm909_vm2, %v1432_v0, %v1434_v62  ;;  %v1461_v9 = vsel %vm909_vm2, %v4138_v33, %v1432_v0 }
 0x35f   : > { %v1267_v2 = vpop.permute.xlu1 %1266 }
 0x360   : > { %1339 = vmatpush1.bf16.msra.mxu0 %v1298_v60  ;;  %1500 = vmatpush1.bf16.msra.mxu1 %v1463_v55 }
 0x361   : > { %1501 = vmatprep.subr.bf16.mxu1 %v1462_v3  ;;  %v1265_v6 = vpop.permute.xlu0 %1264 }
 0x362   : > { %v1297_v8 = vsel %vm718_vm1, %v1265_v6, %v1267_v2  ;;  %v1296_v10 = vsel %vm718_vm1, %v4140_v34, %v1265_v6 }
 0x363   : > { %1340 = vmatprep.subr.bf16.mxu0 %v1297_v8  ;;  %v1430_v13 = vpop.permute.xlu1 %1429 }
 0x364   : > { %1341 = vmatpush1.bf16.msra.mxu0 %v1296_v10  ;;  %1502 = vmatpush1.bf16.msra.mxu1 %v1461_v9 }
 0x365   : > { %v1428_v15 = vpop.permute.xlu0 %1427 }
 0x366   : > { %v1460_v16 = vsel %vm909_vm2, %v1428_v15, %v1430_v13  ;;  %v1459_v20 = vsel %vm909_vm2, %v4138_v33, %v1428_v15 }
 0x367   : > { %3585 = vmatmul.mubr.msk.bf16.vlgmr.msra.gmra.mxu0 %vm477_vm6, %v3722_v11  ;;  %1503 = vmatprep.subr.bf16.mxu1 %v1460_v16 }
 0x368   : > { %1504 = vmatpush1.bf16.msra.mxu1 %v1459_v20  ;;  %1368 = vmatprep.mubr.bf16.mxu0 %v3800_v1 }
 0x36b   : > { %3589 = vmatmul.mubr.msk.bf16.vlgmr.msra.gmra.mxu1 %vm477_vm6, %v3723_v21 }
 0x36c   : > { %1531 = vmatprep.mubr.bf16.mxu1 %v3800_v1 }
 0x36f   : > { %3586 = vmatmul.mubr.msk.bf16.gmra.mxu0 %vm477_vm6, %v3724_v22 }
 0x370   : > { %1893 = vmatprep.mubr.bf16.mxu0 %v3800_v1  ;;  %v1562_v59 = vpop.permute.xlu1 %1561 }
 0x372   : > { %v1557_v40 = vpop.permute.xlu0 %1556 }
 0x373   : > { %3590 = vmatmul.mubr.msk.bf16.gmra.mxu1 %vm477_vm6, %v3725_v23 }
 0x374   : > { %2034 = vmatprep.mubr.bf16.mxu1 %v3800_v1 }
 0x376   : > { %v1567_v11 = vpop.permute.xlu0 %1566 }
 0x413   : > { %v1219_v14 = vpop.f32.mrf.mxu1 }
 0x415   : > { %v1221_v25 = vpop.f32.mrf.mxu1 }
 0x417   : > { %v1223_v28 = vpop.f32.mrf.mxu1 }
 0x419   : > { %v1225_v18 = vpop.f32.mrf.mxu1 }
 0x41b   : > { %v1229_v30 = vpop.f32.mrf.mxu1 }
 0x41d   : > { %v1231_v24 = vpop.f32.mrf.mxu1 }
 0x41f   : > { %v1233_v31 = vpop.f32.mrf.mxu1 }
 0x421   : > { %v1235_v26 = vpop.f32.mrf.mxu1 }
 0x427   : > { %v1360_v17 = vpop.f32.mrf.mxu0 }
 0x428   : > { %v1361_v12 = vadd.f32 %v1360_v17, %v1219_v14 }
 0x429   : > { %v1362_v32 = vpop.f32.mrf.mxu0 }
 0x42a   : > { %v1363_v35 = vadd.f32 %v1362_v32, %v1221_v25  ;;  %v1572_v25 = vpop.permute.xlu1 %1571 }
 0x42b   : > { %v1364_v5 = vpop.f32.mrf.mxu0  ;;  %v1523_v37 = vpop.f32.mrf.mxu1 }
 0x42c   : > { %v1542_v36 = vadd.f32 %v1523_v37, %v1361_v12  ;;  %v1365_v46 = vadd.f32 %v1364_v5, %v1223_v28  ;;  %v1599_v12 = vld [vmem:[%s5523_s5] sm:$0xff]  ;;  %v1601_v37 = vld [vmem:[%s5523_s5 + $0x10] sm:$0xff] }
 0x42d   : > { %v1366_v41 = vpop.f32.mrf.mxu0  ;;  %v1525_v43 = vpop.f32.mrf.mxu1 }
 0x42e   : > { %v1543_v48 = vadd.f32 %v1525_v43, %v1363_v35  ;;  %v4493_v54 = vadd.f32 %v1557_v40, %v1542_v36  ;;  %v1367_v57 = vadd.f32 %v1366_v41, %v1225_v18 }
 0x42f   : > { %v1370_v49 = vpop.f32.mrf.mxu0  ;;  %v1527_v51 = vpop.f32.mrf.mxu1 }
 0x430   : > { %v4495_v42 = vadd.f32 %v1557_v40, %v1543_v48  ;;  %v1544_v50 = vadd.f32 %v1527_v51, %v1365_v46  ;;  %v1371_v61 = vadd.f32 %v1370_v49, %v1229_v30  ;;  %v1602_v46 = vld [vmem:[%s5523_s5 + $0x18] sm:$0xff] }
 0x431   : > { %v1372_v53 = vpop.f32.mrf.mxu0  ;;  %v1529_v58 = vpop.f32.mrf.mxu1 }
 0x432   : > { %v1545_v62 = vadd.f32 %v1529_v58, %v1367_v57  ;;  %v1582_v47 = vadd.f32 %v4495_v42, %v4493_v54  ;;  %v4499_v0 = vadd.f32 %v1562_v59, %v1544_v50  ;;  %v1373_v55 = vadd.f32 %v1372_v53, %v1231_v24 }
 0x433   : > { %v1374_v56 = vpop.f32.mrf.mxu0  ;;  %v1533_v63 = vpop.f32.mrf.mxu1 }
 0x434   : > { %v4501_v2 = vadd.f32 %v1562_v59, %v1545_v62  ;;  %v1546_v60 = vadd.f32 %v1533_v63, %v1371_v61  ;;  %1583 = vadd.xlane.f32.xlu0 %v1582_v47  ;;  %v1375_v8 = vadd.f32 %v1374_v56, %v1233_v31  ;;  %v1600_v31 = vld [vmem:[%s5523_s5 + $0x8] sm:$0xff] }
 0x435   : > { %v1376_v3 = vpop.f32.mrf.mxu0  ;;  %v1535_v6 = vpop.f32.mrf.mxu1 }
 0x436   : > { %v1547_v10 = vadd.f32 %v1535_v6, %v1373_v55  ;;  %v1585_v9 = vadd.f32 %v4501_v2, %v4499_v0  ;;  %v4505_v15 = vadd.f32 %v1567_v11, %v1546_v60  ;;  %v1377_v16 = vadd.f32 %v1376_v3, %v1235_v26  ;;  %v1621_v60 = vld [vmem:[%s5524_s6] sm:$0x1] }
 0x437   : > { %v1537_v13 = vpop.f32.mrf.mxu1 }
 0x438   : > { %v4507_v20 = vadd.f32 %v1567_v11, %v1547_v10  ;;  %v1548_v21 = vadd.f32 %v1537_v13, %v1375_v8  ;;  %1586 = vadd.xlane.f32.xlu1 %v1585_v9  ;;  %v1627_v10 = vld [vmem:[%s5525_s7 + $0x18] sm:$0xff]  ;;  %v1626_v9 = vld [vmem:[%s5525_s7 + $0x10] sm:$0xff]  ;;  %v1625_v13 = vld [vmem:[%s5525_s7 + $0x8] sm:$0xff] }
 0x439   : > { %v1539_v22 = vpop.f32.mrf.mxu1 }
 0x43a   : > { %v1549_v23 = vadd.f32 %v1539_v22, %v1377_v16  ;;  %v1588_v14 = vadd.f32 %v4507_v20, %v4505_v15  ;;  %v4511_v28 = vadd.f32 %v1572_v25, %v1548_v21  ;;  %v1624_v16 = vld [vmem:[%s5525_s7] sm:$0xff] }
 0x43c   : > { %v4513_v18 = vadd.f32 %v1572_v25, %v1549_v23  ;;  %1589 = vadd.xlane.f32.xlu0 %v1588_v14 }
 0x43e   : > { %v1591_v30 = vadd.f32 %v4513_v18, %v4511_v28 }
 0x440   : > { %1592 = vadd.xlane.f32.xlu0 %v1591_v30 }
 0x4bd   : > { %v1584_v24 = vpop.xlane.xlu0 %1583 }
 0x4be   : > { %v1595_v26 = vmul.f32 0.00390625, %v1584_v24 }
 0x4c0   : > { %v1603_v36 = vmul.f32 %v1599_v12, %v1595_v26  ;;  %v1650_v26 = vld [vmem:[%s5526_s8 + $0x10] sm:$0xff] }
 0x4c1   : > { %v1587_v17 = vpop.xlane.xlu1 %1586 }
 0x4c2   : > { %v1596_v32 = vmul.f32 0.00390625, %v1587_v17  ;;  %v1608_v49 = vsel %vm1607_vm3, %v1603_v36, 0.0  ;;  %v1651_v17 = vld [vmem:[%s5526_s8 + $0x18] sm:$0xff]  ;;  %v1648_v36 = vld [vmem:[%s5526_s8] sm:$0xff] }
 0x4c4   : > { %v1604_v5 = vmul.f32 %v1600_v31, %v1596_v32 }
 0x4c5   : > { %v1590_v35 = vpop.xlane.xlu0 %1589 }
 0x4c6   : > { %v1597_v41 = vmul.f32 0.00390625, %v1590_v35  ;;  %v1609_v43 = vsel %vm1607_vm3, %v1604_v5, 0.0  ;;  %v1649_v35 = vld [vmem:[%s5526_s8 + $0x8] sm:$0xff] }
 0x4c7   : > { %v1610_v50 = vadd.f32 %v1609_v43, %v1608_v49 }
 0x4c8   : > { %v1605_v40 = vmul.f32 %v1601_v37, %v1597_v41 }
 0x4c9   : > { %v1593_v48 = vpop.xlane.xlu0 %1592 }
 0x4ca   : > { %v1611_v51 = vsel %vm1607_vm3, %v1605_v40, 0.0  ;;  %v1598_v57 = vmul.f32 0.00390625, %v1593_v48 }
 0x4cb   : > { %v1612_v58 = vadd.f32 %v1611_v51, %v1610_v50 }
 0x4cc   : > { %v1606_v53 = vmul.f32 %v1602_v46, %v1598_v57 }
 0x4ce   : > { %v1613_v59 = vsel %vm1607_vm3, %v1606_v53, 0.0 }
 0x4cf   : > { %v1614_v61 = vadd.f32 %v1613_v59, %v1612_v58 }
 0x4d1   : > { %v1615_v62 = vrot.slane %v1614_v61, 4 }
 0x4d3   : > { %v1616_v47 = vadd.f32 %v1615_v62, %v1614_v61 }
 0x4d5   : > { %v1617_v56 = vrot.slane %v1616_v47, 2 }
 0x4d7   : > { %v1618_v63 = vadd.f32 %v1617_v56, %v1616_v47 }
 0x4d9   : > { %v1619_v55 = vrot.slane %v1618_v63, 1 }
 0x4db   : > { %v1620_v3 = vadd.f32 %v1619_v55, %v1618_v63 }
 0x4dd   : > { %v1622_v6 = vadd.f32 %v1621_v60, %v1620_v3 }
 0x4df   : > { %v1623_v8 = vmax.f32 %v1622_v6, 0.0 }
 0x4e1   : > { %v1631_v11 = vrot.slane %v1623_v8, %v3912_v19 }
 0x4e3   : > { %v1635_v21 = vmul.f32 %v1631_v11, %v1627_v10  ;;  %v1634_v22 = vmul.f32 %v1631_v11, %v1626_v9  ;;  %v1633_v25 = vmul.f32 %v1631_v11, %v1625_v13  ;;  %v1632_v30 = vmul.f32 %v1631_v11, %v1624_v16  ;;  %v3776_v16 = vld [vmem:[%s3890_s23 + $0x30] sm:$0xff] }
 0x4e5   : > { %v1645_v23 = vsel %vm1607_vm3, %v1635_v21, 0.0  ;;  %v1642_v14 = vsel %vm1607_vm3, %v1634_v22, 0.0  ;;  %v1639_v24 = vsel %vm1607_vm3, %v1633_v25, 0.0  ;;  %v1636_v31 = vsel %vm1607_vm3, %v1632_v30, 0.0  ;;  %v3777_v22 = vld [vmem:[%s3890_s23 + $0x38] sm:$0xff]  ;;  %v3779_v30 = vld [vmem:[%s3890_s23 + $0x28] sm:$0xff] }
 0x4e6   : > { %1646 = vadd.xlane.f32.xlu0 %v1645_v23  ;;  %1643 = vadd.xlane.f32.xlu1 %v1642_v14  ;;  %v3778_v14 = vld [vmem:[%s3890_s23 + $0x20] sm:$0xff] }
 0x4ea   : > { %1640 = vadd.xlane.f32.xlu0 %v1639_v24  ;;  %1637 = vadd.xlane.f32.xlu1 %v1636_v31 }
 0x56f   : > { %v1647_v32 = vpop.xlane.xlu0 %1646  ;;  %v1644_v12 = vpop.xlane.xlu1 %1643 }
 0x570   : > { %v1655_v5 = vadd.f32 %v1651_v17, %v1647_v32  ;;  %v1654_v37 = vadd.f32 %v1650_v26, %v1644_v12  ;;  %v3780_v12 = vld [vmem:[%s3890_s23] sm:$0xff] }
 0x572   : > { %v3594_v41 = vmul.f32 -1.442695, %v1655_v5  ;;  %v3593_v43 = vmul.f32 -1.442695, %v1654_v37  ;;  %v3781_v37 = vld [vmem:[%s3890_s23 + $0x8] sm:$0xff] }
 0x573   : > { %v1641_v40 = vpop.xlane.xlu0 %1640  ;;  %v1638_v46 = vpop.xlane.xlu1 %1637 }
 0x574   : > { %3744 = vpow2.f32 %v3594_v41  ;;  %v1653_v48 = vadd.f32 %v1649_v35, %v1641_v40  ;;  %v1652_v49 = vadd.f32 %v1648_v36, %v1638_v46  ;;  %v3782_v36 = vld [vmem:[%s3890_s23 + $0x10] sm:$0xff] }
 0x575   : > { %3746 = vpow2.f32 %v3593_v43 }
 0x576   : > { %v3592_v51 = vmul.f32 -1.442695, %v1653_v48  ;;  %v3591_v57 = vmul.f32 -1.442695, %v1652_v49 }
 0x578   : > { %3748 = vpow2.f32 %v3592_v51 }
 0x579   : > { %3750 = vpow2.f32 %v3591_v57 }
 0x581   : > { %v3745_v50 = vpop.eup %3744 }
 0x582   : > { %v3747_v53 = vpop.eup %3746  ;;  %v1671_v58 = vadd.f32 1.0, %v3745_v50 }
 0x583   : > { %v1670_v59 = vadd.f32 1.0, %v3747_v53 }
 0x584   : > { %3752 = vrcp.f32 %v1671_v58 }
 0x585   : > { %v3749_v61 = vpop.eup %3748  ;;  %3754 = vrcp.f32 %v1670_v59 }
 0x586   : > { %v3751_v62 = vpop.eup %3750  ;;  %v1669_v56 = vadd.f32 1.0, %v3749_v61 }
 0x587   : > { %v1668_v47 = vadd.f32 1.0, %v3751_v62 }
 0x589   : > { %3756 = vrcp.f32 %v1668_v47 }
 0x58a   : > { %3758 = vrcp.f32 %v1669_v56 }
 0x591   : > { %v3753_v63 = vpop.eup %3752 }
 0x592   : > { %v3755_v55 = vpop.eup %3754  ;;  %1697 = vperm.xlu0 %3713, %v3753_v63  }
 0x593   : > { %1692 = vperm.xlu1 %3712, %v3755_v55  }
 0x596   : > { %v3757_v60 = vpop.eup %3756 }
 0x597   : > { %1682 = vperm.xlu1 %3712, %v3757_v60   ;;  %v3759_v3 = vpop.eup %3758 }
 0x59b   : > { %1687 = vperm.xlu1 %3712, %v3759_v3  }
 0x60d   : > { %v1698_v6 = vpop.permute.xlu0 %1697 }
 0x60e   : > { %v1706_v8 = vmul.f32 %v1698_v6, %v4511_v28  ;;  %v1707_v10 = vmul.f32 %v1698_v6, %v4513_v18  ;;  %v1693_v9 = vpop.permute.xlu1 %1692 }
 0x60f   : > { %v1704_v11 = vmul.f32 %v1693_v9, %v4505_v15  ;;  %v1705_v13 = vmul.f32 %v1693_v9, %v4507_v20 }
 0x610   : > { %v4570_v21 = vadd.f32 %v3776_v16, %v1706_v8  ;;  %v4573_v23 = vadd.f32 %v3777_v22, %v1707_v10 }
 0x611   : > { %v4576_v25 = vadd.f32 %v3778_v14, %v1704_v11  ;;  %v4579_v28 = vadd.f32 %v3779_v30, %v1705_v13 }
 0x612   : > { %v1683_v18 = vpop.permute.xlu1 %1682 }
 0x613   : > { %v1718_v15 = vpack.c.bf16 %v4570_v21, %v4576_v25  ;;  %v1719_v20 = vpack.c.bf16 %v4573_v23, %v4579_v28  ;;  %v1700_v24 = vmul.f32 %v1683_v18, %v4493_v54  ;;  %v1701_v31 = vmul.f32 %v1683_v18, %v4495_v42  ;;  %v3783_v54 = vld [vmem:[%s3890_s23 + $0x18] sm:$0xff] }
 0x615   : > { %1761 = vrot.lane.b32.xlu1 %v1719_v20, %s3801_s19  ;;  %1759 = vrot.lane.b32.xlu0 %v1718_v15, %s3801_s19  ;;  %v4592_v5 = vadd.f32 %v3780_v12, %v1700_v24  ;;  %v4595_v35 = vadd.f32 %v3781_v37, %v1701_v31  ;;  %v1775_v40 = vsel %vm510_vm14, %v1718_v15, 0  ;;  %v2064_v46 = vsel %vm831_vm10, %v1719_v20, 0 }
 0x616   : > { %v1688_v17 = vpop.permute.xlu1 %1687  ;;  %v2063_v48 = vsel %vm830_vm15, %v1718_v15, 0 }
 0x617   : > { %v1702_v26 = vmul.f32 %v1688_v17, %v4499_v0  ;;  %v1703_v32 = vmul.f32 %v1688_v17, %v4501_v2  ;;  %v1776_v2 = vsel %vm511_vm8, %v1719_v20, 0 }
 0x619   : > { %v4598_v41 = vadd.f32 %v3782_v36, %v1702_v26  ;;  %v4601_v42 = vadd.f32 %v3783_v54, %v1703_v32 }
 0x61b   : > { %v4605_v43 = vpack.c.bf16 %v4598_v41, %v4592_v5  ;;  %v4609_v0 = vpack.c.bf16 %v4601_v42, %v4595_v35 }
 0x61d   : > { %1757 = vrot.lane.b32.xlu1 %v4609_v0, %s3801_s19  ;;  %1755 = vrot.lane.b32.xlu0 %v4605_v43, %s3801_s19 }
 0x621   : > { %1743 = vrot.lane.b32.xlu1 %v1719_v20, %s3802_s24  ;;  %1741 = vrot.lane.b32.xlu0 %v1718_v15, %s3802_s24 }
 0x625   : > { %1739 = vrot.lane.b32.xlu1 %v4609_v0, %s3802_s24  ;;  %1737 = vrot.lane.b32.xlu0 %v4605_v43, %s3802_s24 }
 0x629   : > { %1805 = vrot.lane.b32.xlu1 %v1719_v20, %s3805_s27  ;;  %1803 = vrot.lane.b32.xlu0 %v1718_v15, %s3805_s27 }
 0x62d   : > { %1801 = vrot.lane.b32.xlu1 %v4609_v0, %s3805_s27  ;;  %1799 = vrot.lane.b32.xlu0 %v4605_v43, %s3805_s27 }
 0x631   : > { %1946 = vrot.lane.b32.xlu1 %v1776_v2, %s3806_s28  ;;  %1944 = vrot.lane.b32.xlu0 %v1775_v40, %s3806_s28 }
 0x635   : > { %2109 = vrot.lane.b32.xlu1 %v2064_v46, %s3807_s29  ;;  %2107 = vrot.lane.b32.xlu0 %v2063_v48, %s3807_s29 }
 0x687   : > { %v1760_v49 = vpop.permute.xlu0 %1759  ;;  %v1762_v51 = vpop.permute.xlu1 %1761 }
 0x688   : > { %1825 = vrot.lane.b32.xlu0 %v1760_v49, %s3805_s27  ;;  %v1766_v62 = vsel %vm477_vm6, %v1762_v51, %v3946_v27  ;;  %v1765_v47 = vsel %vm477_vm6, %v1760_v49, %v1762_v51  ;;  %v2074_v3 = vsel %vm832_vm11, %v1760_v49, 0  ;;  %v1786_v6 = vsel %vm512_vm9, %v1760_v49, 0 }
 0x689   : > { %v1787_v11 = vsel %vm510_vm14, %v1765_v47, 0  ;;  %v2076_v16 = vsel %vm831_vm10, %v1766_v62, 0  ;;  %v1788_v15 = vsel %vm511_vm8, %v1766_v62, 0  ;;  %v2075_v31 = vsel %vm830_vm15, %v1765_v47, 0 }
 0x68a   : > { %v1774_v51 = vsel %vm511_vm8, %v4609_v0, 0 }
 0x68f   : > { %v1756_v57 = vpop.permute.xlu0 %1755  ;;  %v1758_v50 = vpop.permute.xlu1 %1757 }
 0x690   : > { %1819 = vrot.lane.b32.xlu1 %v1756_v57, %s3805_s27  ;;  %v1763_v56 = vsel %vm477_vm6, %v1756_v57, %v1758_v50  ;;  %v1764_v63 = vsel %vm477_vm6, %v1758_v50, %v3946_v27  ;;  %v2071_v8 = vsel %vm832_vm11, %v1756_v57, 0  ;;  %v1783_v10 = vsel %vm512_vm9, %v1756_v57, 0 }
 0x691   : > { %v1784_v14 = vsel %vm510_vm14, %v1763_v56, 0  ;;  %v2073_v18 = vsel %vm831_vm10, %v1764_v63, 0  ;;  %v1785_v32 = vsel %vm511_vm8, %v1764_v63, 0  ;;  %v2072_v37 = vsel %vm830_vm15, %v1763_v56, 0 }
 0x692   : > { %v1773_v57 = vsel %vm510_vm14, %v4605_v43, 0  ;;  %v2062_v50 = vsel %vm831_vm10, %v4609_v0, 0  ;;  %v3620_v0 = vld [vmem:[%s5520_s2 + $0x28] sm:$0xff] }
 0x693   : > { %v1742_v53 = vpop.permute.xlu0 %1741  ;;  %v1744_v58 = vpop.permute.xlu1 %1743 }
 0x694   : > { %1813 = vrot.lane.b32.xlu0 %v1742_v53, %s3805_s27  ;;  %1817 = vrot.lane.b32.xlu1 %v1744_v58, %s3805_s27  ;;  %v1748_v60 = vsel %vm456_vm7, %v1742_v53, %v1744_v58  ;;  %v1782_v9 = vsel %vm511_vm8, %v1744_v58, 0  ;;  %v2068_v13 = vsel %vm832_vm11, %v1742_v53, 0  ;;  %v1747_v24 = vsel %vm456_vm7, %v4010_v52, %v1742_v53 }
 0x695   : > { %v1781_v20 = vsel %vm510_vm14, %v1748_v60, 0  ;;  %v1780_v17 = vsel %vm512_vm9, %v1747_v24, 0  ;;  %v2056_v26 = vsel %vm456_vm7, %v1744_v58, %v4010_v52  ;;  %v2069_v2 = vsel %vm830_vm15, %v1748_v60, 0  ;;  %v3622_v58 = vld [vmem:[%s5520_s2 + $0x38] sm:$0xff] }
 0x696   : > { %v2070_v12 = vsel %vm831_vm10, %v2056_v26, 0  ;;  %v2061_v53 = vsel %vm830_vm15, %v4605_v43, 0  ;;  %v3619_v43 = vld [vmem:[%s5520_s2 + $0x20] sm:$0xff] }
 0x697   : > { %v1738_v59 = vpop.permute.xlu0 %1737  ;;  %v4643_v61 = vpop.permute.xlu1 %1739 }
 0x698   : > { %1807 = vrot.lane.b32.xlu1 %v1738_v59, %s3805_s27  ;;  %1811 = vrot.lane.b32.xlu0 %v4643_v61, %s3805_s27  ;;  %v1746_v55 = vsel %vm456_vm7, %v1738_v59, %v4643_v61  ;;  %v1779_v22 = vsel %vm511_vm8, %v4643_v61, 0  ;;  %v2065_v30 = vsel %vm832_vm11, %v1738_v59, 0  ;;  %v1745_v54 = vsel %vm456_vm7, %v4010_v52, %v1738_v59  ;;  %v3621_v59 = vld [vmem:[%s5520_s2 + $0x30] sm:$0xff] }
 0x699   : > { %v1778_v36 = vsel %vm510_vm14, %v1746_v55, 0  ;;  %v1777_v40 = vsel %vm512_vm9, %v1745_v54, 0  ;;  %v2055_v46 = vsel %vm456_vm7, %v4643_v61, %v4010_v52  ;;  %v2066_v48 = vsel %vm830_vm15, %v1746_v55, 0 }
 0x69a   : > { %v2067_v49 = vsel %vm831_vm10, %v2055_v46, 0 }
 0x69b   : > { %v1804_v61 = vpop.permute.xlu0 %1803 }
 0x69c   : > { %1829 = vrot.lane.b32.xlu1 %v1766_v62, %s3805_s27  ;;  %1827 = vrot.lane.b32.xlu0 %v1765_v47, %s3805_s27  ;;  %v1806_v62 = vpop.permute.xlu1 %1805 }
 0x69f   : > { %v1800_v47 = vpop.permute.xlu0 %1799 }
 0x6a0   : > { %1821 = vrot.lane.b32.xlu1 %v1763_v56, %s3805_s27  ;;  %1823 = vrot.lane.b32.xlu0 %v1764_v63, %s3805_s27  ;;  %v1802_v56 = vpop.permute.xlu1 %1801 }
 0x6a3   : > { %v4773_v63 = vpop.permute.xlu0 %1944 }
 0x6a4   : > { %1809 = vrot.lane.b32.xlu1 %v1746_v55, %s3805_s27  ;;  %1815 = vrot.lane.b32.xlu0 %v1748_v60, %s3805_s27  ;;  %v4775_v55 = vpop.permute.xlu1 %1946 }
 0x6a7   : > { %v4777_v60 = vpop.permute.xlu0 %2107 }
 0x6a8   : > { %2129 = vrot.lane.b32.xlu1 %v2074_v3, %s3807_s29  ;;  %1966 = vrot.lane.b32.xlu0 %v1786_v6, %s3806_s28  ;;  %v4779_v3 = vpop.permute.xlu1 %2109 }
 0x6ac   : > { %2123 = vrot.lane.b32.xlu1 %v2071_v8, %s3807_s29  ;;  %1960 = vrot.lane.b32.xlu0 %v1783_v10, %s3806_s28 }
 0x6b0   : > { %1958 = vrot.lane.b32.xlu1 %v1782_v9, %s3806_s28  ;;  %1968 = vrot.lane.b32.xlu0 %v1787_v11, %s3806_s28 }
 0x6b4   : > { %2117 = vrot.lane.b32.xlu1 %v2068_v13, %s3807_s29  ;;  %2133 = vrot.lane.b32.xlu0 %v2076_v16, %s3807_s29 }
 0x6b8   : > { %1952 = vrot.lane.b32.xlu1 %v1779_v22, %s3806_s28  ;;  %1962 = vrot.lane.b32.xlu0 %v1784_v14, %s3806_s28 }
 0x6bc   : > { %2111 = vrot.lane.b32.xlu1 %v2065_v30, %s3807_s29  ;;  %2127 = vrot.lane.b32.xlu0 %v2073_v18, %s3807_s29 }
 0x6c0   : > { %1970 = vrot.lane.b32.xlu1 %v1788_v15, %s3806_s28  ;;  %1956 = vrot.lane.b32.xlu0 %v1781_v20, %s3806_s28 }
 0x6c4   : > { %2131 = vrot.lane.b32.xlu1 %v2075_v31, %s3807_s29  ;;  %1954 = vrot.lane.b32.xlu0 %v1780_v17, %s3806_s28 }
 0x6c8   : > { %1964 = vrot.lane.b32.xlu1 %v1785_v32, %s3806_s28  ;;  %2121 = vrot.lane.b32.xlu0 %v2070_v12, %s3807_s29 }
 0x6cc   : > { %2125 = vrot.lane.b32.xlu1 %v2072_v37, %s3807_s29  ;;  %1950 = vrot.lane.b32.xlu0 %v1778_v36, %s3806_s28 }
 0x6d0   : > { %2119 = vrot.lane.b32.xlu1 %v2069_v2, %s3807_s29  ;;  %1948 = vrot.lane.b32.xlu0 %v1777_v40, %s3806_s28  ;;  %v1834_v2 = vsel %vm573_vm0, %v1804_v61, %v1806_v62 }
 0x6d4   : > { %2113 = vrot.lane.b32.xlu1 %v2066_v48, %s3807_s29  ;;  %2115 = vrot.lane.b32.xlu0 %v2067_v49, %s3807_s29  ;;  %v1833_v48 = vsel %vm573_vm0, %v4136_v29, %v1804_v61  ;;  %v1832_v49 = vsel %vm573_vm0, %v1800_v47, %v1802_v56  ;;  %v3727_v61 = vld [vmem:[%s5519_s1 + $0x48] sm:$0xff]  }
 0x6d8   : > { %1942 = vrot.lane.b32.xlu1 %v1774_v51, %s3806_s28  ;;  %1940 = vrot.lane.b32.xlu0 %v1773_v57, %s3806_s28 }
 0x6dc   : > { %2105 = vrot.lane.b32.xlu1 %v2062_v50, %s3807_s29  ;;  %2103 = vrot.lane.b32.xlu0 %v2061_v53, %s3807_s29  ;;  %v1831_v50 = vsel %vm573_vm0, %v4136_v29, %v1800_v47  ;;  %v3726_v53 = vld [vmem:[%s5519_s1 + $0x40] sm:$0xff]  }
 0x6e0   : > { %2248 = vperm.xlu1 %3712, %v3622_v58   ;;  %2243 = vperm.xlu0 %3713, %v3621_v59  }
 0x6e4   : > { %2238 = vperm.xlu1 %3712, %v3620_v0   ;;  %2233 = vperm.xlu0 %3713, %v3619_v43  }
 0x6fa   : > { %v1826_v6 = vpop.permute.xlu0 %1825 }
 0x702   : > { %v1820_v8 = vpop.permute.xlu1 %1819 }
 0x706   : > { %v1814_v10 = vpop.permute.xlu0 %1813  ;;  %v1818_v9 = vpop.permute.xlu1 %1817 }
 0x70a   : > { %v1812_v11 = vpop.permute.xlu0 %1811  ;;  %v1808_v13 = vpop.permute.xlu1 %1807 }
 0x70e   : > { %v1828_v16 = vpop.permute.xlu0 %1827  ;;  %v1830_v22 = vpop.permute.xlu1 %1829 }
 0x70f   : > { %v1842_v14 = vsel %vm573_vm0, %v1828_v16, %v1830_v22  ;;  %v1841_v30 = vsel %vm573_vm0, %v1826_v6, %v1828_v16 }
 0x710   : > { %1865 = vmatprep.subr.bf16.mxu0 %v1842_v14 }
 0x711   : > { %1866 = vmatpush1.bf16.msra.mxu0 %v1841_v30 }
 0x712   : > { %v1824_v18 = vpop.permute.xlu0 %1823  ;;  %v1822_v15 = vpop.permute.xlu1 %1821 }
 0x713   : > { %v1840_v20 = vsel %vm573_vm0, %v1822_v15, %v1824_v18  ;;  %v1839_v24 = vsel %vm573_vm0, %v1820_v8, %v1822_v15 }
 0x714   : > { %1867 = vmatprep.subr.bf16.mxu0 %v1840_v20 }
 0x715   : > { %1868 = vmatpush1.bf16.msra.mxu0 %v1839_v24 }
 0x716   : > { %v1816_v31 = vpop.permute.xlu0 %1815  ;;  %v1810_v17 = vpop.permute.xlu1 %1809 }
 0x717   : > { %v1838_v26 = vsel %vm573_vm0, %v1816_v31, %v1818_v9  ;;  %v1837_v32 = vsel %vm573_vm0, %v1814_v10, %v1816_v31  ;;  %v1836_v12 = vsel %vm573_vm0, %v1810_v17, %v1812_v11  ;;  %v1835_v54 = vsel %vm573_vm0, %v1808_v13, %v1810_v17 }
 0x718   : > { %1869 = vmatprep.subr.bf16.mxu0 %v1838_v26 }
 0x719   : > { %1870 = vmatpush1.bf16.msra.mxu0 %v1837_v32 }
 0x71a   : > { %v1967_v37 = vpop.permute.xlu0 %1966  ;;  %1871 = vmatprep.subr.bf16.mxu0 %v1836_v12  ;;  %v2130_v36 = vpop.permute.xlu1 %2129 }
 0x71d   : > { %1872 = vmatpush1.bf16.msra.mxu0 %v1835_v54 }
 0x71e   : > { %v1961_v40 = vpop.permute.xlu0 %1960  ;;  %1873 = vmatprep.subr.bf16.mxu0 %v1834_v2  ;;  %v2124_v46 = vpop.permute.xlu1 %2123 }
 0x721   : > { %1874 = vmatpush1.bf16.msra.mxu0 %v1833_v48 }
 0x722   : > { %v1969_v51 = vpop.permute.xlu0 %1968  ;;  %1875 = vmatprep.subr.bf16.mxu0 %v1832_v49  ;;  %v1959_v57 = vpop.permute.xlu1 %1958 }
 0x723   : > { %v1982_v10 = vsel %vm718_vm1, %v1967_v37, %v1969_v51 }
 0x725   : > { %1876 = vmatpush1.bf16.msra.mxu0 %v1831_v50  ;;  %v2138_v50 = vsel %vm909_vm2, %v4777_v60, %v4779_v3 }
 0x726   : > { %v2134_v58 = vpop.permute.xlu0 %2133  ;;  %v2118_v59 = vpop.permute.xlu1 %2117 }
 0x728   : > { %3609 = vmatmul.mubr.msk.bf16.vlgmr.msra.gmra.mxu0 %vm477_vm6, %v3726_v53 }
 0x729   : > { %1903 = vmatprep.mubr.bf16.mxu0 %v3800_v1 }
 0x72a   : > { %v1963_v0 = vpop.permute.xlu0 %1962  ;;  %v1953_v43 = vpop.permute.xlu1 %1952 }
 0x72b   : > { %v1980_v18 = vsel %vm718_vm1, %v1961_v40, %v1963_v0  ;;  %v1975_v40 = vsel %vm718_vm1, %v4773_v63, %v4775_v55 }
 0x72e   : > { %v2128_v62 = vpop.permute.xlu0 %2127  ;;  %v2112_v56 = vpop.permute.xlu1 %2111 }
 0x730   : > { %3610 = vmatmul.mubr.msk.bf16.gmra.mxu0 %vm477_vm6, %v3727_v61 }
 0x731   : > { %2197 = vmatprep.mubr.bf16.mxu0 %v3800_v1 }
 0x732   : > { %v1957_v47 = vpop.permute.xlu0 %1956  ;;  %v1971_v6 = vpop.permute.xlu1 %1970 }
 0x733   : > { %v1983_v8 = vsel %vm718_vm1, %v1969_v51, %v1971_v6  ;;  %v1979_v15 = vsel %vm718_vm1, %v1957_v47, %v1959_v57  ;;  %v1974_v57 = vsel %vm718_vm1, %v4140_v34, %v4773_v63  ;;  %v3728_v63 = vld [vmem:[%s5519_s1 + $0x30] sm:$0xff]  }
 0x734   : > { %2006 = vmatprep.subr.bf16.mxu1 %v1983_v8 }
 0x735   : > { %2007 = vmatpush1.bf16.msra.mxu1 %v1982_v10 }
 0x736   : > { %v1955_v9 = vpop.permute.xlu0 %1954  ;;  %v2132_v11 = vpop.permute.xlu1 %2131 }
 0x737   : > { %v2146_v13 = vsel %vm909_vm2, %v2132_v11, %v2134_v58  ;;  %v2145_v16 = vsel %vm909_vm2, %v2130_v36, %v2132_v11  ;;  %v1978_v26 = vsel %vm718_vm1, %v1955_v9, %v1957_v47  ;;  %v3731_v47 = vld [vmem:[%s5519_s1 + $0x58] sm:$0xff]  }
 0x738   : > { %2169 = vmatprep.subr.bf16.mxu0 %v2146_v13 }
 0x739   : > { %2170 = vmatpush1.bf16.msra.mxu0 %v2145_v16 }
 0x73a   : > { %v2122_v22 = vpop.permute.xlu0 %2121  ;;  %v1965_v14 = vpop.permute.xlu1 %1964 }
 0x73b   : > { %v1981_v30 = vsel %vm718_vm1, %v1963_v0, %v1965_v14  ;;  %v2137_v0 = vsel %vm909_vm2, %v4138_v33, %v4777_v60  ;;  %v3729_v60 = vld [vmem:[%s5519_s1 + $0x50] sm:$0xff]  }
 0x73c   : > { %2008 = vmatprep.subr.bf16.mxu1 %v1981_v30 }
 0x73d   : > { %2009 = vmatpush1.bf16.msra.mxu1 %v1980_v18 }
 0x73e   : > { %v1951_v20 = vpop.permute.xlu0 %1950  ;;  %2010 = vmatprep.subr.bf16.mxu1 %v1979_v15  ;;  %v2126_v24 = vpop.permute.xlu1 %2125 }
 0x73f   : > { %v2144_v31 = vsel %vm909_vm2, %v2126_v24, %v2128_v62  ;;  %v2143_v17 = vsel %vm909_vm2, %v2124_v46, %v2126_v24  ;;  %v1977_v32 = vsel %vm718_vm1, %v1951_v20, %v1953_v43 }
 0x740   : > { %2171 = vmatprep.subr.bf16.mxu0 %v2144_v31 }
 0x741   : > { %2011 = vmatpush1.bf16.msra.mxu1 %v1978_v26  ;;  %2172 = vmatpush1.bf16.msra.mxu0 %v2143_v17 }
 0x742   : > { %v1949_v12 = vpop.permute.xlu0 %1948  ;;  %2012 = vmatprep.subr.bf16.mxu1 %v1977_v32  ;;  %v2120_v37 = vpop.permute.xlu1 %2119 }
 0x743   : > { %v1976_v36 = vsel %vm718_vm1, %v1949_v12, %v1951_v20  ;;  %v2142_v54 = vsel %vm909_vm2, %v2120_v37, %v2122_v22  ;;  %v2141_v2 = vsel %vm909_vm2, %v2118_v59, %v2120_v37 }
 0x744   : > { %2173 = vmatprep.subr.bf16.mxu0 %v2142_v54 }
 0x745   : > { %2013 = vmatpush1.bf16.msra.mxu1 %v1976_v36  ;;  %2174 = vmatpush1.bf16.msra.mxu0 %v2141_v2 }
 0x746   : > { %v2116_v46 = vpop.permute.xlu0 %2115  ;;  %2014 = vmatprep.subr.bf16.mxu1 %v1975_v40  ;;  %v2114_v48 = vpop.permute.xlu1 %2113 }
 0x747   : > { %v2140_v49 = vsel %vm909_vm2, %v2114_v48, %v2116_v46  ;;  %v2139_v51 = vsel %vm909_vm2, %v2112_v56, %v2114_v48  ;;  %v3730_v56 = vld [vmem:[%s5519_s1 + $0x38] sm:$0xff]  }
 0x748   : > { %2175 = vmatprep.subr.bf16.mxu0 %v2140_v49 }
 0x749   : > { %2015 = vmatpush1.bf16.msra.mxu1 %v1974_v57  ;;  %2176 = vmatpush1.bf16.msra.mxu0 %v2139_v51 }
 0x74a   : > { %v1941_v53 = vpop.permute.xlu0 %1940  ;;  %2177 = vmatprep.subr.bf16.mxu0 %v2138_v50  ;;  %v1943_v55 = vpop.permute.xlu1 %1942 }
 0x74b   : > { %v1973_v58 = vsel %vm718_vm1, %v1941_v53, %v1943_v55  ;;  %v1972_v59 = vsel %vm718_vm1, %v4140_v34, %v1941_v53 }
 0x74c   : > { %2016 = vmatprep.subr.bf16.mxu1 %v1973_v58 }
 0x74d   : > { %2017 = vmatpush1.bf16.msra.mxu1 %v1972_v59  ;;  %2178 = vmatpush1.bf16.msra.mxu0 %v2137_v0 }
 0x74e   : > { %v2104_v3 = vpop.permute.xlu0 %2103  ;;  %v2106_v43 = vpop.permute.xlu1 %2105 }
 0x74f   : > { %v2136_v61 = vsel %vm909_vm2, %v2104_v3, %v2106_v43  ;;  %v2135_v62 = vsel %vm909_vm2, %v4138_v33, %v2104_v3 }
 0x750   : > { %3613 = vmatmul.mubr.msk.bf16.vlgmr.msra.gmra.mxu1 %vm477_vm6, %v3728_v63  ;;  %2179 = vmatprep.subr.bf16.mxu0 %v2136_v61 }
 0x751   : > { %2180 = vmatpush1.bf16.msra.mxu0 %v2135_v62  ;;  %2044 = vmatprep.mubr.bf16.mxu1 %v3800_v1 }
 0x754   : > { %3617 = vmatmul.mubr.msk.bf16.vlgmr.msra.gmra.mxu0 %vm477_vm6, %v3729_v60 }
 0x755   : > { %2207 = vmatprep.mubr.bf16.mxu0 %v3800_v1 }
 0x758   : > { %3614 = vmatmul.mubr.msk.bf16.gmra.mxu1 %vm477_vm6, %v3730_v56 }
 0x759   : > { %2444 = vmatprep.mubr.bf16.mxu1 %v3800_v1 }
 0x75b   : > { %v2244_v14 = vpop.permute.xlu0 %2243  ;;  %v2249_v15 = vpop.permute.xlu1 %2248 }
 0x75c   : > { %3618 = vmatmul.mubr.msk.bf16.gmra.mxu0 %vm477_vm6, %v3731_v47 }
 0x75d   : > { %2585 = vmatprep.mubr.bf16.mxu0 %v3800_v1 }
 0x75f   : > { %v2234_v37 = vpop.permute.xlu0 %2233  ;;  %v2239_v46 = vpop.permute.xlu1 %2238 }
 0x7e8   : > { %v1895_v6 = vpop.f32.mrf.mxu0 }
 0x7ea   : > { %v1897_v8 = vpop.f32.mrf.mxu0 }
 0x7ec   : > { %v1899_v10 = vpop.f32.mrf.mxu0 }
 0x7ee   : > { %v1901_v9 = vpop.f32.mrf.mxu0 }
 0x7f0   : > { %v1905_v11 = vpop.f32.mrf.mxu0 }
 0x7f2   : > { %v1907_v13 = vpop.f32.mrf.mxu0 }
 0x7f4   : > { %v1909_v16 = vpop.f32.mrf.mxu0 }
 0x7f6   : > { %v1911_v30 = vpop.f32.mrf.mxu0 }
 0x810   : > { %v2036_v22 = vpop.f32.mrf.mxu1 }
 0x811   : > { %v2037_v20 = vadd.f32 %v2036_v22, %v1895_v6 }
 0x812   : > { %v2038_v18 = vpop.f32.mrf.mxu1 }
 0x813   : > { %v2039_v17 = vadd.f32 %v2038_v18, %v1897_v8 }
 0x814   : > { %v2040_v24 = vpop.f32.mrf.mxu1  ;;  %v2199_v31 = vpop.f32.mrf.mxu0 }
 0x815   : > { %v2218_v26 = vadd.f32 %v2199_v31, %v2037_v20  ;;  %v2041_v36 = vadd.f32 %v2040_v24, %v1899_v10 }
 0x816   : > { %v2042_v32 = vpop.f32.mrf.mxu1  ;;  %v2201_v12 = vpop.f32.mrf.mxu0 }
 0x817   : > { %v2219_v54 = vadd.f32 %v2201_v12, %v2039_v17  ;;  %v2251_v48 = vadd.f32 %v2234_v37, %v2218_v26  ;;  %v2043_v49 = vadd.f32 %v2042_v32, %v1901_v9 }
 0x818   : > { %v2046_v2 = vpop.f32.mrf.mxu1  ;;  %v2203_v40 = vpop.f32.mrf.mxu0 }
 0x819   : > { %v2220_v51 = vadd.f32 %v2203_v40, %v2041_v36  ;;  %v2252_v53 = vadd.f32 %v2234_v37, %v2219_v54  ;;  %v2047_v55 = vadd.f32 %v2046_v2, %v1905_v11  ;;  %v2259_v3 = vmax.f32 %v2251_v48, 0.0 }
 0x81a   : > { %v2048_v57 = vpop.f32.mrf.mxu1  ;;  %v2205_v50 = vpop.f32.mrf.mxu0 }
 0x81b   : > { %v2253_v58 = vadd.f32 %v2239_v46, %v2220_v51  ;;  %v2221_v59 = vadd.f32 %v2205_v50, %v2043_v49  ;;  %v2049_v60 = vadd.f32 %v2048_v57, %v1907_v13  ;;  %v2260_v6 = vmax.f32 %v2252_v53, 0.0 }
 0x81c   : > { %v2050_v0 = vpop.f32.mrf.mxu1  ;;  %v2209_v63 = vpop.f32.mrf.mxu0 }
 0x81d   : > { %v2261_v43 = vmax.f32 %v2253_v58, 0.0  ;;  %v2254_v61 = vadd.f32 %v2239_v46, %v2221_v59  ;;  %v2222_v62 = vadd.f32 %v2209_v63, %v2047_v55  ;;  %v2051_v9 = vadd.f32 %v2050_v0, %v1909_v16 }
 0x81e   : > { %v2052_v56 = vpop.f32.mrf.mxu1  ;;  %v2211_v47 = vpop.f32.mrf.mxu0 }
 0x81f   : > { %v4859_v8 = vpack.c.bf16 %v2261_v43, %v2259_v3  ;;  %v2262_v10 = vmax.f32 %v2254_v61, 0.0  ;;  %v2223_v22 = vadd.f32 %v2211_v47, %v2049_v60  ;;  %v2255_v11 = vadd.f32 %v2244_v14, %v2222_v62 }
 0x820   : > { %v2213_v18 = vpop.f32.mrf.mxu0  ;;  %v2053_v24 = vadd.f32 %v2052_v56, %v1911_v30 }
 0x821   : > { %v4861_v20 = vpack.c.bf16 %v2262_v10, %v2260_v6  ;;  %v2224_v31 = vadd.f32 %v2213_v18, %v2051_v9  ;;  %2306 = vrot.lane.b32.xlu0 %v4859_v8, %s3801_s19  ;;  %v2256_v26 = vadd.f32 %v2244_v14, %v2223_v22  ;;  %v2263_v12 = vmax.f32 %v2255_v11, 0.0 }
 0x822   : > { %v2215_v17 = vpop.f32.mrf.mxu0 }
 0x823   : > { %v2257_v13 = vadd.f32 %v2249_v15, %v2224_v31  ;;  %v2225_v32 = vadd.f32 %v2215_v17, %v2053_v24  ;;  %2308 = vrot.lane.b32.xlu1 %v4861_v20, %s3801_s19  ;;  %v2264_v36 = vmax.f32 %v2256_v26, 0.0 }
 0x825   : > { %v2265_v37 = vmax.f32 %v2257_v13, 0.0  ;;  %v2258_v16 = vadd.f32 %v2249_v15, %v2225_v32 }
 0x827   : > { %v4867_v54 = vpack.c.bf16 %v2265_v37, %v2263_v12  ;;  %v2266_v2 = vmax.f32 %v2258_v16, 0.0 }
 0x829   : > { %v4869_v40 = vpack.c.bf16 %v2266_v2, %v2264_v36  ;;  %2310 = vrot.lane.b32.xlu0 %v4867_v54, %s3801_s19  ;;  %v2326_v12 = vsel %vm510_vm14, %v4867_v54, 0 }
 0x82b   : > { %2312 = vrot.lane.b32.xlu1 %v4869_v40, %s3801_s19 }
 0x82d   : > { %2288 = vrot.lane.b32.xlu0 %v4859_v8, %s3802_s24 }
 0x82f   : > { %2290 = vrot.lane.b32.xlu1 %v4861_v20, %s3802_s24 }
 0x831   : > { %2292 = vrot.lane.b32.xlu0 %v4867_v54, %s3802_s24 }
 0x833   : > { %2294 = vrot.lane.b32.xlu1 %v4869_v40, %s3802_s24 }
 0x835   : > { %2354 = vrot.lane.b32.xlu0 %v4867_v54, %s3805_s27 }
 0x837   : > { %2352 = vrot.lane.b32.xlu1 %v4861_v20, %s3805_s27 }
 0x839   : > { %2350 = vrot.lane.b32.xlu0 %v4859_v8, %s3805_s27 }
 0x83b   : > { %2356 = vrot.lane.b32.xlu1 %v4869_v40, %s3805_s27 }
 0x893   : > { %v2307_v14 = vpop.permute.xlu0 %2306 }
 0x894   : > { %2370 = vrot.lane.b32.xlu1 %v2307_v14, %s3805_s27  ;;  %v2334_v30 = vsel %vm512_vm9, %v2307_v14, 0  ;;  %v2622_v57 = vsel %vm832_vm11, %v2307_v14, 0 }
 0x895   : > { %2511 = vrot.lane.b32.xlu0 %v2334_v30, %s3806_s28  ;;  %v2309_v15 = vpop.permute.xlu1 %2308 }
 0x896   : > { %v2315_v50 = vsel %vm477_vm6, %v2309_v15, %v3946_v27  ;;  %v2314_v53 = vsel %vm477_vm6, %v2307_v14, %v2309_v15  ;;  %v2327_v14 = vsel %vm511_vm8, %v4869_v40, 0 }
 0x897   : > { %v2335_v55 = vsel %vm510_vm14, %v2314_v53, 0  ;;  %v2624_v59 = vsel %vm831_vm10, %v2315_v50, 0  ;;  %v2336_v0 = vsel %vm511_vm8, %v2315_v50, 0  ;;  %v2623_v3 = vsel %vm830_vm15, %v2314_v53, 0 }
 0x89b   : > { %v2311_v46 = vpop.permute.xlu0 %2310 }
 0x89c   : > { %v2625_v43 = vsel %vm832_vm11, %v2311_v46, 0  ;;  %v2337_v60 = vsel %vm512_vm9, %v2311_v46, 0 }
 0x89d   : > { %v2313_v48 = vpop.permute.xlu1 %2312 }
 0x89e   : > { %v2317_v10 = vsel %vm477_vm6, %v2313_v48, %v3946_v27  ;;  %v2316_v9 = vsel %vm477_vm6, %v2311_v46, %v2313_v48 }
 0x89f   : > { %v2289_v49 = vpop.permute.xlu0 %2288  ;;  %v2339_v37 = vsel %vm511_vm8, %v2317_v10, 0  ;;  %v2338_v16 = vsel %vm510_vm14, %v2316_v9, 0  ;;  %v2626_v36 = vsel %vm830_vm15, %v2316_v9, 0  ;;  %v2627_v2 = vsel %vm831_vm10, %v2317_v10, 0 }
 0x8a0   : > { %2358 = vrot.lane.b32.xlu1 %v2289_v49, %s3805_s27  ;;  %v2296_v22 = vsel %vm456_vm7, %v4010_v52, %v2289_v49  ;;  %v2616_v26 = vsel %vm832_vm11, %v2289_v49, 0 }
 0x8a1   : > { %v2291_v51 = vpop.permute.xlu1 %2290  ;;  %v2328_v11 = vsel %vm512_vm9, %v2296_v22, 0 }
 0x8a2   : > { %2362 = vrot.lane.b32.xlu0 %v2291_v51, %s3805_s27  ;;  %v2297_v58 = vsel %vm456_vm7, %v2289_v49, %v2291_v51  ;;  %v2330_v18 = vsel %vm511_vm8, %v2291_v51, 0  ;;  %v2606_v17 = vsel %vm456_vm7, %v2291_v51, %v4010_v52  ;;  %v2615_v49 = vsel %vm831_vm10, %v4869_v40, 0 }
 0x8a3   : > { %v2329_v63 = vsel %vm510_vm14, %v2297_v58, 0  ;;  %v2293_v61 = vpop.permute.xlu0 %2292  ;;  %v2617_v24 = vsel %vm830_vm15, %v2297_v58, 0  ;;  %v2618_v13 = vsel %vm831_vm10, %v2606_v17, 0  ;;  %v2614_v51 = vsel %vm830_vm15, %v4867_v54, 0 }
 0x8a4   : > { %2674 = vrot.lane.b32.xlu1 %v2622_v57, %s3807_s29  ;;  %v2619_v62 = vsel %vm832_vm11, %v2293_v61, 0  ;;  %v2298_v56 = vsel %vm456_vm7, %v4010_v52, %v2293_v61  ;;  %v2325_v57 = vsel %vm511_vm8, %v4861_v20, 0  ;;  %v2613_v40 = vsel %vm831_vm10, %v4861_v20, 0  ;;  %v3650_v20 = vld [vmem:[%s5522_s4 + $0x38] sm:$0xff] }
 0x8a5   : > { %v2295_v47 = vpop.permute.xlu1 %2294  ;;  %v2331_v6 = vsel %vm512_vm9, %v2298_v56, 0  ;;  %v2612_v54 = vsel %vm830_vm15, %v4859_v8, 0 }
 0x8a6   : > { %2374 = vrot.lane.b32.xlu0 %v2315_v50, %s3805_s27  ;;  %v2299_v31 = vsel %vm456_vm7, %v2293_v61, %v2295_v47  ;;  %v2333_v32 = vsel %vm511_vm8, %v2295_v47, 0  ;;  %v2607_v15 = vsel %vm456_vm7, %v2295_v47, %v4010_v52  ;;  %v2324_v50 = vsel %vm510_vm14, %v4859_v8, 0  ;;  %v3649_v8 = vld [vmem:[%s5522_s4 + $0x30] sm:$0xff] }
 0x8a7   : > { %v2332_v30 = vsel %vm510_vm14, %v2299_v31, 0  ;;  %v2621_v48 = vsel %vm831_vm10, %v2607_v15, 0 }
 0x8a8   : > { %2372 = vrot.lane.b32.xlu1 %v2314_v53, %s3805_s27  ;;  %v3648_v53 = vld [vmem:[%s5522_s4 + $0x28] sm:$0xff] }
 0x8aa   : > { %2513 = vrot.lane.b32.xlu0 %v2335_v55, %s3806_s28  ;;  %v3647_v55 = vld [vmem:[%s5522_s4 + $0x20] sm:$0xff] }
 0x8ac   : > { %2360 = vrot.lane.b32.xlu1 %v2297_v58, %s3805_s27  ;;  %v2353_v58 = vpop.permute.xlu1 %2352 }
 0x8ae   : > { %2678 = vrot.lane.b32.xlu0 %v2624_v59, %s3807_s29  ;;  %v2355_v59 = vpop.permute.xlu0 %2354 }
 0x8b0   : > { %2515 = vrot.lane.b32.xlu1 %v2336_v0, %s3806_s28  ;;  %v2357_v0 = vpop.permute.xlu1 %2356 }
 0x8b2   : > { %2501 = vrot.lane.b32.xlu0 %v2329_v63, %s3806_s28  ;;  %v2351_v63 = vpop.permute.xlu0 %2350 }
 0x8b4   : > { %2676 = vrot.lane.b32.xlu1 %v2623_v3, %s3807_s29 }
 0x8b6   : > { %2376 = vrot.lane.b32.xlu0 %v2311_v46, %s3805_s27  ;;  %v2620_v46 = vsel %vm830_vm15, %v2299_v31, 0 }
 0x8b8   : > { %2680 = vrot.lane.b32.xlu1 %v2625_v43, %s3807_s29 }
 0x8ba   : > { %2364 = vrot.lane.b32.xlu0 %v2293_v61, %s3805_s27 }
 0x8bc   : > { %2668 = vrot.lane.b32.xlu1 %v2619_v62, %s3807_s29 }
 0x8be   : > { %2517 = vrot.lane.b32.xlu0 %v2337_v60, %s3806_s28 }
 0x8c0   : > { %2368 = vrot.lane.b32.xlu1 %v2295_v47, %s3805_s27 }
 0x8c2   : > { %2505 = vrot.lane.b32.xlu0 %v2331_v6, %s3806_s28 }
 0x8c4   : > { %2380 = vrot.lane.b32.xlu1 %v2317_v10, %s3805_s27 }
 0x8c6   : > { %2378 = vrot.lane.b32.xlu0 %v2316_v9, %s3805_s27 }
 0x8c8   : > { %2503 = vrot.lane.b32.xlu1 %v2330_v18, %s3806_s28 }
 0x8ca   : > { %2499 = vrot.lane.b32.xlu0 %v2328_v11, %s3806_s28 }
 0x8cc   : > { %2664 = vrot.lane.b32.xlu1 %v2617_v24, %s3807_s29 }
 0x8ce   : > { %2366 = vrot.lane.b32.xlu0 %v2299_v31, %s3805_s27 }
 0x8d0   : > { %2662 = vrot.lane.b32.xlu1 %v2616_v26, %s3807_s29 }
 0x8d2   : > { %2666 = vrot.lane.b32.xlu0 %v2618_v13, %s3807_s29 }
 0x8d4   : > { %2509 = vrot.lane.b32.xlu1 %v2333_v32, %s3806_s28 }
 0x8d6   : > { %2495 = vrot.lane.b32.xlu0 %v2326_v12, %s3806_s28 }
 0x8d8   : > { %2521 = vrot.lane.b32.xlu1 %v2339_v37, %s3806_s28 }
 0x8da   : > { %2519 = vrot.lane.b32.xlu0 %v2338_v16, %s3806_s28 }
 0x8dc   : > { %2682 = vrot.lane.b32.xlu1 %v2626_v36, %s3807_s29 }
 0x8de   : > { %2684 = vrot.lane.b32.xlu0 %v2627_v2, %s3807_s29 }
 0x8e0   : > { %2497 = vrot.lane.b32.xlu1 %v2327_v14, %s3806_s28 }
 0x8e2   : > { %2507 = vrot.lane.b32.xlu0 %v2332_v30, %s3806_s28 }
 0x8e4   : > { %2670 = vrot.lane.b32.xlu1 %v2620_v46, %s3807_s29 }
 0x8e6   : > { %2672 = vrot.lane.b32.xlu0 %v2621_v48, %s3807_s29 }
 0x8e8   : > { %2660 = vrot.lane.b32.xlu1 %v2615_v49, %s3807_s29 }
 0x8ea   : > { %2658 = vrot.lane.b32.xlu0 %v2614_v51, %s3807_s29 }
 0x8ec   : > { %2493 = vrot.lane.b32.xlu1 %v2325_v57, %s3806_s28 }
 0x8ee   : > { %2491 = vrot.lane.b32.xlu0 %v2324_v50, %s3806_s28 }
 0x8f0   : > { %2656 = vrot.lane.b32.xlu1 %v2613_v40, %s3807_s29 }
 0x8f2   : > { %2654 = vrot.lane.b32.xlu0 %v2612_v54, %s3807_s29 }
 0x8f4   : > { %2789 = vperm.xlu1 %3712, %v3648_v53  }
 0x8f6   : > { %2784 = vperm.xlu0 %3713, %v3647_v55  }
 0x8f8   : > { %2799 = vperm.xlu1 %3712, %v3650_v20   ;;  %v2385_v20 = vsel %vm573_vm0, %v2355_v59, %v2357_v0  ;;  %v2382_v0 = vsel %vm573_vm0, %v4136_v29, %v2351_v63 }
 0x8fa   : > { %2794 = vperm.xlu0 %3713, %v3649_v8  }
 0x906   : > { %v2371_v3 = vpop.permute.xlu1 %2370 }
 0x907   : > { %v5035_v43 = vpop.permute.xlu0 %2511 }
 0x912   : > { %v2359_v61 = vpop.permute.xlu1 %2358 }
 0x914   : > { %v2363_v62 = vpop.permute.xlu0 %2362 }
 0x916   : > { %v5037_v60 = vpop.permute.xlu1 %2674 }
 0x918   : > { %v2375_v56 = vpop.permute.xlu0 %2374 }
 0x91a   : > { %v2373_v47 = vpop.permute.xlu1 %2372 }
 0x91b   : > { %v2391_v30 = vsel %vm573_vm0, %v2373_v47, %v2375_v56  ;;  %v2390_v48 = vsel %vm573_vm0, %v2371_v3, %v2373_v47  ;;  %v2384_v56 = vsel %vm573_vm0, %v4136_v29, %v2355_v59  ;;  %v2383_v47 = vsel %vm573_vm0, %v2351_v63, %v2353_v58 }
 0x91c   : > { %v5039_v6 = vpop.permute.xlu0 %2513 }
 0x91d   : > { %v2531_v63 = vsel %vm718_vm1, %v5035_v43, %v5039_v6 }
 0x91e   : > { %v2361_v10 = vpop.permute.xlu1 %2360 }
 0x91f   : > { %v2387_v40 = vsel %vm573_vm0, %v2361_v10, %v2363_v62  ;;  %v2386_v55 = vsel %vm573_vm0, %v2359_v61, %v2361_v10  ;;  %v3732_v61 = vld [vmem:[%s5521_s3 + $0x40] sm:$0xff]  }
 0x920   : > { %v5041_v9 = vpop.permute.xlu0 %2678 }
 0x922   : > { %v2516_v22 = vpop.permute.xlu1 %2515 }
 0x923   : > { %v2532_v58 = vsel %vm718_vm1, %v5039_v6, %v2516_v22  ;;  %v3733_v6 = vld [vmem:[%s5521_s3 + $0x48] sm:$0xff]  }
 0x924   : > { %v5043_v18 = vpop.permute.xlu0 %2501 }
 0x926   : > { %v5045_v11 = vpop.permute.xlu1 %2676 }
 0x927   : > { %v2695_v22 = vsel %vm909_vm2, %v5045_v11, %v5041_v9  ;;  %v2694_v43 = vsel %vm909_vm2, %v5037_v60, %v5045_v11 }
 0x928   : > { %v2377_v24 = vpop.permute.xlu0 %2376 }
 0x92a   : > { %v2681_v31 = vpop.permute.xlu1 %2680 }
 0x92c   : > { %v2365_v17 = vpop.permute.xlu0 %2364 }
 0x92e   : > { %v5047_v26 = vpop.permute.xlu1 %2668 }
 0x930   : > { %v2518_v13 = vpop.permute.xlu0 %2517 }
 0x932   : > { %v2369_v32 = vpop.permute.xlu1 %2368 }
 0x934   : > { %v2506_v12 = vpop.permute.xlu0 %2505 }
 0x936   : > { %v2381_v37 = vpop.permute.xlu1 %2380 }
 0x938   : > { %v2379_v16 = vpop.permute.xlu0 %2378 }
 0x939   : > { %v2393_v36 = vsel %vm573_vm0, %v2379_v16, %v2381_v37  ;;  %v2392_v2 = vsel %vm573_vm0, %v2377_v24, %v2379_v16 }
 0x93a   : > { %v2504_v14 = vpop.permute.xlu1 %2503  ;;  %2416 = vmatprep.subr.bf16.mxu1 %v2393_v36 }
 0x93b   : > { %2417 = vmatpush1.bf16.msra.mxu1 %v2392_v2  ;;  %v2528_v9 = vsel %vm718_vm1, %v5043_v18, %v2504_v14 }
 0x93c   : > { %2418 = vmatprep.subr.bf16.mxu1 %v2391_v30  ;;  %v2500_v15 = vpop.permute.xlu0 %2499 }
 0x93e   : > { %v5052_v46 = vpop.permute.xlu1 %2664 }
 0x93f   : > { %2419 = vmatpush1.bf16.msra.mxu1 %v2390_v48  ;;  %v2527_v48 = vsel %vm718_vm1, %v2500_v15, %v5043_v18 }
 0x940   : > { %v2367_v49 = vpop.permute.xlu0 %2366 }
 0x941   : > { %v2388_v51 = vsel %vm573_vm0, %v2365_v17, %v2367_v49  ;;  %v2389_v57 = vsel %vm573_vm0, %v2367_v49, %v2369_v32 }
 0x942   : > { %v5057_v50 = vpop.permute.xlu1 %2662  ;;  %2420 = vmatprep.subr.bf16.mxu1 %v2389_v57 }
 0x943   : > { %2421 = vmatpush1.bf16.msra.mxu1 %v2388_v51  ;;  %v2690_v18 = vsel %vm909_vm2, %v5057_v50, %v5052_v46 }
 0x944   : > { %2422 = vmatprep.subr.bf16.mxu1 %v2387_v40  ;;  %v2667_v54 = vpop.permute.xlu0 %2666 }
 0x945   : > { %v2691_v14 = vsel %vm909_vm2, %v5052_v46, %v2667_v54  ;;  %v3734_v46 = vld [vmem:[%s5521_s3 + $0x30] sm:$0xff]  }
 0x946   : > { %v2510_v53 = vpop.permute.xlu1 %2509 }
 0x947   : > { %2423 = vmatpush1.bf16.msra.mxu1 %v2386_v55 }
 0x948   : > { %2424 = vmatprep.subr.bf16.mxu1 %v2385_v20  ;;  %v2496_v8 = vpop.permute.xlu0 %2495 }
 0x94a   : > { %v2522_v3 = vpop.permute.xlu1 %2521 }
 0x94b   : > { %2425 = vmatpush1.bf16.msra.mxu1 %v2384_v56  ;;  %v3735_v56 = vld [vmem:[%s5521_s3 + $0x50] sm:$0xff]  }
 0x94c   : > { %2426 = vmatprep.subr.bf16.mxu1 %v2383_v47  ;;  %v2520_v24 = vpop.permute.xlu0 %2519  ;;  %v3736_v47 = vld [vmem:[%s5521_s3 + $0x38] sm:$0xff]  }
 0x94d   : > { %v2533_v62 = vsel %vm718_vm1, %v2518_v13, %v2520_v24  ;;  %v2534_v17 = vsel %vm718_vm1, %v2520_v24, %v2522_v3  ;;  %v3737_v24 = vld [vmem:[%s5521_s3 + $0x58] sm:$0xff]  }
 0x94e   : > { %v2683_v32 = vpop.permute.xlu1 %2682  ;;  %2557 = vmatprep.subr.bf16.mxu0 %v2534_v17 }
 0x94f   : > { %2427 = vmatpush1.bf16.msra.mxu1 %v2382_v0  ;;  %2558 = vmatpush1.bf16.msra.mxu0 %v2533_v62  ;;  %v2696_v13 = vsel %vm909_vm2, %v2681_v31, %v2683_v32 }
 0x950   : > { %2559 = vmatprep.subr.bf16.mxu0 %v2532_v58  ;;  %v2685_v59 = vpop.permute.xlu0 %2684 }
 0x951   : > { %v2697_v10 = vsel %vm909_vm2, %v2683_v32, %v2685_v59 }
 0x952   : > { %v2498_v37 = vpop.permute.xlu1 %2497  ;;  %3637 = vmatmul.mubr.msk.bf16.vlgmr.msra.gmra.mxu1 %vm477_vm6, %v3732_v61  ;;  %2720 = vmatprep.subr.bf16.mxu1 %v2697_v10 }
 0x953   : > { %2560 = vmatpush1.bf16.msra.mxu0 %v2531_v63  ;;  %2721 = vmatpush1.bf16.msra.mxu1 %v2696_v13  ;;  %v2526_v11 = vsel %vm718_vm1, %v2496_v8, %v2498_v37 }
 0x954   : > { %2722 = vmatprep.subr.bf16.mxu1 %v2695_v22  ;;  %v2508_v16 = vpop.permute.xlu0 %2507  ;;  %2454 = vmatprep.mubr.bf16.mxu1 %v3800_v1 }
 0x955   : > { %v2529_v31 = vsel %vm718_vm1, %v2506_v12, %v2508_v16  ;;  %v2530_v36 = vsel %vm718_vm1, %v2508_v16, %v2510_v53 }
 0x956   : > { %v2671_v2 = vpop.permute.xlu1 %2670  ;;  %2561 = vmatprep.subr.bf16.mxu0 %v2530_v36 }
 0x957   : > { %2562 = vmatpush1.bf16.msra.mxu0 %v2529_v31  ;;  %2723 = vmatpush1.bf16.msra.mxu1 %v2694_v43  ;;  %v2692_v49 = vsel %vm909_vm2, %v5047_v26, %v2671_v2  ;;  %v2525_v26 = vsel %vm718_vm1, %v4140_v34, %v2496_v8 }
 0x958   : > { %2563 = vmatprep.subr.bf16.mxu0 %v2528_v9  ;;  %v2673_v30 = vpop.permute.xlu0 %2672 }
 0x959   : > { %v2693_v12 = vsel %vm909_vm2, %v2671_v2, %v2673_v30 }
 0x95a   : > { %v2661_v60 = vpop.permute.xlu1 %2660  ;;  %2724 = vmatprep.subr.bf16.mxu1 %v2693_v12  ;;  %3638 = vmatmul.mubr.msk.bf16.gmra.mxu1 %vm477_vm6, %v3733_v6 }
 0x95b   : > { %2564 = vmatpush1.bf16.msra.mxu0 %v2527_v48  ;;  %2725 = vmatpush1.bf16.msra.mxu1 %v2692_v49 }
 0x95c   : > { %2565 = vmatprep.subr.bf16.mxu0 %v2526_v11  ;;  %2726 = vmatprep.subr.bf16.mxu1 %v2691_v14  ;;  %v2659_v51 = vpop.permute.xlu0 %2658 }
 0x95d   : > { %2748 = vmatprep.mubr.bf16.mxu1 %v3800_v1  ;;  %v2689_v57 = vsel %vm909_vm2, %v2659_v51, %v2661_v60  ;;  %v2688_v55 = vsel %vm909_vm2, %v4138_v33, %v2659_v51 }
 0x95e   : > { %v2494_v15 = vpop.permute.xlu1 %2493 }
 0x95f   : > { %2566 = vmatpush1.bf16.msra.mxu0 %v2525_v26  ;;  %2727 = vmatpush1.bf16.msra.mxu1 %v2690_v18 }
 0x960   : > { %2728 = vmatprep.subr.bf16.mxu1 %v2689_v57  ;;  %v2492_v40 = vpop.permute.xlu0 %2491 }
 0x961   : > { %v2523_v54 = vsel %vm718_vm1, %v4140_v34, %v2492_v40  ;;  %v2524_v53 = vsel %vm718_vm1, %v2492_v40, %v2494_v15 }
 0x962   : > { %2567 = vmatprep.subr.bf16.mxu0 %v2524_v53  ;;  %v2657_v50 = vpop.permute.xlu1 %2656 }
 0x963   : > { %2568 = vmatpush1.bf16.msra.mxu0 %v2523_v54  ;;  %2729 = vmatpush1.bf16.msra.mxu1 %v2688_v55 }
 0x964   : > { %v2655_v20 = vpop.permute.xlu0 %2654 }
 0x965   : > { %v2686_v8 = vsel %vm909_vm2, %v4138_v33, %v2655_v20  ;;  %v2687_v3 = vsel %vm909_vm2, %v2655_v20, %v2657_v50 }
 0x966   : > { %3641 = vmatmul.mubr.msk.bf16.vlgmr.msra.gmra.mxu0 %vm477_vm6, %v3734_v46  ;;  %2730 = vmatprep.subr.bf16.mxu1 %v2687_v3 }
 0x967   : > { %2731 = vmatpush1.bf16.msra.mxu1 %v2686_v8  ;;  %2595 = vmatprep.mubr.bf16.mxu0 %v3800_v1 }
 0x96a   : > { %3645 = vmatmul.mubr.msk.bf16.vlgmr.msra.gmra.mxu1 %vm477_vm6, %v3735_v56 }
 0x96b   : > { %2758 = vmatprep.mubr.bf16.mxu1 %v3800_v1 }
 0x96e   : > { %3642 = vmatmul.mubr.msk.bf16.gmra.mxu0 %vm477_vm6, %v3736_v47 }
 0x96f   : > { %3122 = vmatprep.mubr.bf16.mxu0 %v3800_v1  ;;  %v2790_v26 = vpop.permute.xlu1 %2789 }
 0x971   : > { %v2785_v6 = vpop.permute.xlu0 %2784 }
 0x972   : > { %3646 = vmatmul.mubr.msk.bf16.gmra.mxu1 %vm477_vm6, %v3737_v24 }
 0x973   : > { %3263 = vmatprep.mubr.bf16.mxu1 %v3800_v1 }
 0xa12   : > { %v2446_v62 = vpop.f32.mrf.mxu1 }
 0xa14   : > { %v2448_v17 = vpop.f32.mrf.mxu1 }
 0xa16   : > { %v2450_v32 = vpop.f32.mrf.mxu1 }
 0xa18   : > { %v2452_v0 = vpop.f32.mrf.mxu1 }
 0xa1a   : > { %v2456_v61 = vpop.f32.mrf.mxu1 }
 0xa1c   : > { %v2458_v58 = vpop.f32.mrf.mxu1 }
 0xa1e   : > { %v2460_v59 = vpop.f32.mrf.mxu1 }
 0xa20   : > { %v2462_v13 = vpop.f32.mrf.mxu1 }
 0xa26   : > { %v2587_v10 = vpop.f32.mrf.mxu0 }
 0xa27   : > { %v2588_v63 = vadd.f32 %v2587_v10, %v2446_v62  ;;  %v2795_v62 = vpop.permute.xlu0 %2794 }
 0xa28   : > { %v2589_v37 = vpop.f32.mrf.mxu0 }
 0xa29   : > { %v2590_v31 = vadd.f32 %v2589_v37, %v2448_v17 }
 0xa2a   : > { %v2591_v22 = vpop.f32.mrf.mxu0  ;;  %v2750_v16 = vpop.f32.mrf.mxu1 }
 0xa2b   : > { %v2769_v36 = vadd.f32 %v2750_v16, %v2588_v63  ;;  %v2592_v9 = vadd.f32 %v2591_v22, %v2450_v32  ;;  %v2800_v22 = vpop.permute.xlu1 %2799 }
 0xa2c   : > { %v2593_v2 = vpop.f32.mrf.mxu0  ;;  %v2752_v43 = vpop.f32.mrf.mxu1 }
 0xa2d   : > { %v2770_v30 = vadd.f32 %v2752_v43, %v2590_v31  ;;  %v5138_v49 = vadd.f32 %v2785_v6, %v2769_v36  ;;  %v2594_v60 = vadd.f32 %v2593_v2, %v2452_v0  ;;  %v3652_v36 = vld [vmem:[%s5523_s5 + $0x28] sm:$0xff] }
 0xa2e   : > { %v2597_v12 = vpop.f32.mrf.mxu0  ;;  %v2754_v48 = vpop.f32.mrf.mxu1 }
 0xa2f   : > { %v5140_v11 = vadd.f32 %v2785_v6, %v2770_v30  ;;  %v2771_v14 = vadd.f32 %v2754_v48, %v2592_v9  ;;  %v2598_v15 = vadd.f32 %v2597_v12, %v2456_v61  ;;  %v3651_v9 = vld [vmem:[%s5523_s5 + $0x20] sm:$0xff]  ;;  %v3653_v12 = vld [vmem:[%s5523_s5 + $0x30] sm:$0xff] }
 0xa30   : > { %v2599_v51 = vpop.f32.mrf.mxu0  ;;  %v2756_v18 = vpop.f32.mrf.mxu1 }
 0xa31   : > { %v2772_v57 = vadd.f32 %v2756_v18, %v2594_v60  ;;  %v2810_v40 = vadd.f32 %v5140_v11, %v5138_v49  ;;  %v5144_v55 = vadd.f32 %v2790_v26, %v2771_v14  ;;  %v2600_v46 = vadd.f32 %v2599_v51, %v2458_v58 }
 0xa32   : > { %v2601_v54 = vpop.f32.mrf.mxu0  ;;  %v2760_v53 = vpop.f32.mrf.mxu1 }
 0xa33   : > { %v5146_v50 = vadd.f32 %v2790_v26, %v2772_v57  ;;  %v2773_v20 = vadd.f32 %v2760_v53, %v2598_v15  ;;  %2811 = vadd.xlane.f32.xlu0 %v2810_v40  ;;  %v2602_v56 = vadd.f32 %v2601_v54, %v2460_v59  ;;  %v3654_v26 = vld [vmem:[%s5523_s5 + $0x38] sm:$0xff] }
 0xa34   : > { %v2603_v8 = vpop.f32.mrf.mxu0  ;;  %v2762_v3 = vpop.f32.mrf.mxu1 }
 0xa35   : > { %v2774_v47 = vadd.f32 %v2762_v3, %v2600_v46  ;;  %v2813_v24 = vadd.f32 %v5146_v50, %v5144_v55  ;;  %v5150_v32 = vadd.f32 %v2795_v62, %v2773_v20  ;;  %v2604_v0 = vadd.f32 %v2603_v8, %v2462_v13 }
 0xa36   : > { %v2764_v17 = vpop.f32.mrf.mxu1 }
 0xa37   : > { %v5152_v61 = vadd.f32 %v2795_v62, %v2774_v47  ;;  %v2775_v10 = vadd.f32 %v2764_v17, %v2602_v56  ;;  %2814 = vadd.xlane.f32.xlu1 %v2813_v24 }
 0xa38   : > { %v2766_v58 = vpop.f32.mrf.mxu1 }
 0xa39   : > { %v2776_v37 = vadd.f32 %v2766_v58, %v2604_v0  ;;  %v2816_v63 = vadd.f32 %v5152_v61, %v5150_v32  ;;  %v5156_v59 = vadd.f32 %v2800_v22, %v2775_v10  ;;  %v3655_v0 = vld [vmem:[%s5524_s6 + $0x1] sm:$0x1] }
 0xa3b   : > { %v5158_v16 = vadd.f32 %v2800_v22, %v2776_v37  ;;  %2817 = vadd.xlane.f32.xlu0 %v2816_v63  ;;  %v3659_v63 = vld [vmem:[%s5525_s7 + $0x38] sm:$0xff]  ;;  %v3658_v22 = vld [vmem:[%s5525_s7 + $0x30] sm:$0xff] }
 0xa3d   : > { %v2819_v31 = vadd.f32 %v5158_v16, %v5156_v59 }
 0xa3f   : > { %2820 = vadd.xlane.f32.xlu0 %v2819_v31 }
 0xabc   : > { %v2812_v13 = vpop.xlane.xlu0 %2811 }
 0xabd   : > { %v2822_v43 = vmul.f32 0.00390625, %v2812_v13  ;;  %v3657_v13 = vld [vmem:[%s5525_s7 + $0x28] sm:$0xff] }
 0xabf   : > { %v2831_v60 = vmul.f32 %v3651_v9, %v2822_v43 }
 0xac0   : > { %v2815_v2 = vpop.xlane.xlu1 %2814 }
 0xac1   : > { %v2823_v6 = vmul.f32 0.00390625, %v2815_v2  ;;  %v2835_v57 = vsel %vm1607_vm3, %v2831_v60, 0.0  ;;  %v3663_v60 = vld [vmem:[%s5526_s8 + $0x38] sm:$0xff] }
 0xac3   : > { %v2832_v30 = vmul.f32 %v3652_v36, %v2823_v6  ;;  %v3656_v36 = vld [vmem:[%s5525_s7 + $0x20] sm:$0xff] }
 0xac4   : > { %v2818_v48 = vpop.xlane.xlu0 %2817 }
 0xac5   : > { %v2824_v14 = vmul.f32 0.00390625, %v2818_v48  ;;  %v2836_v51 = vsel %vm1607_vm3, %v2832_v30, 0.0 }
 0xac6   : > { %v2837_v53 = vadd.f32 %v2836_v51, %v2835_v57  ;;  %v3661_v57 = vld [vmem:[%s5526_s8 + $0x28] sm:$0xff] }
 0xac7   : > { %v2833_v18 = vmul.f32 %v3653_v12, %v2824_v14  ;;  %v3662_v14 = vld [vmem:[%s5526_s8 + $0x30] sm:$0xff] }
 0xac8   : > { %v2821_v15 = vpop.xlane.xlu0 %2820 }
 0xac9   : > { %v2838_v40 = vsel %vm1607_vm3, %v2833_v18, 0.0  ;;  %v2825_v54 = vmul.f32 0.00390625, %v2821_v15 }
 0xaca   : > { %v2839_v20 = vadd.f32 %v2838_v40, %v2837_v53  ;;  %v3660_v40 = vld [vmem:[%s5526_s8 + $0x20] sm:$0xff] }
 0xacb   : > { %v2834_v46 = vmul.f32 %v3654_v26, %v2825_v54 }
 0xacd   : > { %v2840_v8 = vsel %vm1607_vm3, %v2834_v46, 0.0 }
 0xace   : > { %v2841_v3 = vadd.f32 %v2840_v8, %v2839_v20 }
 0xad0   : > { %v2842_v56 = vrot.slane %v2841_v3, 4 }
 0xad2   : > { %v2843_v47 = vadd.f32 %v2842_v56, %v2841_v3 }
 0xad4   : > { %v2844_v24 = vrot.slane %v2843_v47, 2 }
 0xad6   : > { %v2845_v62 = vadd.f32 %v2844_v24, %v2843_v47 }
 0xad8   : > { %v2846_v17 = vrot.slane %v2845_v62, 1 }
 0xada   : > { %v2847_v10 = vadd.f32 %v2846_v17, %v2845_v62 }
 0xadc   : > { %v2850_v58 = vadd.f32 %v3655_v0, %v2847_v10 }
 0xade   : > { %v2851_v37 = vmax.f32 %v2850_v58, 0.0 }
 0xae0   : > { %v2860_v31 = vrot.slane %v2851_v37, %v3912_v19 }
 0xae2   : > { %v2864_v2 = vmul.f32 %v3659_v63, %v2860_v31  ;;  %v2863_v43 = vmul.f32 %v3658_v22, %v2860_v31  ;;  %v2862_v30 = vmul.f32 %v3657_v13, %v2860_v31  ;;  %v2861_v12 = vmul.f32 %v3656_v36, %v2860_v31 }
 0xae4   : > { %v2874_v6 = vsel %vm1607_vm3, %v2864_v2, 0.0  ;;  %v2871_v9 = vsel %vm1607_vm3, %v2863_v43, 0.0  ;;  %v2868_v19 = vsel %vm1607_vm3, %v2862_v30, 0.0  ;;  %v2865_v48 = vsel %vm1607_vm3, %v2861_v12, 0.0 }
 0xae5   : > { %2875 = vadd.xlane.f32.xlu0 %v2874_v6  ;;  %2872 = vadd.xlane.f32.xlu1 %v2871_v9 }
 0xae9   : > { %2869 = vadd.xlane.f32.xlu0 %v2868_v19  ;;  %2866 = vadd.xlane.f32.xlu1 %v2865_v48 }
 0xb6e   : > { %v2876_v51 = vpop.xlane.xlu0 %2875  ;;  %v2873_v18 = vpop.xlane.xlu1 %2872 }
 0xb6f   : > { %v2885_v26 = vadd.f32 %v3663_v60, %v2876_v51  ;;  %v2884_v15 = vadd.f32 %v3662_v14, %v2873_v18 }
 0xb71   : > { %v3667_v54 = vmul.f32 -1.442695, %v2885_v26  ;;  %v3666_v53 = vmul.f32 -1.442695, %v2884_v15 }
 0xb72   : > { %v2870_v46 = vpop.xlane.xlu0 %2869  ;;  %v2867_v20 = vpop.xlane.xlu1 %2866 }
 0xb73   : > { %3760 = vpow2.f32 %v3667_v54  ;;  %v2883_v8 = vadd.f32 %v3661_v57, %v2870_v46  ;;  %v2882_v3 = vadd.f32 %v3660_v40, %v2867_v20 }
 0xb74   : > { %3762 = vpow2.f32 %v3666_v53 }
 0xb75   : > { %v3665_v56 = vmul.f32 -1.442695, %v2883_v8  ;;  %v3664_v47 = vmul.f32 -1.442695, %v2882_v3 }
 0xb77   : > { %3764 = vpow2.f32 %v3665_v56 }
 0xb78   : > { %3766 = vpow2.f32 %v3664_v47 }
 0xb80   : > { %v3761_v24 = vpop.eup %3760 }
 0xb81   : > { %v3763_v62 = vpop.eup %3762  ;;  %v2901_v17 = vadd.f32 1.0, %v3761_v24 }
 0xb82   : > { %v2900_v0 = vadd.f32 1.0, %v3763_v62 }
 0xb83   : > { %3768 = vrcp.f32 %v2901_v17 }
 0xb84   : > { %v3765_v10 = vpop.eup %3764  ;;  %3770 = vrcp.f32 %v2900_v0 }
 0xb85   : > { %v3767_v58 = vpop.eup %3766  ;;  %v2899_v63 = vadd.f32 1.0, %v3765_v10 }
 0xb86   : > { %v2898_v37 = vadd.f32 1.0, %v3767_v58 }
 0xb88   : > { %3772 = vrcp.f32 %v2898_v37 }
 0xb89   : > { %3774 = vrcp.f32 %v2899_v63 }
 0xb90   : > { %v3769_v22 = vpop.eup %3768 }
 0xb91   : > { %v3771_v31 = vpop.eup %3770  ;;  %2927 = vperm.xlu0 %3713, %v3769_v22  }
 0xb92   : > { %2922 = vperm.xlu1 %3712, %v3771_v31  }
 0xb95   : > { %v3773_v13 = vpop.eup %3772 }
 0xb96   : > { %2912 = vperm.xlu1 %3712, %v3773_v13   ;;  %v3775_v36 = vpop.eup %3774 }
 0xb9a   : > { %2917 = vperm.xlu1 %3712, %v3775_v36  }
 0xc0c   : > { %v2928_v2 = vpop.permute.xlu0 %2927 }
 0xc0d   : > { %v2936_v43 = vmul.f32 %v2928_v2, %v5156_v59  ;;  %v2937_v6 = vmul.f32 %v2928_v2, %v5158_v16  ;;  %v2923_v9 = vpop.permute.xlu1 %2922 }
 0xc0e   : > { %v2934_v30 = vmul.f32 %v2923_v9, %v5150_v32  ;;  %v2935_v12 = vmul.f32 %v2923_v9, %v5152_v61 }
 0xc0f   : > { %v2944_v19 = vadd.f32 %v2936_v43, %v4570_v21  ;;  %v2945_v48 = vadd.f32 %v2937_v6, %v4573_v23 }
 0xc10   : > { %v2942_v60 = vadd.f32 %v2934_v30, %v4576_v25  ;;  %v2943_v14 = vadd.f32 %v2935_v12, %v4579_v28 }
 0xc11   : > { %v2913_v51 = vpop.permute.xlu1 %2912 }
 0xc12   : > { %v5218_v18 = vpack.c.bf16 %v2944_v19, %v2942_v60  ;;  %v5220_v26 = vpack.c.bf16 %v2945_v48, %v2943_v14  ;;  %v2930_v59 = vmul.f32 %v2913_v51, %v5138_v49  ;;  %v2931_v16 = vmul.f32 %v2913_v51, %v5140_v11 }
 0xc14   : > { %2990 = vrot.lane.b32.xlu1 %v5220_v26, %s3801_s19  ;;  %2988 = vrot.lane.b32.xlu0 %v5218_v18, %s3801_s19  ;;  %v2938_v28 = vadd.f32 %v2930_v59, %v4592_v5  ;;  %v2939_v32 = vadd.f32 %v2931_v16, %v4595_v35  ;;  %v3005_v5 = vsel %vm511_vm8, %v5220_v26, 0  ;;  %v3004_v35 = vsel %vm510_vm14, %v5218_v18, 0 }
 0xc15   : > { %v2918_v21 = vpop.permute.xlu1 %2917  ;;  %v3292_v59 = vsel %vm830_vm15, %v5218_v18, 0 }
 0xc16   : > { %v2932_v23 = vmul.f32 %v2918_v21, %v5144_v55  ;;  %v2933_v25 = vmul.f32 %v2918_v21, %v5146_v50 }
 0xc18   : > { %v2940_v61 = vadd.f32 %v2932_v23, %v4598_v41  ;;  %v2941_v49 = vadd.f32 %v2933_v25, %v4601_v42 }
 0xc1a   : > { %v5234_v11 = vpack.c.bf16 %v2940_v61, %v2938_v28  ;;  %v5236_v15 = vpack.c.bf16 %v2941_v49, %v2939_v32  ;;  %v3456_v28 = vld [vmem:[%s5528_s10 + $0x8] sm:$0xff] }
 0xc1c   : > { %2986 = vrot.lane.b32.xlu1 %v5236_v15, %s3801_s19  ;;  %2984 = vrot.lane.b32.xlu0 %v5234_v11, %s3801_s19  ;;  %v3003_v41 = vsel %vm511_vm8, %v5236_v15, 0  ;;  %v3002_v42 = vsel %vm510_vm14, %v5234_v11, 0  ;;  %v3290_v21 = vsel %vm830_vm15, %v5234_v11, 0  ;;  %v3291_v25 = vsel %vm831_vm10, %v5236_v15, 0 }
 0xc20   : > { %2972 = vrot.lane.b32.xlu1 %v5220_v26, %s3802_s24  ;;  %2970 = vrot.lane.b32.xlu0 %v5218_v18, %s3802_s24 }
 0xc24   : > { %2968 = vrot.lane.b32.xlu1 %v5236_v15, %s3802_s24  ;;  %2966 = vrot.lane.b32.xlu0 %v5234_v11, %s3802_s24 }
 0xc28   : > { %3034 = vrot.lane.b32.xlu1 %v5220_v26, %s3805_s27  ;;  %3032 = vrot.lane.b32.xlu0 %v5218_v18, %s3805_s27  ;;  %v3293_v18 = vsel %vm831_vm10, %v5220_v26, 0  ;;  %v3458_v26 = vld [vmem:[%s5528_s10 + $0x18] sm:$0xff] }
 0xc2c   : > { %3030 = vrot.lane.b32.xlu1 %v5236_v15, %s3805_s27  ;;  %3028 = vrot.lane.b32.xlu0 %v5234_v11, %s3805_s27 }
 0xc30   : > { %3175 = vrot.lane.b32.xlu1 %v3005_v5, %s3806_s28  ;;  %3173 = vrot.lane.b32.xlu0 %v3004_v35, %s3806_s28 }
 0xc34   : > { %3171 = vrot.lane.b32.xlu1 %v3003_v41, %s3806_s28  ;;  %3169 = vrot.lane.b32.xlu0 %v3002_v42, %s3806_s28 }
 0xc86   : > { %v2989_v55 = vpop.permute.xlu0 %2988  ;;  %v2991_v50 = vpop.permute.xlu1 %2990 }
 0xc87   : > { %3054 = vrot.lane.b32.xlu0 %v2989_v55, %s3805_s27  ;;  %v2994_v8 = vsel %vm477_vm6, %v2989_v55, %v2991_v50  ;;  %v2995_v3 = vsel %vm477_vm6, %v2991_v50, %v3946_v27  ;;  %v3015_v47 = vsel %vm512_vm9, %v2989_v55, 0  ;;  %v3303_v2 = vsel %vm832_vm11, %v2989_v55, 0 }
 0xc88   : > { %v3016_v10 = vsel %vm510_vm14, %v2994_v8, 0  ;;  %v3017_v22 = vsel %vm511_vm8, %v2995_v3, 0  ;;  %v3304_v9 = vsel %vm830_vm15, %v2994_v8, 0  ;;  %v3305_v48 = vsel %vm831_vm10, %v2995_v3, 0 }
 0xc8e   : > { %v2985_v57 = vpop.permute.xlu0 %2984  ;;  %v2987_v40 = vpop.permute.xlu1 %2986 }
 0xc8f   : > { %3048 = vrot.lane.b32.xlu0 %v2985_v57, %s3805_s27  ;;  %v2992_v56 = vsel %vm477_vm6, %v2985_v57, %v2987_v40  ;;  %v2993_v24 = vsel %vm477_vm6, %v2987_v40, %v3946_v27  ;;  %v3012_v0 = vsel %vm512_vm9, %v2985_v57, 0  ;;  %v3300_v30 = vsel %vm832_vm11, %v2985_v57, 0 }
 0xc90   : > { %v3013_v58 = vsel %vm510_vm14, %v2992_v56, 0  ;;  %v3014_v13 = vsel %vm511_vm8, %v2993_v24, 0  ;;  %v3302_v12 = vsel %vm831_vm10, %v2993_v24, 0  ;;  %v3301_v14 = vsel %vm830_vm15, %v2992_v56, 0 }
 0xc92   : > { %v2971_v54 = vpop.permute.xlu0 %2970  ;;  %v5276_v53 = vpop.permute.xlu1 %2972 }
 0xc93   : > { %3042 = vrot.lane.b32.xlu0 %v2971_v54, %s3805_s27  ;;  %3046 = vrot.lane.b32.xlu1 %v5276_v53, %s3805_s27  ;;  %v2977_v62 = vsel %vm456_vm7, %v2971_v54, %v5276_v53  ;;  %v3011_v27 = vsel %vm511_vm8, %v5276_v53, 0  ;;  %v2976_v36 = vsel %vm456_vm7, %v4010_v52, %v2971_v54  ;;  %v3297_v4 = vsel %vm832_vm11, %v2971_v54, 0 }
 0xc94   : > { %v3010_v63 = vsel %vm510_vm14, %v2977_v62, 0  ;;  %v3009_v43 = vsel %vm512_vm9, %v2976_v36, 0  ;;  %v3298_v19 = vsel %vm830_vm15, %v2977_v62, 0  ;;  %v3285_v51 = vsel %vm456_vm7, %v5276_v53, %v4010_v52 }
 0xc95   : > { %v3299_v16 = vsel %vm831_vm10, %v3285_v51, 0 }
 0xc96   : > { %v2967_v46 = vpop.permute.xlu0 %2966  ;;  %v2969_v20 = vpop.permute.xlu1 %2968 }
 0xc97   : > { %3036 = vrot.lane.b32.xlu0 %v2967_v46, %s3805_s27  ;;  %3040 = vrot.lane.b32.xlu1 %v2969_v20, %s3805_s27  ;;  %v2975_v17 = vsel %vm456_vm7, %v2967_v46, %v2969_v20  ;;  %v3008_v37 = vsel %vm511_vm8, %v2969_v20, 0  ;;  %v2974_v38 = vsel %vm456_vm7, %v4010_v52, %v2967_v46  ;;  %v3294_v39 = vsel %vm832_vm11, %v2967_v46, 0 }
 0xc98   : > { %v3007_v31 = vsel %vm510_vm14, %v2975_v17, 0  ;;  %v3006_v6 = vsel %vm512_vm9, %v2974_v38, 0  ;;  %v3284_v60 = vsel %vm456_vm7, %v2969_v20, %v4010_v52  ;;  %v3295_v23 = vsel %vm830_vm15, %v2975_v17, 0  ;;  %v3455_v52 = vld [vmem:[%s5528_s10] sm:$0xff] }
 0xc99   : > { %v3296_v45 = vsel %vm831_vm10, %v3284_v60, 0 }
 0xc9a   : > { %v3033_v32 = vpop.permute.xlu0 %3032  ;;  %v3035_v49 = vpop.permute.xlu1 %3034 }
 0xc9b   : > { %3056 = vrot.lane.b32.xlu0 %v2994_v8, %s3805_s27  ;;  %3058 = vrot.lane.b32.xlu1 %v2995_v3, %s3805_s27 }
 0xc9e   : > { %v3029_v61 = vpop.permute.xlu0 %3028  ;;  %v3031_v44 = vpop.permute.xlu1 %3030 }
 0xc9f   : > { %3050 = vrot.lane.b32.xlu0 %v2992_v56, %s3805_s27  ;;  %3195 = vrot.lane.b32.xlu1 %v3015_v47, %s3806_s28 }
 0xca2   : > { %v5408_v11 = vpop.permute.xlu0 %3173  ;;  %v5412_v5 = vpop.permute.xlu1 %3175 }
 0xca3   : > { %3044 = vrot.lane.b32.xlu0 %v2977_v62, %s3805_s27  ;;  %3052 = vrot.lane.b32.xlu1 %v2993_v24, %s3805_s27 }
 0xca6   : > { %v5410_v15 = vpop.permute.xlu0 %3169  ;;  %v5414_v41 = vpop.permute.xlu1 %3171 }
 0xca7   : > { %3038 = vrot.lane.b32.xlu0 %v2975_v17, %s3805_s27  ;;  %3189 = vrot.lane.b32.xlu1 %v3012_v0, %s3806_s28 }
 0xcab   : > { %3197 = vrot.lane.b32.xlu0 %v3016_v10, %s3806_s28  ;;  %3187 = vrot.lane.b32.xlu1 %v3011_v27, %s3806_s28 }
 0xcaf   : > { %3191 = vrot.lane.b32.xlu0 %v3013_v58, %s3806_s28  ;;  %3181 = vrot.lane.b32.xlu1 %v3008_v37, %s3806_s28 }
 0xcb3   : > { %3185 = vrot.lane.b32.xlu0 %v3010_v63, %s3806_s28  ;;  %3199 = vrot.lane.b32.xlu1 %v3017_v22, %s3806_s28 }
 0xcb7   : > { %3179 = vrot.lane.b32.xlu0 %v3007_v31, %s3806_s28  ;;  %3193 = vrot.lane.b32.xlu1 %v3014_v13, %s3806_s28  ;;  %v3063_v31 = vsel %vm573_vm0, %v3033_v32, %v3035_v49  ;;  %v3201_v49 = vsel %vm718_vm1, %v4140_v34, %v5410_v15 }
 0xcbb   : > { %3358 = vrot.lane.b32.xlu0 %v3303_v2, %s3807_s29  ;;  %3183 = vrot.lane.b32.xlu1 %v3009_v43, %s3806_s28  ;;  %v3062_v2 = vsel %vm573_vm0, %v4136_v29, %v3033_v32  ;;  %v3061_v43 = vsel %vm573_vm0, %v3029_v61, %v3031_v44  ;;  %v3739_v44 = vld [vmem:[%s5527_s9] sm:$0xff]  }
 0xcbf   : > { %3346 = vrot.lane.b32.xlu0 %v3297_v4, %s3807_s29  ;;  %3177 = vrot.lane.b32.xlu1 %v3006_v6, %s3806_s28 }
 0xcc3   : > { %3360 = vrot.lane.b32.xlu0 %v3304_v9, %s3807_s29  ;;  %3352 = vrot.lane.b32.xlu1 %v3300_v30, %s3807_s29  ;;  %v3060_v9 = vsel %vm573_vm0, %v4136_v29, %v3029_v61 }
 0xcc7   : > { %3356 = vrot.lane.b32.xlu0 %v3302_v12, %s3807_s29  ;;  %3340 = vrot.lane.b32.xlu1 %v3294_v39, %s3807_s29  ;;  %v3738_v12 = vld [vmem:[%s5527_s9 + $0x10] sm:$0xff]  }
 0xccb   : > { %3348 = vrot.lane.b32.xlu0 %v3298_v19, %s3807_s29  ;;  %3362 = vrot.lane.b32.xlu1 %v3305_v48, %s3807_s29 }
 0xccf   : > { %3344 = vrot.lane.b32.xlu0 %v3296_v45, %s3807_s29  ;;  %3354 = vrot.lane.b32.xlu1 %v3301_v14, %s3807_s29 }
 0xcd3   : > { %3336 = vrot.lane.b32.xlu0 %v3292_v59, %s3807_s29  ;;  %3350 = vrot.lane.b32.xlu1 %v3299_v16, %s3807_s29  ;;  %v3740_v59 = vld [vmem:[%s5527_s9 + $0x18] sm:$0xff]  }
 0xcd7   : > { %3332 = vrot.lane.b32.xlu0 %v3290_v21, %s3807_s29  ;;  %3342 = vrot.lane.b32.xlu1 %v3295_v23, %s3807_s29 }
 0xcdb   : > { %3461 = vperm.xlu0 %3713, %v3455_v52   ;;  %3338 = vrot.lane.b32.xlu1 %v3293_v18, %s3807_s29  ;;  %v3204_v18 = vsel %vm718_vm1, %v5408_v11, %v5412_v5 }
 0xcdf   : > { %3471 = vperm.xlu0 %3713, %v3457_v7   ;;  %3334 = vrot.lane.b32.xlu1 %v3291_v25, %s3807_s29 }
 0xce3   : > { %3466 = vperm.xlu1 %3712, %v3456_v28   ;;  %v3203_v28 = vsel %vm718_vm1, %v4140_v34, %v5408_v11 }
 0xce7   : > { %3476 = vperm.xlu1 %3712, %v3458_v26   ;;  %v3202_v26 = vsel %vm718_vm1, %v5410_v15, %v5414_v41 }
 0xcf9   : > { %v3055_v35 = vpop.permute.xlu0 %3054 }
 0xd01   : > { %v3049_v42 = vpop.permute.xlu0 %3048 }
 0xd05   : > { %v3043_v55 = vpop.permute.xlu0 %3042  ;;  %v3047_v50 = vpop.permute.xlu1 %3046 }
 0xd09   : > { %v3037_v57 = vpop.permute.xlu0 %3036  ;;  %v3041_v40 = vpop.permute.xlu1 %3040 }
 0xd0d   : > { %v3057_v54 = vpop.permute.xlu0 %3056  ;;  %v3059_v53 = vpop.permute.xlu1 %3058 }
 0xd0e   : > { %v3070_v46 = vsel %vm573_vm0, %v3055_v35, %v3057_v54  ;;  %v3071_v20 = vsel %vm573_vm0, %v3057_v54, %v3059_v53 }
 0xd0f   : > { %3094 = vmatprep.subr.bf16.mxu0 %v3071_v20 }
 0xd10   : > { %3095 = vmatpush1.bf16.msra.mxu0 %v3070_v46 }
 0xd11   : > { %v3051_v8 = vpop.permute.xlu0 %3050  ;;  %v3196_v3 = vpop.permute.xlu1 %3195 }
 0xd12   : > { %v3068_v62 = vsel %vm573_vm0, %v3049_v42, %v3051_v8 }
 0xd15   : > { %v3045_v56 = vpop.permute.xlu0 %3044  ;;  %v3053_v47 = vpop.permute.xlu1 %3052 }
 0xd16   : > { %v3069_v24 = vsel %vm573_vm0, %v3051_v8, %v3053_v47  ;;  %v3067_v17 = vsel %vm573_vm0, %v3045_v56, %v3047_v50  ;;  %v3066_v27 = vsel %vm573_vm0, %v3043_v55, %v3045_v56  ;;  %v3741_v50 = vld [vmem:[%s5527_s9 + $0x8] sm:$0xff]  }
 0xd17   : > { %3096 = vmatprep.subr.bf16.mxu0 %v3069_v24 }
 0xd18   : > { %3097 = vmatpush1.bf16.msra.mxu0 %v3068_v62 }
 0xd19   : > { %v3039_v0 = vpop.permute.xlu0 %3038  ;;  %3098 = vmatprep.subr.bf16.mxu0 %v3067_v17  ;;  %v3190_v10 = vpop.permute.xlu1 %3189 }
 0xd1a   : > { %v3065_v58 = vsel %vm573_vm0, %v3039_v0, %v3041_v40  ;;  %v3064_v22 = vsel %vm573_vm0, %v3037_v57, %v3039_v0  ;;  %v3742_v0 = vld [vmem:[%s5527_s9 + $0x20] sm:$0xff]  }
 0xd1c   : > { %3099 = vmatpush1.bf16.msra.mxu0 %v3066_v27 }
 0xd1d   : > { %v3198_v37 = vpop.permute.xlu0 %3197  ;;  %3100 = vmatprep.subr.bf16.mxu0 %v3065_v58  ;;  %v3188_v63 = vpop.permute.xlu1 %3187 }
 0xd1e   : > { %v3211_v30 = vsel %vm718_vm1, %v3196_v3, %v3198_v37 }
 0xd20   : > { %3101 = vmatpush1.bf16.msra.mxu0 %v3064_v22 }
 0xd21   : > { %v3192_v13 = vpop.permute.xlu0 %3191  ;;  %3102 = vmatprep.subr.bf16.mxu0 %v3063_v31  ;;  %v3182_v36 = vpop.permute.xlu1 %3181 }
 0xd22   : > { %v3209_v60 = vsel %vm718_vm1, %v3190_v10, %v3192_v13  ;;  %v3743_v10 = vld [vmem:[%s5527_s9 + $0x28] sm:$0xff]  }
 0xd24   : > { %3103 = vmatpush1.bf16.msra.mxu0 %v3062_v2 }
 0xd25   : > { %v3186_v38 = vpop.permute.xlu0 %3185  ;;  %3104 = vmatprep.subr.bf16.mxu0 %v3061_v43  ;;  %v3200_v4 = vpop.permute.xlu1 %3199 }
 0xd26   : > { %v3212_v6 = vsel %vm718_vm1, %v3198_v37, %v3200_v4  ;;  %v3208_v29 = vsel %vm718_vm1, %v3186_v38, %v3188_v63 }
 0xd27   : > { %3235 = vmatprep.subr.bf16.mxu1 %v3212_v6 }
 0xd28   : > { %3105 = vmatpush1.bf16.msra.mxu0 %v3060_v9  ;;  %3236 = vmatpush1.bf16.msra.mxu1 %v3211_v30 }
 0xd29   : > { %v3180_v39 = vpop.permute.xlu0 %3179  ;;  %v3194_v19 = vpop.permute.xlu1 %3193 }
 0xd2a   : > { %v3210_v48 = vsel %vm718_vm1, %v3192_v13, %v3194_v19  ;;  %v3206_v16 = vsel %vm718_vm1, %v3180_v39, %v3182_v36 }
 0xd2b   : > { %3237 = vmatprep.subr.bf16.mxu1 %v3210_v48  ;;  %3670 = vmatmul.mubr.msk.bf16.vlgmr.msra.gmra.mxu0 %vm477_vm6, %v3738_v12 }
 0xd2c   : > { %3238 = vmatpush1.bf16.msra.mxu1 %v3209_v60  ;;  %3132 = vmatprep.mubr.bf16.mxu0 %v3800_v1 }
 0xd2d   : > { %v3359_v45 = vpop.permute.xlu0 %3358  ;;  %3239 = vmatprep.subr.bf16.mxu1 %v3208_v29  ;;  %v3184_v14 = vpop.permute.xlu1 %3183 }
 0xd2e   : > { %v3207_v51 = vsel %vm718_vm1, %v3184_v14, %v3186_v38 }
 0xd30   : > { %3240 = vmatpush1.bf16.msra.mxu1 %v3207_v51 }
 0xd31   : > { %v3347_v21 = vpop.permute.xlu0 %3346  ;;  %3241 = vmatprep.subr.bf16.mxu1 %v3206_v16  ;;  %v3178_v23 = vpop.permute.xlu1 %3177 }
 0xd32   : > { %v3205_v52 = vsel %vm718_vm1, %v3178_v23, %v3180_v39 }
 0xd33   : > { %3671 = vmatmul.mubr.msk.bf16.gmra.mxu0 %vm477_vm6, %v3740_v59 }
 0xd34   : > { %3242 = vmatpush1.bf16.msra.mxu1 %v3205_v52  ;;  %3426 = vmatprep.mubr.bf16.mxu0 %v3800_v1 }
 0xd35   : > { %v3361_v7 = vpop.permute.xlu0 %3360  ;;  %3243 = vmatprep.subr.bf16.mxu1 %v3204_v18  ;;  %v3353_v25 = vpop.permute.xlu1 %3352 }
 0xd36   : > { %v3374_v42 = vsel %vm909_vm2, %v3359_v45, %v3361_v7 }
 0xd38   : > { %3244 = vmatpush1.bf16.msra.mxu1 %v3203_v28 }
 0xd39   : > { %v3357_v32 = vpop.permute.xlu0 %3356  ;;  %3245 = vmatprep.subr.bf16.mxu1 %v3202_v26  ;;  %v3341_v61 = vpop.permute.xlu1 %3340 }
 0xd3c   : > { %3246 = vmatpush1.bf16.msra.mxu1 %v3201_v49  ;;  %v3784_v49 = vld [vmem:[%s3890_s23] sm:$0xff] }
 0xd3d   : > { %v3363_v5 = vpop.permute.xlu1 %3362  ;;  %v3349_v35 = vpop.permute.xlu0 %3348 }
 0xd3e   : > { %v3375_v11 = vsel %vm909_vm2, %v3361_v7, %v3363_v5  ;;  %v3370_v54 = vsel %vm909_vm2, %v3347_v21, %v3349_v35 }
 0xd3f   : > { %3674 = vmatmul.mubr.msk.bf16.vlgmr.msra.gmra.mxu1 %vm477_vm6, %v3739_v44  ;;  %3398 = vmatprep.subr.bf16.mxu0 %v3375_v11 }
 0xd40   : > { %3684 = vmatprep.subr.bf16.mxu1 %v3375_v11  ;;  %3399 = vmatpush1.bf16.msra.mxu0 %v3374_v42 }
 0xd41   : > { %3690 = vmatpush1.bf16.msra.mxu1 %v3374_v42  ;;  %v3355_v41 = vpop.permute.xlu1 %3354  ;;  %3273 = vmatprep.mubr.bf16.mxu1 %v3800_v1  ;;  %v3345_v55 = vpop.permute.xlu0 %3344 }
 0xd42   : > { %v3372_v34 = vsel %vm909_vm2, %v3353_v25, %v3355_v41  ;;  %v3373_v15 = vsel %vm909_vm2, %v3355_v41, %v3357_v32  ;;  %v3785_v41 = vld [vmem:[%s3890_s23 + $0x20] sm:$0xff] }
 0xd43   : > { %3400 = vmatprep.subr.bf16.mxu0 %v3373_v15  ;;  %3685 = vmatprep.subr.bf16.mxu1 %v3373_v15 }
 0xd44   : > { %3401 = vmatpush1.bf16.msra.mxu0 %v3372_v34 }
 0xd45   : > { %3691 = vmatpush1.bf16.msra.mxu1 %v3372_v34  ;;  %v3351_v57 = vpop.permute.xlu1 %3350  ;;  %v3337_v46 = vpop.permute.xlu0 %3336 }
 0xd46   : > { %v3371_v40 = vsel %vm909_vm2, %v3349_v35, %v3351_v57  ;;  %v3366_v47 = vsel %vm909_vm2, %v4138_v33, %v3337_v46 }
 0xd47   : > { %3402 = vmatprep.subr.bf16.mxu0 %v3371_v40  ;;  %3686 = vmatprep.subr.bf16.mxu1 %v3371_v40  ;;  %v3786_v40 = vld [vmem:[%s3890_s23 + $0x8] sm:$0xff] }
 0xd48   : > { %3403 = vmatpush1.bf16.msra.mxu0 %v3370_v54  ;;  %3675 = vmatmul.mubr.msk.bf16.gmra.mxu1 %vm477_vm6, %v3741_v50 }
 0xd49   : > { %3692 = vmatpush1.bf16.msra.mxu1 %v3370_v54  ;;  %v3343_v53 = vpop.permute.xlu1 %3342  ;;  %3436 = vmatprep.mubr.bf16.mxu1 %v3800_v1  ;;  %v3333_v24 = vpop.permute.xlu0 %3332 }
 0xd4a   : > { %v3368_v20 = vsel %vm909_vm2, %v3341_v61, %v3343_v53  ;;  %v3369_v8 = vsel %vm909_vm2, %v3343_v53, %v3345_v55  ;;  %v3364_v17 = vsel %vm909_vm2, %v4138_v33, %v3333_v24 }
 0xd4b   : > { %3404 = vmatprep.subr.bf16.mxu0 %v3369_v8  ;;  %3687 = vmatprep.subr.bf16.mxu1 %v3369_v8  ;;  %v3787_v8 = vld [vmem:[%s3890_s23 + $0x28] sm:$0xff] }
 0xd4c   : > { %3405 = vmatpush1.bf16.msra.mxu0 %v3368_v20 }
 0xd4d   : > { %3693 = vmatpush1.bf16.msra.mxu1 %v3368_v20  ;;  %v3339_v3 = vpop.permute.xlu1 %3338 }
 0xd4e   : > { %v3367_v56 = vsel %vm909_vm2, %v3337_v46, %v3339_v3 }
 0xd4f   : > { %3406 = vmatprep.subr.bf16.mxu0 %v3367_v56  ;;  %3688 = vmatprep.subr.bf16.mxu1 %v3367_v56 }
 0xd50   : > { %3407 = vmatpush1.bf16.msra.mxu0 %v3366_v47 }
 0xd51   : > { %3694 = vmatpush1.bf16.msra.mxu1 %v3366_v47  ;;  %v3335_v1 = vpop.permute.xlu1 %3334 }
 0xd52   : > { %v3365_v62 = vsel %vm909_vm2, %v3333_v24, %v3335_v1  ;;  %v3788_v24 = vld [vmem:[%s3890_s23 + $0x10] sm:$0xff] }
 0xd53   : > { %3408 = vmatprep.subr.bf16.mxu0 %v3365_v62  ;;  %3689 = vmatprep.subr.bf16.mxu1 %v3365_v62 }
 0xd54   : > { %3409 = vmatpush1.bf16.msra.mxu0 %v3364_v17 }
 0xd55   : > { %3695 = vmatpush1.bf16.msra.mxu1 %v3364_v17  ;;  %v3789_v17 = vld [vmem:[%s3890_s23 + $0x30] sm:$0xff] }
 0xd56   : > { %v3462_v9 = vpop.permute.xlu0 %3461 }
 0xd57   : > { %3678 = vmatmul.mubr.msk.bf16.vlgmr.msra.gmra.mxu0 %vm477_vm6, %v3742_v0 }
 0xd58   : > { %3679 = vmatmul.mubr.msk.bf16.vlgmr.msra.gmra.mxu1 %vm477_vm6, %v3743_v10 }
 0xd5a   : > { %v3472_v21 = vpop.permute.xlu0 %3471 }
 0xd5e   : > { %v3467_v60 = vpop.permute.xlu1 %3466 }
 0xd62   : > { %v3477_v57 = vpop.permute.xlu1 %3476 }
 0xdeb   : > { %v3124_v27 = vpop.f32.mrf.mxu0 }
 0xded   : > { %v3126_v58 = vpop.f32.mrf.mxu0 }
 0xdef   : > { %v3128_v63 = vpop.f32.mrf.mxu0 }
 0xdf1   : > { %v3130_v31 = vpop.f32.mrf.mxu0 }
 0xdf3   : > { %v3134_v36 = vpop.f32.mrf.mxu0 }
 0xdf5   : > { %v3136_v43 = vpop.f32.mrf.mxu0 }
 0xdf7   : > { %v3138_v4 = vpop.f32.mrf.mxu0 }
 0xdf9   : > { %v3140_v30 = vpop.f32.mrf.mxu0 }
 0xdff   : > { %v3265_v37 = vpop.f32.mrf.mxu1 }
 0xe00   : > { %v3266_v12 = vadd.f32 %v3265_v37, %v3124_v27  ;;  %v3790_v27 = vld [vmem:[%s3890_s23 + $0x18] sm:$0xff] }
 0xe01   : > { %v3267_v33 = vpop.f32.mrf.mxu1  ;;  %v3791_v37 = vld [vmem:[%s3890_s23 + $0x38] sm:$0xff] }
 0xe02   : > { %v3268_v29 = vadd.f32 %v3267_v33, %v3126_v58 }
 0xe03   : > { %v3269_v22 = vpop.f32.mrf.mxu1 }
 0xe04   : > { %v3270_v23 = vadd.f32 %v3269_v22, %v3128_v63 }
 0xe05   : > { %v3271_v13 = vpop.f32.mrf.mxu1 }
 0xe06   : > { %v3272_v61 = vadd.f32 %v3271_v13, %v3130_v31 }
 0xe08   : > { %v3275_v2 = vpop.f32.mrf.mxu1 }
 0xe09   : > { %v3276_v19 = vadd.f32 %v3275_v2, %v3134_v36 }
 0xe0a   : > { %v3277_v38 = vpop.f32.mrf.mxu1 }
 0xe0b   : > { %v3278_v51 = vadd.f32 %v3277_v38, %v3136_v43 }
 0xe0c   : > { %v3279_v6 = vpop.f32.mrf.mxu1 }
 0xe0d   : > { %v3280_v25 = vadd.f32 %v3279_v6, %v3138_v4 }
 0xe0e   : > { %v3281_v39 = vpop.f32.mrf.mxu1 }
 0xe0f   : > { %v3282_v42 = vadd.f32 %v3281_v39, %v3140_v30 }
 0xe17   : > { %v3428_v48 = vpop.f32.mrf.mxu0 }
 0xe18   : > { %v3447_v45 = vadd.f32 %v3428_v48, %v3266_v12  ;;  %v3438_v14 = vpop.f32.mrf.mxu1 }
 0xe19   : > { %v3451_v59 = vadd.f32 %v3438_v14, %v3276_v19  ;;  %v3430_v16 = vpop.f32.mrf.mxu0 }
 0xe1a   : > { %v3479_v52 = vadd.f32 %v3462_v9, %v3447_v45  ;;  %v3448_v18 = vadd.f32 %v3430_v16, %v3268_v29  ;;  %v3440_v7 = vpop.f32.mrf.mxu1 }
 0xe1b   : > { %v3483_v28 = vadd.f32 %v3472_v21, %v3451_v59  ;;  %v3452_v26 = vadd.f32 %v3440_v7, %v3278_v51  ;;  %v3432_v32 = vpop.f32.mrf.mxu0 }
 0xe1c   : > { %v3487_v44 = vadd.f32 %v3784_v49, %v3479_v52  ;;  %v3480_v5 = vadd.f32 %v3462_v9, %v3448_v18  ;;  %v3449_v35 = vadd.f32 %v3432_v32, %v3270_v23  ;;  %v3442_v11 = vpop.f32.mrf.mxu1 }
 0xe1d   : > { %v3491_v34 = vadd.f32 %v3785_v41, %v3483_v28  ;;  %v3484_v15 = vadd.f32 %v3472_v21, %v3452_v26  ;;  %v3453_v55 = vadd.f32 %v3442_v11, %v3280_v25  ;;  %v3434_v50 = vpop.f32.mrf.mxu0 }
 0xe1e   : > { %3495 = vst [vmem:[%s5497_s16] sm:$0xff] %v3487_v44  ;;  %v3488_v54 = vadd.f32 %v3786_v40, %v3480_v5  ;;  %v3481_v53 = vadd.f32 %v3467_v60, %v3449_v35  ;;  %v3450_v46 = vadd.f32 %v3434_v50, %v3272_v61  ;;  %v3444_v20 = vpop.f32.mrf.mxu1 }
 0xe1f   : > { %3499 = vst [vmem:[%s5497_s16 + $0x20] sm:$0xff] %v3491_v34  ;;  %v3492_v3 = vadd.f32 %v3787_v8, %v3484_v15  ;;  %v3485_v56 = vadd.f32 %v3477_v57, %v3453_v55  ;;  %v3454_v47 = vadd.f32 %v3444_v20, %v3282_v42 }
 0xe20   : > { %3496 = vst [vmem:[%s5497_s16 + $0x8] sm:$0xff] %v3488_v54  ;;  %v3489_v1 = vadd.f32 %v3788_v24, %v3481_v53  ;;  %v3482_v62 = vadd.f32 %v3467_v60, %v3450_v46 }
 0xe21   : > { %3500 = vst [vmem:[%s5497_s16 + $0x28] sm:$0xff] %v3492_v3  ;;  %v3493_v0 = vadd.f32 %v3789_v17, %v3485_v56  ;;  %v3486_v10 = vadd.f32 %v3477_v57, %v3454_v47 }
 0xe22   : > { %3497 = vst [vmem:[%s5497_s16 + $0x10] sm:$0xff] %v3489_v1  ;;  %v3490_v58 = vadd.f32 %v3790_v27, %v3482_v62 }
 0xe23   : > { %3501 = vst [vmem:[%s5497_s16 + $0x30] sm:$0xff] %v3493_v0  ;;  %v3494_v33 = vadd.f32 %v3791_v37, %v3486_v10 }
 0xe24   : > { %3498 = vst [vmem:[%s5497_s16 + $0x18] sm:$0xff] %v3490_v58 }
 0xe25   : > { %3502 = vst [vmem:[%s5497_s16 + $0x38] sm:$0xff] %v3494_v33 }
 0xe26 PF: > { %s21_s17 = sadd.s32 1, %s3798_s17  }
 0xe27   : > { %p18_p4 = scmp.ge.s32.totalorder %s21_s17, 4  }
 0xe29   :  { %20 = sbr.rel (!%p18_p4) target bundleno = 1 (0x1), region = 102 }

</bundles_post_ra>
